<compile_context>
chip_gen: v7x
topology: tpu7x:2x2x1
jax: 0.10.0
libtpu: 0.0.40
codegen_flags: <defaults>
</compile_context>

<pallas_src>
import jax
import jax.numpy as jnp
from jax.experimental import pallas as pl
from jax.experimental.pallas import tpu as pltpu

_BN_EPS = 1e-5


# ------------------------------ kernel body ----------------------------------

def _make_byol_kernel(batch, batch_pad, enc_dim, hidden, proj_dim):
    """One grid step == one augmented view: online enc->proj->pred + target enc->proj."""
    E, H, P = enc_dim, hidden, proj_dim
    need_mask = (batch_pad != batch)
    inv_n = 1.0 / float(batch)          # PyTorch BatchNorm1d normalizes with biased 1/N

    head_base = 2 * E                   # vec lane layout: [enc_on_b | enc_tg_b | 3 heads]
    head_span = 4 * H                   # per head: [b1 | gamma | beta | b2 (padded to H)]

    def head_slices(vec_ref, i):
        b = head_base + i * head_span   # all offsets are multiples of 128 (tile-aligned)
        return (vec_ref[:, b:b + H],                    # b1
                vec_ref[:, b + H:b + 2 * H],            # gamma
                vec_ref[:, b + 2 * H:b + 3 * H],        # beta
                vec_ref[:, b + 3 * H:b + 3 * H + P])    # b2

    def mlp_head(x_f32, w1, w2, b1, gamma, beta, b2, row_mask):
        # Linear -> BatchNorm1d (train mode, this view's batch stats) -> ReLU -> Linear
        h = jnp.dot(x_f32.astype(jnp.bfloat16), w1,
                    preferred_element_type=jnp.float32) + b1         # [Bp, H] f32
        hm = h * row_mask if row_mask is not None else h
        mean = jnp.sum(hm, axis=0, keepdims=True) * inv_n            # [1, H]
        d = h - mean
        dsq = d * d
        if row_mask is not None:
            dsq = dsq * row_mask
        var = jnp.sum(dsq, axis=0, keepdims=True) * inv_n
        scale = gamma * jax.lax.rsqrt(var + _BN_EPS)                  # gamma folded in
        act = jnp.maximum(d * scale + beta, 0.0)
        return jnp.dot(act.astype(jnp.bfloat16), w2,
                       preferred_element_type=jnp.float32) + b2       # [Bp, out] f32

    def kernel(x1_ref, x2_ref, enc_w_ref, w1p_ref, w1q_ref, w2_ref, vec_ref,
               pred_ref, tproj_ref):
        v = pl.program_id(0)
        # Both views are VMEM-resident (each DMA'd once); select this program's view.
        x = jnp.where(v == 0, x1_ref[...], x2_ref[...])               # [Bp, F] bf16

        if need_mask:
            rows = jax.lax.broadcasted_iota(jnp.int32, (batch_pad, 1), 0)
            row_mask = (rows < batch).astype(jnp.float32)             # excludes pad rows
        else:
            row_mask = None

        # ---- fused online + target encoder: one MXU pass over [F, 2E] ----
        e = jnp.dot(x, enc_w_ref[...], preferred_element_type=jnp.float32)
        e = e + vec_ref[:, :2 * E]                                    # both biases at once
        e_on, e_tg = e[:, :E], e[:, E:]                               # lane-aligned split

        # ---- online branch: projection -> predictor (all intermediates stay in VMEM) ----
        proj_on = mlp_head(e_on, w1p_ref[:, :H], w2_ref[:, :P],
                           *head_slices(vec_ref, 0), row_mask)        # [Bp, P]
        pred_ref[...] = mlp_head(proj_on, w1q_ref[...], w2_ref[:, P:2 * P],
                                 *head_slices(vec_ref, 1), row_mask)

        # ---- target branch: projection (stop-gradient applied in the wrapper) ----
        tproj_ref[...] = mlp_head(e_tg, w1p_ref[:, H:2 * H], w2_ref[:, 2 * P:3 * P],
                                  *head_slices(vec_ref, 2), row_mask)

    return kernel


# ------------------------------- wrapper --------------------------------------

def _resident_spec(shape):
    """Full-array block whose index_map ignores the view axis -> DMA'd once, stays resident."""
    nd = len(shape)

    def index_map(v):
        return (0,) * nd

    return pl.BlockSpec(shape, index_map)


def byol_fused_forward(packed, x1f, x2f, batch, batch_pad):
    enc_dim = packed["w1_projs"].shape[0]        # 512
    hidden = packed["w1_pred"].shape[1]          # 256
    proj_dim = packed["w2"].shape[1] // 3        # 128

    inputs = (x1f, x2f, packed["enc_w"], packed["w1_projs"], packed["w1_pred"],
              packed["w2"], packed["vec"])
    out_shape = (jax.ShapeDtypeStruct((2 * batch_pad, proj_dim), jnp.float32),
                 jax.ShapeDtypeStruct((2 * batch_pad, proj_dim), jnp.float32))
    out_specs = (pl.BlockSpec((batch_pad, proj_dim), lambda v: (v, 0)),
                 pl.BlockSpec((batch_pad, proj_dim), lambda v: (v, 0)))

    return pl.pallas_call(
        _make_byol_kernel(batch, batch_pad, enc_dim, hidden, proj_dim),
        grid=(2,),                               # one program per augmented view
        out_shape=out_shape,
        in_specs=[_resident_spec(a.shape) for a in inputs],
        out_specs=out_specs,
        compiler_params=pltpu.CompilerParams(
            # view axis shards across v7x's two TensorCores; serial 2-step loop elsewhere
            dimension_semantics=("parallel",),
            # whole working set (~3 MiB bf16 weights + tiny activations) fits comfortably
            # under every generation's VMEM (v5e/v6e 128 MiB, v7x 64 MiB physical).
            vmem_limit_bytes=32 * 1024 * 1024,
        ),
    )(*inputs)


# --------------------------- parameters & packing ------------------------------

def _init_linear(key, in_dim, out_dim):
    kw, kb = jax.random.split(key)
    bound = float(in_dim) ** -0.5
    w = jax.random.uniform(kw, (in_dim, out_dim), jnp.float32, -bound, bound)
    b = jax.random.uniform(kb, (out_dim,), jnp.float32, -bound, bound)
    return w, b


def _init_mlp_head(key, in_dim, out_dim, hidden=256):
    k1, k2 = jax.random.split(key)
    w1, b1 = _init_linear(k1, in_dim, hidden)
    w2, b2 = _init_linear(k2, hidden, out_dim)
    return {"w1": w1, "b1": b1,
            "gamma": jnp.ones((hidden,), jnp.float32),
            "beta": jnp.zeros((hidden,), jnp.float32),
            "w2": w2, "b2": b2}


def init_byol_params(key, feat_in, projection_dim=128, encoder_dim=512):
    k_enc, k_proj, k_pred = jax.random.split(key, 3)
    enc_w, enc_b = _init_linear(k_enc, feat_in, encoder_dim)
    online_proj = _init_mlp_head(k_proj, encoder_dim, projection_dim)
    online_pred = _init_mlp_head(k_pred, projection_dim, projection_dim)
    # Target nets = deepcopy of online nets at init; JAX arrays are immutable, so sharing
    # the same arrays is equivalent.  An EMA update must build new target arrays.
    return {"online_encoder": {"w": enc_w, "b": enc_b},
            "target_encoder": {"w": enc_w, "b": enc_b},
            "online_projection": online_proj,
            "online_predictor": online_pred,
            "target_projection": dict(online_proj)}


def pack_byol_params(params):
    """Pack the f32 master params into the kernel's fused operands (one-time, outside jit).

    TODO(synk): to halve weight-DMA bytes again, store these packed matrices as int8 with
    per-column f32 scales on v5e/v6e (fp8 on v7x -- its MXU has no int path) and use the
    native low-precision MXU path; kept bf16 here to stay numerically close to the fp32
    PyTorch reference.
    """
    proj = params["online_projection"]
    pred = params["online_predictor"]
    tproj = params["target_projection"]
    hidden = proj["w1"].shape[1]
    proj_dim = proj["w2"].shape[1]
    assert proj_dim <= hidden

    enc_w = jnp.concatenate([params["online_encoder"]["w"],
                             params["target_encoder"]["w"]], axis=1)      # [F, 1024]
    w1_projs = jnp.concatenate([proj["w1"], tproj["w1"]], axis=1)         # [512, 512]
    w2 = jnp.concatenate([proj["w2"], pred["w2"], tproj["w2"]], axis=1)   # [256, 384]

    def head_vec(h):
        b2 = jnp.pad(h["b2"], (0, hidden - proj_dim))
        return jnp.concatenate([h["b1"], h["gamma"], h["beta"], b2])      # [4*hidden]

    vec = jnp.concatenate([params["online_encoder"]["b"],
                           params["target_encoder"]["b"],
                           head_vec(proj), head_vec(pred), head_vec(tproj)])
    return {"enc_w": enc_w.astype(jnp.bfloat16),
            "w1_projs": w1_projs.astype(jnp.bfloat16),
            "w1_pred": pred["w1"].astype(jnp.bfloat16),
            "w2": w2.astype(jnp.bfloat16),
            "vec": vec.reshape(1, -1).astype(jnp.float32)}                # [1, 4096]


# ------------------------------ BYOL forward -----------------------------------

@jax.jit
def byol_forward(packed, x1, x2):
    """BYOL.forward(x1, x2) -> (pred1, pred2, target_proj1, target_proj2).

    TODO(synk): pl.pallas_call has no autodiff rule; wrap in jax.custom_vjp before using
                this forward inside a training step.
    TODO(synk): BatchNorm1d running_mean/running_var are not tracked (the train-mode
                normalization itself matches batch-statistic semantics).
    """
    B = x1.shape[0]
    B_pad = -(-B // 8) * 8                               # sublane-aligned per-view batch
    x1f = x1.reshape(B, -1).astype(jnp.bfloat16)         # flatten->Linear stand-in encoder
    x2f = x2.reshape(B, -1).astype(jnp.bfloat16)
    if B_pad != B:
        x1f = jnp.pad(x1f, ((0, B_pad - B), (0, 0)))
        x2f = jnp.pad(x2f, ((0, B_pad - B), (0, 0)))
    pred, tproj = byol_fused_forward(packed, x1f, x2f, B, B_pad)
    tproj = jax.lax.stop_gradient(tproj)                 # mirrors torch.no_grad()+.detach()
    return (pred[:B], pred[B_pad:B_pad + B], tproj[:B], tproj[B_pad:B_pad + B])


# ---------------------------------- main ----------------------------------------

if __name__ == "__main__":
    key = jax.random.PRNGKey(0)
    k_params, k_x1, k_x2 = jax.random.split(key, 3)

    B, C, H, W = 2, 4, 16, 16                  # small NCHW images
    projection_dim = 128

    x1 = jax.random.normal(k_x1, (B, C, H, W), jnp.float32)
    x2 = jax.random.normal(k_x2, (B, C, H, W), jnp.float32)

    params = init_byol_params(k_params, feat_in=C * H * W,
                              projection_dim=projection_dim, encoder_dim=512)
    packed = pack_byol_params(params)

    pred1, pred2, tproj1, tproj2 = byol_forward(packed, x1, x2)
    jax.block_until_ready((pred1, pred2, tproj1, tproj2))

    assert pred1.shape == (B, projection_dim)
    assert pred2.shape == (B, projection_dim)
    assert tproj1.shape == (B, projection_dim)
    assert tproj2.shape == (B, projection_dim)

    print("KERNEL_OK")
</pallas_src>

<mosaic_0001>
module attributes {stable_mosaic.version = 11 : i64} {
  func.func @kernel(%arg0: i32, %arg1: memref<8x1024xbf16, #tpu.memory_space<vmem>>, %arg2: memref<8x1024xbf16, #tpu.memory_space<vmem>>, %arg3: memref<1024x1024xbf16, #tpu.memory_space<vmem>>, %arg4: memref<512x512xbf16, #tpu.memory_space<vmem>>, %arg5: memref<128x256xbf16, #tpu.memory_space<vmem>>, %arg6: memref<256x384xbf16, #tpu.memory_space<vmem>>, %arg7: memref<1x4096xf32, #tpu.memory_space<vmem>>, %arg8: memref<8x128xf32, #tpu.memory_space<vmem>>, %arg9: memref<8x128xf32, #tpu.memory_space<vmem>>) attributes {dimension_semantics = [#tpu.dimension_semantics<parallel>], iteration_bounds = array<i64: 2>, scalar_prefetch = 0 : i64, scratch_operands = 0 : i64, tpu.core_type = #tpu.core_type<tc>, window_params = [{pipeline_mode = #tpu.pipeline_mode<synchronous>, transform_indices = @transform_0, window_bounds = array<i64: 8, 1024>}, {pipeline_mode = #tpu.pipeline_mode<synchronous>, transform_indices = @transform_1, window_bounds = array<i64: 8, 1024>}, {pipeline_mode = #tpu.pipeline_mode<synchronous>, transform_indices = @transform_2, window_bounds = array<i64: 1024, 1024>}, {pipeline_mode = #tpu.pipeline_mode<synchronous>, transform_indices = @transform_3, window_bounds = array<i64: 512, 512>}, {pipeline_mode = #tpu.pipeline_mode<synchronous>, transform_indices = @transform_4, window_bounds = array<i64: 128, 256>}, {pipeline_mode = #tpu.pipeline_mode<synchronous>, transform_indices = @transform_5, window_bounds = array<i64: 256, 384>}, {pipeline_mode = #tpu.pipeline_mode<synchronous>, transform_indices = @transform_6, window_bounds = array<i64: 1, 4096>}, {transform_indices = @transform_7, window_bounds = array<i64: 8, 128>}, {transform_indices = @transform_8, window_bounds = array<i64: 8, 128>}]} {
    %c0_i32 = arith.constant 0 : i32
    %0 = arith.cmpi eq, %arg0, %c0_i32 : i32
    %c0 = arith.constant 0 : index
    %c0_0 = arith.constant 0 : index
    %1 = vector.load %arg1[%c0, %c0_0] : memref<8x1024xbf16, #tpu.memory_space<vmem>>, vector<8x1024xbf16>
    %c0_1 = arith.constant 0 : index
    %c0_2 = arith.constant 0 : index
    %2 = vector.load %arg2[%c0_1, %c0_2] : memref<8x1024xbf16, #tpu.memory_space<vmem>>, vector<8x1024xbf16>
    %3 = arith.select %0, %1, %2 : vector<8x1024xbf16>
    %4 = tpu.iota {dimensions = array<i32: 0>} : vector<8x1xi32>
    %c2_i32 = arith.constant 2 : i32
    %5 = vector.broadcast %c2_i32 : i32 to vector<8x1xi32>
    %6 = arith.cmpi slt, %4, %5 : vector<8x1xi32>
    %7 = arith.extui %6 : vector<8x1xi1> to vector<8x1xi32>
    %8 = arith.sitofp %7 : vector<8x1xi32> to vector<8x1xf32>
    %c0_3 = arith.constant 0 : index
    %c0_4 = arith.constant 0 : index
    %9 = vector.load %arg3[%c0_3, %c0_4] : memref<1024x1024xbf16, #tpu.memory_space<vmem>>, vector<1024x1024xbf16>
    %cst = arith.constant dense<0.000000e+00> : vector<8x1024xf32>
    %10 = tpu.matmul %3, %9, %cst {dimension_numbers = #tpu.dot_dimension_numbers<[1], [0], [0], [1], [0, 0, 1, 1], [], []>} : vector<8x1024xbf16>, vector<1024x1024xbf16>, vector<8x1024xf32> -> vector<8x1024xf32>
    %c0_5 = arith.constant 0 : index
    %c0_6 = arith.constant 0 : index
    %11 = vector.load %arg7[%c0_5, %c0_6] : memref<1x4096xf32, #tpu.memory_space<vmem>>, vector<1x1024xf32>
    %12 = vector.broadcast %11 : vector<1x1024xf32> to vector<8x1024xf32>
    %13 = arith.addf %10, %12 : vector<8x1024xf32>
    %14 = vector.extract_strided_slice %13 {offsets = [0, 0], sizes = [8, 512], strides = [1, 1]} : vector<8x1024xf32> to vector<8x512xf32>
    %15 = vector.extract_strided_slice %13 {offsets = [0, 512], sizes = [8, 512], strides = [1, 1]} : vector<8x1024xf32> to vector<8x512xf32>
    %c0_7 = arith.constant 0 : index
    %c0_8 = arith.constant 0 : index
    %16 = vector.load %arg4[%c0_7, %c0_8] : memref<512x512xbf16, #tpu.memory_space<vmem>>, vector<512x256xbf16>
    %c0_9 = arith.constant 0 : index
    %c0_10 = arith.constant 0 : index
    %17 = vector.load %arg6[%c0_9, %c0_10] : memref<256x384xbf16, #tpu.memory_space<vmem>>, vector<256x128xbf16>
    %c0_11 = arith.constant 0 : index
    %c1024 = arith.constant 1024 : index
    %18 = vector.load %arg7[%c0_11, %c1024] : memref<1x4096xf32, #tpu.memory_space<vmem>>, vector<1x256xf32>
    %c0_12 = arith.constant 0 : index
    %c1280 = arith.constant 1280 : index
    %19 = vector.load %arg7[%c0_12, %c1280] : memref<1x4096xf32, #tpu.memory_space<vmem>>, vector<1x256xf32>
    %c0_13 = arith.constant 0 : index
    %c1536 = arith.constant 1536 : index
    %20 = vector.load %arg7[%c0_13, %c1536] : memref<1x4096xf32, #tpu.memory_space<vmem>>, vector<1x256xf32>
    %c0_14 = arith.constant 0 : index
    %c1792 = arith.constant 1792 : index
    %21 = vector.load %arg7[%c0_14, %c1792] : memref<1x4096xf32, #tpu.memory_space<vmem>>, vector<1x128xf32>
    %22 = arith.truncf %14 : vector<8x512xf32> to vector<8x512xbf16>
    %cst_15 = arith.constant dense<0.000000e+00> : vector<8x256xf32>
    %23 = tpu.matmul %22, %16, %cst_15 {dimension_numbers = #tpu.dot_dimension_numbers<[1], [0], [0], [1], [0, 0, 1, 1], [], []>} : vector<8x512xbf16>, vector<512x256xbf16>, vector<8x256xf32> -> vector<8x256xf32>
    %24 = vector.broadcast %18 : vector<1x256xf32> to vector<8x256xf32>
    %25 = arith.addf %23, %24 : vector<8x256xf32>
    %26 = vector.broadcast %8 : vector<8x1xf32> to vector<8x256xf32>
    %27 = arith.mulf %25, %26 : vector<8x256xf32>
    %cst_16 = arith.constant dense<0.000000e+00> : vector<256xf32>
    %28 = vector.multi_reduction <add>, %27, %cst_16 [0] : vector<8x256xf32> to vector<256xf32>
    %29 = vector.shape_cast %28 : vector<256xf32> to vector<1x256xf32>
    %cst_17 = arith.constant 5.000000e-01 : f32
    %30 = vector.broadcast %cst_17 : f32 to vector<1x256xf32>
    %31 = arith.mulf %29, %30 : vector<1x256xf32>
    %32 = vector.broadcast %31 : vector<1x256xf32> to vector<8x256xf32>
    %33 = arith.subf %25, %32 : vector<8x256xf32>
    %34 = arith.mulf %33, %33 : vector<8x256xf32>
    %35 = vector.broadcast %8 : vector<8x1xf32> to vector<8x256xf32>
    %36 = arith.mulf %34, %35 : vector<8x256xf32>
    %cst_18 = arith.constant dense<0.000000e+00> : vector<256xf32>
    %37 = vector.multi_reduction <add>, %36, %cst_18 [0] : vector<8x256xf32> to vector<256xf32>
    %38 = vector.shape_cast %37 : vector<256xf32> to vector<1x256xf32>
    %cst_19 = arith.constant 5.000000e-01 : f32
    %39 = vector.broadcast %cst_19 : f32 to vector<1x256xf32>
    %40 = arith.mulf %38, %39 : vector<1x256xf32>
    %cst_20 = arith.constant 9.99999974E-6 : f32
    %41 = vector.broadcast %cst_20 : f32 to vector<1x256xf32>
    %42 = arith.addf %40, %41 : vector<1x256xf32>
    %43 = math.rsqrt %42 : vector<1x256xf32>
    %44 = arith.mulf %19, %43 : vector<1x256xf32>
    %45 = vector.broadcast %44 : vector<1x256xf32> to vector<8x256xf32>
    %46 = arith.mulf %33, %45 : vector<8x256xf32>
    %47 = vector.broadcast %20 : vector<1x256xf32> to vector<8x256xf32>
    %48 = arith.addf %46, %47 : vector<8x256xf32>
    %cst_21 = arith.constant 0.000000e+00 : f32
    %49 = vector.broadcast %cst_21 : f32 to vector<8x256xf32>
    %50 = arith.maximumf %48, %49 : vector<8x256xf32>
    %51 = arith.truncf %50 : vector<8x256xf32> to vector<8x256xbf16>
    %cst_22 = arith.constant dense<0.000000e+00> : vector<8x128xf32>
    %52 = tpu.matmul %51, %17, %cst_22 {dimension_numbers = #tpu.dot_dimension_numbers<[1], [0], [0], [1], [0, 0, 1, 1], [], []>} : vector<8x256xbf16>, vector<256x128xbf16>, vector<8x128xf32> -> vector<8x128xf32>
    %53 = vector.broadcast %21 : vector<1x128xf32> to vector<8x128xf32>
    %54 = arith.addf %52, %53 : vector<8x128xf32>
    %c0_23 = arith.constant 0 : index
    %c0_24 = arith.constant 0 : index
    %55 = vector.load %arg5[%c0_23, %c0_24] : memref<128x256xbf16, #tpu.memory_space<vmem>>, vector<128x256xbf16>
    %c0_25 = arith.constant 0 : index
    %c128 = arith.constant 128 : index
    %56 = vector.load %arg6[%c0_25, %c128] : memref<256x384xbf16, #tpu.memory_space<vmem>>, vector<256x128xbf16>
    %c0_26 = arith.constant 0 : index
    %c2048 = arith.constant 2048 : index
    %57 = vector.load %arg7[%c0_26, %c2048] : memref<1x4096xf32, #tpu.memory_space<vmem>>, vector<1x256xf32>
    %c0_27 = arith.constant 0 : index
    %c2304 = arith.constant 2304 : index
    %58 = vector.load %arg7[%c0_27, %c2304] : memref<1x4096xf32, #tpu.memory_space<vmem>>, vector<1x256xf32>
    %c0_28 = arith.constant 0 : index
    %c2560 = arith.constant 2560 : index
    %59 = vector.load %arg7[%c0_28, %c2560] : memref<1x4096xf32, #tpu.memory_space<vmem>>, vector<1x256xf32>
    %c0_29 = arith.constant 0 : index
    %c2816 = arith.constant 2816 : index
    %60 = vector.load %arg7[%c0_29, %c2816] : memref<1x4096xf32, #tpu.memory_space<vmem>>, vector<1x128xf32>
    %61 = arith.truncf %54 : vector<8x128xf32> to vector<8x128xbf16>
    %cst_30 = arith.constant dense<0.000000e+00> : vector<8x256xf32>
    %62 = tpu.matmul %61, %55, %cst_30 {dimension_numbers = #tpu.dot_dimension_numbers<[1], [0], [0], [1], [0, 0, 1, 1], [], []>} : vector<8x128xbf16>, vector<128x256xbf16>, vector<8x256xf32> -> vector<8x256xf32>
    %63 = vector.broadcast %57 : vector<1x256xf32> to vector<8x256xf32>
    %64 = arith.addf %62, %63 : vector<8x256xf32>
    %65 = vector.broadcast %8 : vector<8x1xf32> to vector<8x256xf32>
    %66 = arith.mulf %64, %65 : vector<8x256xf32>
    %cst_31 = arith.constant dense<0.000000e+00> : vector<256xf32>
    %67 = vector.multi_reduction <add>, %66, %cst_31 [0] : vector<8x256xf32> to vector<256xf32>
    %68 = vector.shape_cast %67 : vector<256xf32> to vector<1x256xf32>
    %cst_32 = arith.constant 5.000000e-01 : f32
    %69 = vector.broadcast %cst_32 : f32 to vector<1x256xf32>
    %70 = arith.mulf %68, %69 : vector<1x256xf32>
    %71 = vector.broadcast %70 : vector<1x256xf32> to vector<8x256xf32>
    %72 = arith.subf %64, %71 : vector<8x256xf32>
    %73 = arith.mulf %72, %72 : vector<8x256xf32>
    %74 = vector.broadcast %8 : vector<8x1xf32> to vector<8x256xf32>
    %75 = arith.mulf %73, %74 : vector<8x256xf32>
    %cst_33 = arith.constant dense<0.000000e+00> : vector<256xf32>
    %76 = vector.multi_reduction <add>, %75, %cst_33 [0] : vector<8x256xf32> to vector<256xf32>
    %77 = vector.shape_cast %76 : vector<256xf32> to vector<1x256xf32>
    %cst_34 = arith.constant 5.000000e-01 : f32
    %78 = vector.broadcast %cst_34 : f32 to vector<1x256xf32>
    %79 = arith.mulf %77, %78 : vector<1x256xf32>
    %cst_35 = arith.constant 9.99999974E-6 : f32
    %80 = vector.broadcast %cst_35 : f32 to vector<1x256xf32>
    %81 = arith.addf %79, %80 : vector<1x256xf32>
    %82 = math.rsqrt %81 : vector<1x256xf32>
    %83 = arith.mulf %58, %82 : vector<1x256xf32>
    %84 = vector.broadcast %83 : vector<1x256xf32> to vector<8x256xf32>
    %85 = arith.mulf %72, %84 : vector<8x256xf32>
    %86 = vector.broadcast %59 : vector<1x256xf32> to vector<8x256xf32>
    %87 = arith.addf %85, %86 : vector<8x256xf32>
    %cst_36 = arith.constant 0.000000e+00 : f32
    %88 = vector.broadcast %cst_36 : f32 to vector<8x256xf32>
    %89 = arith.maximumf %87, %88 : vector<8x256xf32>
    %90 = arith.truncf %89 : vector<8x256xf32> to vector<8x256xbf16>
    %cst_37 = arith.constant dense<0.000000e+00> : vector<8x128xf32>
    %91 = tpu.matmul %90, %56, %cst_37 {dimension_numbers = #tpu.dot_dimension_numbers<[1], [0], [0], [1], [0, 0, 1, 1], [], []>} : vector<8x256xbf16>, vector<256x128xbf16>, vector<8x128xf32> -> vector<8x128xf32>
    %92 = vector.broadcast %60 : vector<1x128xf32> to vector<8x128xf32>
    %93 = arith.addf %91, %92 : vector<8x128xf32>
    %c0_38 = arith.constant 0 : index
    %c0_39 = arith.constant 0 : index
    %94 = vector.load %arg8[%c0_38, %c0_39] : memref<8x128xf32, #tpu.memory_space<vmem>>, vector<8x128xf32>
    tpu.vector_store %arg8[%c0_38, %c0_39], %93 {strides = array<i32>} : memref<8x128xf32, #tpu.memory_space<vmem>>, vector<8x128xf32>,
    %c0_40 = arith.constant 0 : index
    %c256 = arith.constant 256 : index
    %95 = vector.load %arg4[%c0_40, %c256] : memref<512x512xbf16, #tpu.memory_space<vmem>>, vector<512x256xbf16>
    %c0_41 = arith.constant 0 : index
    %c256_42 = arith.constant 256 : index
    %96 = vector.load %arg6[%c0_41, %c256_42] : memref<256x384xbf16, #tpu.memory_space<vmem>>, vector<256x128xbf16>
    %c0_43 = arith.constant 0 : index
    %c3072 = arith.constant 3072 : index
    %97 = vector.load %arg7[%c0_43, %c3072] : memref<1x4096xf32, #tpu.memory_space<vmem>>, vector<1x256xf32>
    %c0_44 = arith.constant 0 : index
    %c3328 = arith.constant 3328 : index
    %98 = vector.load %arg7[%c0_44, %c3328] : memref<1x4096xf32, #tpu.memory_space<vmem>>, vector<1x256xf32>
    %c0_45 = arith.constant 0 : index
    %c3584 = arith.constant 3584 : index
    %99 = vector.load %arg7[%c0_45, %c3584] : memref<1x4096xf32, #tpu.memory_space<vmem>>, vector<1x256xf32>
    %c0_46 = arith.constant 0 : index
    %c3840 = arith.constant 3840 : index
    %100 = vector.load %arg7[%c0_46, %c3840] : memref<1x4096xf32, #tpu.memory_space<vmem>>, vector<1x128xf32>
    %101 = arith.truncf %15 : vector<8x512xf32> to vector<8x512xbf16>
    %cst_47 = arith.constant dense<0.000000e+00> : vector<8x256xf32>
    %102 = tpu.matmul %101, %95, %cst_47 {dimension_numbers = #tpu.dot_dimension_numbers<[1], [0], [0], [1], [0, 0, 1, 1], [], []>} : vector<8x512xbf16>, vector<512x256xbf16>, vector<8x256xf32> -> vector<8x256xf32>
    %103 = vector.broadcast %97 : vector<1x256xf32> to vector<8x256xf32>
    %104 = arith.addf %102, %103 : vector<8x256xf32>
    %105 = vector.broadcast %8 : vector<8x1xf32> to vector<8x256xf32>
    %106 = arith.mulf %104, %105 : vector<8x256xf32>
    %cst_48 = arith.constant dense<0.000000e+00> : vector<256xf32>
    %107 = vector.multi_reduction <add>, %106, %cst_48 [0] : vector<8x256xf32> to vector<256xf32>
    %108 = vector.shape_cast %107 : vector<256xf32> to vector<1x256xf32>
    %cst_49 = arith.constant 5.000000e-01 : f32
    %109 = vector.broadcast %cst_49 : f32 to vector<1x256xf32>
    %110 = arith.mulf %108, %109 : vector<1x256xf32>
    %111 = vector.broadcast %110 : vector<1x256xf32> to vector<8x256xf32>
    %112 = arith.subf %104, %111 : vector<8x256xf32>
    %113 = arith.mulf %112, %112 : vector<8x256xf32>
    %114 = vector.broadcast %8 : vector<8x1xf32> to vector<8x256xf32>
    %115 = arith.mulf %113, %114 : vector<8x256xf32>
    %cst_50 = arith.constant dense<0.000000e+00> : vector<256xf32>
    %116 = vector.multi_reduction <add>, %115, %cst_50 [0] : vector<8x256xf32> to vector<256xf32>
    %117 = vector.shape_cast %116 : vector<256xf32> to vector<1x256xf32>
    %cst_51 = arith.constant 5.000000e-01 : f32
    %118 = vector.broadcast %cst_51 : f32 to vector<1x256xf32>
    %119 = arith.mulf %117, %118 : vector<1x256xf32>
    %cst_52 = arith.constant 9.99999974E-6 : f32
    %120 = vector.broadcast %cst_52 : f32 to vector<1x256xf32>
    %121 = arith.addf %119, %120 : vector<1x256xf32>
    %122 = math.rsqrt %121 : vector<1x256xf32>
    %123 = arith.mulf %98, %122 : vector<1x256xf32>
    %124 = vector.broadcast %123 : vector<1x256xf32> to vector<8x256xf32>
    %125 = arith.mulf %112, %124 : vector<8x256xf32>
    %126 = vector.broadcast %99 : vector<1x256xf32> to vector<8x256xf32>
    %127 = arith.addf %125, %126 : vector<8x256xf32>
    %cst_53 = arith.constant 0.000000e+00 : f32
    %128 = vector.broadcast %cst_53 : f32 to vector<8x256xf32>
    %129 = arith.maximumf %127, %128 : vector<8x256xf32>
    %130 = arith.truncf %129 : vector<8x256xf32> to vector<8x256xbf16>
    %cst_54 = arith.constant dense<0.000000e+00> : vector<8x128xf32>
    %131 = tpu.matmul %130, %96, %cst_54 {dimension_numbers = #tpu.dot_dimension_numbers<[1], [0], [0], [1], [0, 0, 1, 1], [], []>} : vector<8x256xbf16>, vector<256x128xbf16>, vector<8x128xf32> -> vector<8x128xf32>
    %132 = vector.broadcast %100 : vector<1x128xf32> to vector<8x128xf32>
    %133 = arith.addf %131, %132 : vector<8x128xf32>
    %c0_55 = arith.constant 0 : index
    %c0_56 = arith.constant 0 : index
    %134 = vector.load %arg9[%c0_55, %c0_56] : memref<8x128xf32, #tpu.memory_space<vmem>>, vector<8x128xf32>
    tpu.vector_store %arg9[%c0_55, %c0_56], %133 {strides = array<i32>} : memref<8x128xf32, #tpu.memory_space<vmem>>, vector<8x128xf32>,
    return
  }
  func.func @transform_0(%arg0: i32) -> (i32, i32) {
    %c0_i32 = arith.constant 0 : i32
    %c0_i32_0 = arith.constant 0 : i32
    %c0_i32_1 = arith.constant 0 : i32
    return %c0_i32, %c0_i32_0 : i32, i32
  }
  func.func @transform_1(%arg0: i32) -> (i32, i32) {
    %c0_i32 = arith.constant 0 : i32
    %c0_i32_0 = arith.constant 0 : i32
    %c0_i32_1 = arith.constant 0 : i32
    return %c0_i32, %c0_i32_0 : i32, i32
  }
  func.func @transform_2(%arg0: i32) -> (i32, i32) {
    %c0_i32 = arith.constant 0 : i32
    %c0_i32_0 = arith.constant 0 : i32
    %c0_i32_1 = arith.constant 0 : i32
    return %c0_i32, %c0_i32_0 : i32, i32
  }
  func.func @transform_3(%arg0: i32) -> (i32, i32) {
    %c0_i32 = arith.constant 0 : i32
    %c0_i32_0 = arith.constant 0 : i32
    %c0_i32_1 = arith.constant 0 : i32
    return %c0_i32, %c0_i32_0 : i32, i32
  }
  func.func @transform_4(%arg0: i32) -> (i32, i32) {
    %c0_i32 = arith.constant 0 : i32
    %c0_i32_0 = arith.constant 0 : i32
    %c0_i32_1 = arith.constant 0 : i32
    return %c0_i32, %c0_i32_0 : i32, i32
  }
  func.func @transform_5(%arg0: i32) -> (i32, i32) {
    %c0_i32 = arith.constant 0 : i32
    %c0_i32_0 = arith.constant 0 : i32
    %c0_i32_1 = arith.constant 0 : i32
    return %c0_i32, %c0_i32_0 : i32, i32
  }
  func.func @transform_6(%arg0: i32) -> (i32, i32) {
    %c0_i32 = arith.constant 0 : i32
    %c0_i32_0 = arith.constant 0 : i32
    %c0_i32_1 = arith.constant 0 : i32
    return %c0_i32, %c0_i32_0 : i32, i32
  }
  func.func @transform_7(%arg0: i32) -> (i32, i32) {
    %c0_i32 = arith.constant 0 : i32
    %c0_i32_0 = arith.constant 0 : i32
    return %arg0, %c0_i32 : i32, i32
  }
  func.func @transform_8(%arg0: i32) -> (i32, i32) {
    %c0_i32 = arith.constant 0 : i32
    %c0_i32_0 = arith.constant 0 : i32
    return %arg0, %c0_i32 : i32, i32
  }
}

</mosaic_0001>

<bundles_post_ra>
// kernel: byol_forward.1
= control target key start
LH: loop header
LB: loop body
LE: loop exit
PB: predicated region body
PF: predicated region fallthrough
CT: control target
= control target key end

     0   :  { %14 = vsyncpa [#allocation3], 0  ;;  %s8030_s0 = inlined_call_operand.vmem [shape: bf16[8,1024], index: 0, kind: input, shape index: {}]   ;;  %s8031_s1 = inlined_call_operand.vmem [shape: bf16[8,1024], index: 1, kind: input, shape index: {}]   ;;  %s8032_s2 = inlined_call_operand.hbm [shape: bf16[1024,1024], index: 2, kind: input, shape index: {}]   ;;  %s8033_s3 = inlined_call_operand.hbm [shape: bf16[512,512], index: 3, kind: input, shape index: {}]   ;;  %s8034_s4 = inlined_call_operand.hbm [shape: bf16[128,256], index: 4, kind: input, shape index: {}]   ;;  %s8035_s5 = inlined_call_operand.hbm [shape: bf16[256,384], index: 5, kind: input, shape index: {}]   ;;  %s8036_s6 = inlined_call_operand.hbm [shape: f32[1,4096], index: 6, kind: input, shape index: {}]   ;;  %s8037_s7 = inlined_call_operand.vmem [shape: f32[16,128], index: 7, kind: output, shape index: {0}]   ;;  %s8038_s8 = inlined_call_operand.vmem [shape: f32[16,128], index: 8, kind: output, shape index: {1}]  }
   0x1   :  { %15 = vsyncpa [#allocation5], 0 }
   0x2   :  { %16 = vsyncpa [#allocation8], 0  ;;  %s7658_s27 = smov 0  }
   0x3 LB: > { %s7597_s28 = smov [#allocation4]   ;;  %s7664_s30 = sadd.s32 4294967295, %s7595_s27   ;;  %s7595_s27 = sphi %s7658_s27, %s22_s27  }
   0x4   : > { %s257_s29 = sshll.u32 %s7597_s28, 4  ;;  %p6224_p0 = scmp.ge.s32.totalorder %s7595_s27, 1  ;;  %s7669_s29 = int_to_ptr.vmem [resolvable:$true] %s257_s29 }
   0x5   : > { %p226_p1 = scmp.lt.s32.totalorder %s7595_s27, 3  ;;  %p8039_p2 = scmp.eq.s32.totalorder %s7664_s30, 0 }
   0x6   : > { %s7598_s10 = smov [#allocation7]   ;;  %s7599_s13 = smov [#allocation2]  }
   0x7   : > { %p7671_p3 = pnand %p6224_p0, %p226_p1  ;;  %s283_s11 = sshll.u32 %s7598_s10, 4  ;;  %s7677_s11 = int_to_ptr.vmem [resolvable:$true] %s283_s11 }
   0x8   : > { %s7685_s14 = sshll.u32 %s7599_s13, 4  ;;  %s7437_s17 = scalar_lea.hbm %s8033_s3, 16384  ;;  %s245_s14 = int_to_ptr.vmem [resolvable:$true] %s7685_s14 }
   0x9   : > { %s8041_s9 = scalar_select %p7671_p3, 1, 0 }
   0xa   : > { %p7110_p4 = pneg %p7671_p3  ;;  %p7438_p6 = scmp.ne.s32.totalorder %s8033_s3, %s7437_s17 }
   0xb   : > { %p7444_p10 = scmp.lt.u32.totalorder %s7437_s17, %s8033_s3 }
   0xc   : > { %p7681_p5 = pnand %p8039_p2, %p7110_p4 }
   0xe   : > { %p7695_p7 = pneg %p7681_p5 }
  0x10   : > { %p7440_p8 = pnand %p7695_p7, %p7438_p6 }
  0x12   : > { %p7441_p9 = pneg %p7440_p8 }
  0x14   : > { %p7446_p11 = pnand %p7444_p10, %p7441_p9 }
  0x16   : > { %7449 = shalt.err (!%p7446_p11)
}
  0x17   : > { %s7450_s23 = scalar_lea.vmem %s7669_s29, 16384  ;;  %p7458_p1 = scmp.lt.s32.totalorder %s7669_s29, %s7669_s29 }
  0x18   : > { %p7451_p12 = scmp.ne.s32.totalorder %s7669_s29, %s7450_s23  ;;  %p7459_p4 = scmp.lt.s32.totalorder %s7450_s23, %s7450_s23 }
  0x1a   : > { %p7453_p13 = pnand %p7451_p12, %p7695_p7  ;;  %p7460_p6 = por %p7459_p4, %p7458_p1 }
  0x1c   : > { %p7454_p0 = pneg %p7453_p13 }
  0x1e   : > { %p7461_p8 = pnand %p7460_p6, %p7454_p0 }
  0x20   : > { %7464 = shalt.err (!%p7461_p8)
}
  0x21   : > { %s7600_s24 = smov 256   ;;  %s7601_s25 = smov 16  }
  0x22   : > { %7116 = dma.hbm_to_vmem [thread:$0]  (!%p7681_p5), %s8033_s3, 16384, %s7669_s29, [#allocation5], %s7600_s24, %s7600_s24, %s7601_s25  }
  0x23   : > { %s7465_s15 = scalar_lea.hbm %s8035_s5, 6144 }
  0x24   : > { %p7466_p9 = scmp.ne.s32.totalorder %s8035_s5, %s7465_s15  ;;  %p7472_p12 = scmp.lt.u32.totalorder %s7465_s15, %s8035_s5 }
  0x26   : > { %p7468_p10 = pnand %p7466_p9, %p7695_p7 }
  0x28   : > { %p7469_p11 = pneg %p7468_p10 }
  0x2a   : > { %p7474_p13 = pnand %p7472_p12, %p7469_p11 }
  0x2c   : > { %7477 = shalt.err (!%p7474_p13)
}
  0x2d   : > { %s7478_s29 = scalar_lea.vmem %s7677_s11, 6144  ;;  %p7486_p6 = scmp.lt.s32.totalorder %s7677_s11, %s7677_s11 }
  0x2e   : > { %p7479_p0 = scmp.ne.s32.totalorder %s7677_s11, %s7478_s29  ;;  %p7487_p8 = scmp.lt.s32.totalorder %s7478_s29, %s7478_s29 }
  0x30   : > { %p7481_p1 = pnand %p7479_p0, %p7695_p7  ;;  %p7488_p9 = por %p7487_p8, %p7486_p6 }
  0x32   : > { %p7482_p4 = pneg %p7481_p1 }
  0x34   : > { %p7489_p10 = pnand %p7488_p9, %p7482_p4 }
  0x36   : > { %7492 = shalt.err (!%p7489_p10)
}
  0x37   : > { %s7602_s21 = smov 192   ;;  %s7603_s22 = smov 12  }
  0x38   : > { %7122 = dma.hbm_to_vmem [thread:$0]  (!%p7681_p5), %s8035_s5, 6144, %s7677_s11, [#allocation8], %s7602_s21, %s7602_s21, %s7603_s22  }
  0x39   : > { %s7493_s28 = scalar_lea.hbm %s8032_s2, 65536 }
  0x3a   : > { %p7494_p11 = scmp.ne.s32.totalorder %s8032_s2, %s7493_s28  ;;  %p7500_p0 = scmp.lt.u32.totalorder %s7493_s28, %s8032_s2 }
  0x3c   : > { %p7496_p12 = pnand %p7494_p11, %p7695_p7 }
  0x3e   : > { %p7497_p13 = pneg %p7496_p12 }
  0x40   : > { %p7502_p1 = pnand %p7500_p0, %p7497_p13 }
  0x42   : > { %7505 = shalt.err (!%p7502_p1)
}
  0x43   : > { %s7506_s17 = scalar_lea.vmem %s245_s14, 65536  ;;  %p7514_p9 = scmp.lt.s32.totalorder %s245_s14, %s245_s14 }
  0x44   : > { %p7507_p4 = scmp.ne.s32.totalorder %s245_s14, %s7506_s17  ;;  %p7515_p10 = scmp.lt.s32.totalorder %s7506_s17, %s7506_s17 }
  0x46   : > { %p7509_p6 = pnand %p7507_p4, %p7695_p7  ;;  %p7516_p2 = por %p7515_p10, %p7514_p9 }
  0x48   : > { %p7510_p8 = pneg %p7509_p6 }
  0x4a   : > { %p7517_p3 = pnand %p7516_p2, %p7510_p8 }
  0x4c   : > { %7520 = shalt.err (!%p7517_p3)
}
  0x4d   : > { %s7604_s11 = smov 512   ;;  %s7605_s18 = smov 32  }
  0x4e   : > { %7113 = dma.hbm_to_vmem [thread:$0]  (!%p7681_p5), %s8032_s2, 65536, %s245_s14, [#allocation3], %s7604_s11, %s7604_s11, %s7605_s18  }
  0x4f   : > { %s7606_s21 = smov [#allocation6]   ;;  %s7521_s25 = scalar_lea.hbm %s8034_s4, 2048 }
  0x50   : > { %s270_s22 = sshll.u32 %s7606_s21, 4  ;;  %p7522_p2 = scmp.ne.s32.totalorder %s8034_s4, %s7521_s25  ;;  %s271_s22 = int_to_ptr.vmem [resolvable:$true] %s270_s22 }
  0x51   : > { %p7528_p12 = scmp.lt.u32.totalorder %s7521_s25, %s8034_s4 }
  0x52   : > { %p7524_p3 = pnand %p7522_p2, %p7695_p7 }
  0x54   : > { %p7525_p11 = pneg %p7524_p3 }
  0x56   : > { %p7530_p13 = pnand %p7528_p12, %p7525_p11 }
  0x58   : > { %7533 = shalt.err (!%p7530_p13)
}
  0x59   : > { %s7534_s14 = scalar_lea.vmem %s271_s22, 2048  ;;  %p7542_p6 = scmp.lt.s32.totalorder %s271_s22, %s271_s22 }
  0x5a   : > { %p7535_p0 = scmp.ne.s32.totalorder %s271_s22, %s7534_s14  ;;  %p7543_p8 = scmp.lt.s32.totalorder %s7534_s14, %s7534_s14 }
  0x5c   : > { %p7537_p1 = pnand %p7535_p0, %p7695_p7  ;;  %p7544_p9 = por %p7543_p8, %p7542_p6 }
  0x5e   : > { %p7538_p4 = pneg %p7537_p1 }
  0x60   : > { %p7545_p10 = pnand %p7544_p9, %p7538_p4 }
  0x62   : > { %7548 = shalt.err (!%p7545_p10)
}
  0x63   : > { %s7607_s15 = smov 128   ;;  %s7608_s16 = smov 8  }
  0x64   : > { %7119 = dma.hbm_to_vmem [thread:$0]  (!%p7681_p5), %s8034_s4, 2048, %s271_s22, [#allocation5], %s7607_s15, %s7607_s15, %s7608_s16  }
  0x65   : > { %s7609_s18 = smov [#allocation9]   ;;  %s7549_s23 = scalar_lea.hbm %s8036_s6, 512 }
  0x66   : > { %s297_s19 = sshll.u32 %s7609_s18, 4  ;;  %p7550_p2 = scmp.ne.s32.totalorder %s8036_s6, %s7549_s23  ;;  %s298_s19 = int_to_ptr.vmem [resolvable:$true] %s297_s19 }
  0x67   : > { %p7556_p12 = scmp.lt.u32.totalorder %s7549_s23, %s8036_s6 }
  0x68   : > { %p7552_p3 = pnand %p7550_p2, %p7695_p7 }
  0x6a   : > { %p7553_p11 = pneg %p7552_p3 }
  0x6c   : > { %p7558_p13 = pnand %p7556_p12, %p7553_p11 }
  0x6e   : > { %7561 = shalt.err (!%p7558_p13)
}
  0x6f   : > { %s7562_s22 = scalar_lea.vmem %s298_s19, 512  ;;  %p7570_p6 = scmp.lt.s32.totalorder %s298_s19, %s298_s19 }
  0x70   : > { %p7563_p0 = scmp.ne.s32.totalorder %s298_s19, %s7562_s22  ;;  %p7571_p8 = scmp.lt.s32.totalorder %s7562_s22, %s7562_s22 }
  0x72   : > { %p7565_p1 = pnand %p7563_p0, %p7695_p7  ;;  %p7572_p9 = por %p7571_p8, %p7570_p6 }
  0x74   : > { %p7566_p4 = pneg %p7565_p1 }
  0x76   : > { %p7573_p10 = pnand %p7572_p9, %p7566_p4 }
  0x78   : > { %7576 = shalt.err (!%p7573_p10)
}
  0x79   : > { %7125 = dma.hbm_to_vmem [thread:$0]  (!%p7681_p5), %s8036_s6, 512, %s298_s19, [#allocation8]  }
  0x7a   : > { %p8044_p2 = scmp.ne.s32.totalorder %s8041_s9, 0 }
  0x7b   : > { %p8045_p3 = scmp.eq.s32.totalorder (!%p8044_p2), %s7664_s30, 0 }
  0x7c   : > { %310 = sbr.rel (%p8044_p2) target bundleno = 2196 (0x894), region = 48 }
  0x83   : > { %7582 = dma.done.wait (%p8045_p3), [#allocation3], 65536   ;;  %p8046_p7 = pmov %p8045_p3 }
  0x84   : > { %p8047_p11 = pmov %p8045_p3 }
  0x85   : > { %7584 = vsyncadd (%p8046_p7), [#allocation3], 4294901760 }
  0x86   : > { %7586 = dma.done.wait (%p8047_p11), [#allocation5], 18432   ;;  %p8048_p12 = pmov %p8045_p3 }
  0x87   : > { %p8049_p13 = pmov %p8045_p3 }
  0x88   : > { %7588 = vsyncadd (%p8048_p12), [#allocation5], 4294948864 }
  0x89   : > { %7590 = dma.done.wait (%p8049_p13), [#allocation8], 6656   ;;  %p8050_p5 = pmov %p8045_p3 }
  0x8a   : > { %v388_v0 = vld [vmem:[#allocation2] sm:$0xff]  ;;  %v389_v2 = vld [vmem:[#allocation2 + $0x8] sm:$0xff]  ;;  %p8051_p0 = pmov %p8045_p3  ;;  %p358_p1 = scmp.lt.s32.totalorder %s7664_s30, 1 }
  0x8b   : > { %7592 = vsyncadd (%p8050_p5), [#allocation8], 4294960640  ;;  %v392_v1 = vld [vmem:[#allocation2 + $0x20] sm:$0xff]  ;;  %v393_v4 = vld [vmem:[#allocation2 + $0x28] sm:$0xff] }
  0x8c   : > { %v6248_v3 = vcombine.high %v388_v0, %v392_v1  ;;  %v6247_v5 = vcombine.low %v388_v0, %v392_v1  ;;  %v396_v6 = vld [vmem:[#allocation2 + $0x40] sm:$0xff]  ;;  %v6250_v8 = vcombine.high %v389_v2, %v393_v4  ;;  %v6249_v9 = vcombine.low %v389_v2, %v393_v4  ;;  %v397_v11 = vld [vmem:[#allocation2 + $0x48] sm:$0xff]  ;;  %s376_s9 = scalar_select %p8051_p0, 1, 0 }
  0x8d   : > { %v400_v7 = vld [vmem:[#allocation2 + $0x60] sm:$0xff]  ;;  %v401_v12 = vld [vmem:[#allocation2 + $0x68] sm:$0xff]  ;;  %s8055_s30 = smov (!%p358_p1, %s7664_s30), 1 }
  0x8e   : > { %v6256_v10 = vcombine.high %v396_v6, %v400_v7  ;;  %v404_v13 = vld [vmem:[#allocation2 + $0x80] sm:$0xff]  ;;  %3530 = vmatprep.subr.bf16.mxu0 %v6248_v3  ;;  %v6258_v14 = vcombine.high %v397_v11, %v401_v12  ;;  %v405_v16 = vld [vmem:[#allocation2 + $0x88] sm:$0xff]  ;;  %3694 = vmatprep.subr.bf16.mxu1 %v6250_v8  ;;  %v6255_v18 = vcombine.low %v396_v6, %v400_v7  ;;  %v377_v43 = vstv %s376_s9  ;;  %s6236_s22 = sshll.u32 %s8055_s30, 3 }
  0x8f   : > { %v408_v15 = vld [vmem:[#allocation2 + $0xa0] sm:$0xff]  ;;  %v409_v17 = vld [vmem:[#allocation2 + $0xa8] sm:$0xff]  ;;  %3531 = vmatpush1.bf16.msra.mxu0 %v6247_v5  ;;  %3695 = vmatpush1.bf16.msra.mxu1 %v6249_v9  ;;  %v6257_v19 = vcombine.low %v397_v11, %v401_v12  ;;  %vm7810_vm0 = vcmp.eq.s32.totalorder %v377_v43, 1  ;;  %s361_s9 = scalar_lea.vmem %s8037_s7, %s6236_s22  ;;  %s365_s14 = scalar_lea.vmem %s8038_s8, %s6236_s22 }
  0x90   : > { %3532 = vmatprep.subr.bf16.mxu0 %v6256_v10  ;;  %v6264_v20 = vcombine.high %v404_v13, %v408_v15  ;;  %3696 = vmatprep.subr.bf16.mxu1 %v6258_v14  ;;  %v6266_v21 = vcombine.high %v405_v16, %v409_v17  ;;  %v412_v22 = vld [vmem:[#allocation2 + $0xc0] sm:$0xff]  ;;  %v413_v24 = vld [vmem:[#allocation2 + $0xc8] sm:$0xff]  ;;  %v6263_v26 = vcombine.low %v404_v13, %v408_v15 }
  0x91   : > { %v416_v23 = vld [vmem:[#allocation2 + $0xe0] sm:$0xff]  ;;  %v417_v25 = vld [vmem:[#allocation2 + $0xe8] sm:$0xff]  ;;  %v6265_v27 = vcombine.low %v405_v16, %v409_v17 }
  0x92   : > { %v6272_v28 = vcombine.high %v412_v22, %v416_v23  ;;  %v6274_v29 = vcombine.high %v413_v24, %v417_v25  ;;  %v420_v30 = vld [vmem:[#allocation2 + $0x100] sm:$0xff]  ;;  %v421_v32 = vld [vmem:[#allocation2 + $0x108] sm:$0xff]  ;;  %v6271_v34 = vcombine.low %v412_v22, %v416_v23  ;;  %v6273_v35 = vcombine.low %v413_v24, %v417_v25 }
  0x93   : > { %3533 = vmatpush1.bf16.msra.mxu0 %v6255_v18  ;;  %3697 = vmatpush1.bf16.msra.mxu1 %v6257_v19  ;;  %v424_v31 = vld [vmem:[#allocation2 + $0x120] sm:$0xff]  ;;  %v425_v33 = vld [vmem:[#allocation2 + $0x128] sm:$0xff] }
  0x94   : > { %3534 = vmatprep.subr.bf16.mxu0 %v6264_v20  ;;  %3698 = vmatprep.subr.bf16.mxu1 %v6266_v21  ;;  %v6280_v36 = vcombine.high %v420_v30, %v424_v31  ;;  %v6282_v37 = vcombine.high %v421_v32, %v425_v33  ;;  %v428_v38 = vld [vmem:[#allocation2 + $0x140] sm:$0xff]  ;;  %v429_v40 = vld [vmem:[#allocation2 + $0x148] sm:$0xff]  ;;  %v6279_v42 = vcombine.low %v420_v30, %v424_v31 }
  0x95   : > { %v432_v39 = vld [vmem:[#allocation2 + $0x160] sm:$0xff]  ;;  %v433_v41 = vld [vmem:[#allocation2 + $0x168] sm:$0xff]  ;;  %v6281_v44 = vcombine.low %v421_v32, %v425_v33 }
  0x96   : > { %v6288_v45 = vcombine.high %v428_v38, %v432_v39  ;;  %v6290_v46 = vcombine.high %v429_v40, %v433_v41  ;;  %v436_v47 = vld [vmem:[#allocation2 + $0x180] sm:$0xff]  ;;  %v437_v49 = vld [vmem:[#allocation2 + $0x188] sm:$0xff]  ;;  %v6287_v52 = vcombine.low %v428_v38, %v432_v39  ;;  %v6289_v53 = vcombine.low %v429_v40, %v433_v41 }
  0x97   : > { %3535 = vmatpush1.bf16.msra.mxu0 %v6263_v26  ;;  %3699 = vmatpush1.bf16.msra.mxu1 %v6265_v27  ;;  %v440_v48 = vld [vmem:[#allocation2 + $0x1a0] sm:$0xff]  ;;  %v441_v50 = vld [vmem:[#allocation2 + $0x1a8] sm:$0xff] }
  0x98   : > { %3536 = vmatprep.subr.bf16.mxu0 %v6272_v28  ;;  %3700 = vmatprep.subr.bf16.mxu1 %v6274_v29  ;;  %v6296_v54 = vcombine.high %v436_v47, %v440_v48  ;;  %v368_v55 = vld [vmem:[%s8030_s0] sm:$0xff]  ;;  %v6298_v57 = vcombine.high %v437_v49, %v441_v50  ;;  %v445_v61 = vld [vmem:[#allocation2 + $0x1c8] sm:$0xff]  ;;  %v6295_v0 = vcombine.low %v436_v47, %v440_v48 }
  0x99   : > { %v372_v56 = vld [vmem:[%s8031_s1] sm:$0xff]  ;;  %v449_v62 = vld [vmem:[#allocation2 + $0x1e8] sm:$0xff]  ;;  %v6297_v1 = vcombine.low %v437_v49, %v441_v50 }
  0x9a   : > { %v444_v58 = vld [vmem:[#allocation2 + $0x1c0] sm:$0xff]  ;;  %v7822_v60 = vsel %vm7810_vm0, %v368_v55, %v372_v56  ;;  %v6306_v3 = vcombine.high %v445_v61, %v449_v62  ;;  %v453_v6 = vld [vmem:[#allocation2 + $0x208] sm:$0xff]  ;;  %v6305_v9 = vcombine.low %v445_v61, %v449_v62 }
  0x9b   : > { %3537 = vmatpush1.bf16.msra.mxu0 %v6271_v34  ;;  %3701 = vmatpush1.bf16.msra.mxu1 %v6273_v35  ;;  %v448_v59 = vld [vmem:[#allocation2 + $0x1e0] sm:$0xff]  ;;  %v7826_v63 = vcombine.high %v7822_v60, %v7822_v60  ;;  %v457_v7 = vld [vmem:[#allocation2 + $0x228] sm:$0xff] }
  0x9c   : > { %3538 = vmatprep.subr.bf16.mxu0 %v6280_v36  ;;  %3702 = vmatprep.subr.bf16.mxu1 %v6282_v37  ;;  %v6304_v2 = vcombine.high %v444_v58, %v448_v59  ;;  %v452_v4 = vld [vmem:[#allocation2 + $0x200] sm:$0xff]  ;;  %v6303_v8 = vcombine.low %v444_v58, %v448_v59  ;;  %v6314_v11 = vcombine.high %v453_v6, %v457_v7  ;;  %v461_v14 = vld [vmem:[#allocation2 + $0x248] sm:$0xff] }
  0x9d   : > { %v456_v5 = vld [vmem:[#allocation2 + $0x220] sm:$0xff]  ;;  %3562 = vmatprep.mubr.bf16.mxu0 %v7826_v63  ;;  %3726 = vmatprep.mubr.bf16.mxu1 %v7826_v63  ;;  %v465_v15 = vld [vmem:[#allocation2 + $0x268] sm:$0xff]  ;;  %v6313_v17 = vcombine.low %v453_v6, %v457_v7 }
  0x9e   : > { %v6312_v10 = vcombine.high %v452_v4, %v456_v5  ;;  %v460_v12 = vld [vmem:[#allocation2 + $0x240] sm:$0xff]  ;;  %v6311_v16 = vcombine.low %v452_v4, %v456_v5  ;;  %v6322_v19 = vcombine.high %v461_v14, %v465_v15  ;;  %v469_v22 = vld [vmem:[#allocation2 + $0x288] sm:$0xff]  ;;  %v6321_v25 = vcombine.low %v461_v14, %v465_v15 }
  0x9f   : > { %3539 = vmatpush1.bf16.msra.mxu0 %v6279_v42  ;;  %3703 = vmatpush1.bf16.msra.mxu1 %v6281_v44  ;;  %v464_v13 = vld [vmem:[#allocation2 + $0x260] sm:$0xff]  ;;  %v473_v23 = vld [vmem:[#allocation2 + $0x2a8] sm:$0xff] }
  0xa0   : > { %3540 = vmatprep.subr.bf16.mxu0 %v6288_v45  ;;  %3704 = vmatprep.subr.bf16.mxu1 %v6290_v46  ;;  %v6320_v18 = vcombine.high %v460_v12, %v464_v13  ;;  %v468_v20 = vld [vmem:[#allocation2 + $0x280] sm:$0xff]  ;;  %v6319_v24 = vcombine.low %v460_v12, %v464_v13  ;;  %v6330_v27 = vcombine.high %v469_v22, %v473_v23  ;;  %v477_v30 = vld [vmem:[#allocation2 + $0x2c8] sm:$0xff] }
  0xa1   : > { %v472_v21 = vld [vmem:[#allocation2 + $0x2a0] sm:$0xff]  ;;  %v481_v31 = vld [vmem:[#allocation2 + $0x2e8] sm:$0xff]  ;;  %v6329_v33 = vcombine.low %v469_v22, %v473_v23 }
  0xa2   : > { %v6328_v26 = vcombine.high %v468_v20, %v472_v21  ;;  %v476_v28 = vld [vmem:[#allocation2 + $0x2c0] sm:$0xff]  ;;  %v6327_v32 = vcombine.low %v468_v20, %v472_v21  ;;  %v6338_v35 = vcombine.high %v477_v30, %v481_v31  ;;  %v485_v38 = vld [vmem:[#allocation2 + $0x308] sm:$0xff]  ;;  %v6337_v41 = vcombine.low %v477_v30, %v481_v31 }
  0xa3   : > { %3541 = vmatpush1.bf16.msra.mxu0 %v6287_v52  ;;  %3705 = vmatpush1.bf16.msra.mxu1 %v6289_v53  ;;  %v480_v29 = vld [vmem:[#allocation2 + $0x2e0] sm:$0xff]  ;;  %v489_v39 = vld [vmem:[#allocation2 + $0x328] sm:$0xff] }
  0xa4   : > { %3542 = vmatprep.subr.bf16.mxu0 %v6296_v54  ;;  %3706 = vmatprep.subr.bf16.mxu1 %v6298_v57  ;;  %v6336_v34 = vcombine.high %v476_v28, %v480_v29  ;;  %v484_v36 = vld [vmem:[#allocation2 + $0x300] sm:$0xff]  ;;  %v6335_v40 = vcombine.low %v476_v28, %v480_v29  ;;  %v6346_v43 = vcombine.high %v485_v38, %v489_v39  ;;  %v493_v46 = vld [vmem:[#allocation2 + $0x348] sm:$0xff] }
  0xa5   : > { %v488_v37 = vld [vmem:[#allocation2 + $0x320] sm:$0xff]  ;;  %v497_v47 = vld [vmem:[#allocation2 + $0x368] sm:$0xff]  ;;  %v6345_v49 = vcombine.low %v485_v38, %v489_v39 }
  0xa6   : > { %v6344_v42 = vcombine.high %v484_v36, %v488_v37  ;;  %v492_v44 = vld [vmem:[#allocation2 + $0x340] sm:$0xff]  ;;  %v6343_v48 = vcombine.low %v484_v36, %v488_v37  ;;  %v6354_v52 = vcombine.high %v493_v46, %v497_v47  ;;  %v501_v55 = vld [vmem:[#allocation2 + $0x388] sm:$0xff]  ;;  %v6353_v58 = vcombine.low %v493_v46, %v497_v47 }
  0xa7   : > { %3543 = vmatpush1.bf16.msra.mxu0 %v6295_v0  ;;  %3707 = vmatpush1.bf16.msra.mxu1 %v6297_v1  ;;  %v496_v45 = vld [vmem:[#allocation2 + $0x360] sm:$0xff]  ;;  %v505_v56 = vld [vmem:[#allocation2 + $0x3a8] sm:$0xff] }
  0xa8   : > { %3544 = vmatprep.subr.bf16.mxu0 %v6304_v2  ;;  %3708 = vmatprep.subr.bf16.mxu1 %v6306_v3  ;;  %v6352_v50 = vcombine.high %v492_v44, %v496_v45  ;;  %v500_v53 = vld [vmem:[#allocation2 + $0x380] sm:$0xff]  ;;  %v6351_v57 = vcombine.low %v492_v44, %v496_v45  ;;  %v6362_v61 = vcombine.high %v501_v55, %v505_v56  ;;  %v509_v1 = vld [vmem:[#allocation2 + $0x3c8] sm:$0xff] }
  0xa9   : > { %v504_v54 = vld [vmem:[#allocation2 + $0x3a0] sm:$0xff]  ;;  %v513_v2 = vld [vmem:[#allocation2 + $0x3e8] sm:$0xff]  ;;  %v6361_v4 = vcombine.low %v501_v55, %v505_v56 }
  0xaa   : > { %v6360_v59 = vcombine.high %v500_v53, %v504_v54  ;;  %v508_v62 = vld [vmem:[#allocation2 + $0x3c0] sm:$0xff]  ;;  %v6359_v3 = vcombine.low %v500_v53, %v504_v54  ;;  %v6370_v6 = vcombine.high %v509_v1, %v513_v2  ;;  %v369_v12 = vld [vmem:[%s8030_s0 + $0x8] sm:$0xff]  ;;  %v6369_v14 = vcombine.low %v509_v1, %v513_v2 }
  0xab   : > { %3545 = vmatpush1.bf16.msra.mxu0 %v6303_v8  ;;  %3709 = vmatpush1.bf16.msra.mxu1 %v6305_v9  ;;  %v512_v0 = vld [vmem:[#allocation2 + $0x3e0] sm:$0xff]  ;;  %v517_v9 = vld [vmem:[#allocation2 + $0x408] sm:$0xff] }
  0xac   : > { %3546 = vmatprep.subr.bf16.mxu0 %v6312_v10  ;;  %3710 = vmatprep.subr.bf16.mxu1 %v6314_v11  ;;  %v6368_v5 = vcombine.high %v508_v62, %v512_v0  ;;  %v516_v7 = vld [vmem:[#allocation2 + $0x400] sm:$0xff]  ;;  %v521_v10 = vld [vmem:[#allocation2 + $0x428] sm:$0xff]  ;;  %v6367_v11 = vcombine.low %v508_v62, %v512_v0 }
  0xad   : > { %v520_v8 = vld [vmem:[#allocation2 + $0x420] sm:$0xff]  ;;  %v373_v13 = vld [vmem:[%s8031_s1 + $0x8] sm:$0xff] }
  0xae   : > { %v6376_v15 = vcombine.high %v516_v7, %v520_v8  ;;  %v525_v20 = vld [vmem:[#allocation2 + $0x448] sm:$0xff]  ;;  %v7842_v22 = vsel %vm7810_vm0, %v369_v12, %v373_v13  ;;  %v6375_v23 = vcombine.low %v516_v7, %v520_v8  ;;  %v536_v28 = vld [vmem:[#allocation2 + $0x4a0] sm:$0xff] }
  0xaf   : > { %3547 = vmatpush1.bf16.msra.mxu0 %v6311_v16  ;;  %3711 = vmatpush1.bf16.msra.mxu1 %v6313_v17  ;;  %v6378_v16 = vcombine.high %v517_v9, %v521_v10  ;;  %v524_v17 = vld [vmem:[#allocation2 + $0x440] sm:$0xff]  ;;  %v529_v21 = vld [vmem:[#allocation2 + $0x468] sm:$0xff] }
  0xb0   : > { %3548 = vmatprep.subr.bf16.mxu0 %v6320_v18  ;;  %3712 = vmatprep.subr.bf16.mxu1 %v6322_v19  ;;  %v528_v18 = vld [vmem:[#allocation2 + $0x460] sm:$0xff]  ;;  %v7838_v19 = vcombine.low %v7822_v60, %v7822_v60  ;;  %v533_v29 = vld [vmem:[#allocation2 + $0x488] sm:$0xff]  ;;  %v7846_v60 = vcombine.high %v7842_v22, %v7842_v22 }
  0xb1   : > { %v537_v30 = vld [vmem:[#allocation2 + $0x4a8] sm:$0xff]  ;;  %v6383_v31 = vcombine.low %v524_v17, %v528_v18  ;;  %v580_v13 = vld [vmem:[#allocation2 + $0x600] sm:$0xff] }
  0xb2   : > { %v541_v36 = vld [vmem:[#allocation2 + $0x4c8] sm:$0xff]  ;;  %v6394_v37 = vcombine.high %v533_v29, %v537_v30 }
  0xb3   : > { %3549 = vmatpush1.bf16.msra.mxu0 %v6319_v24  ;;  %3713 = vmatpush1.bf16.msra.mxu1 %v6321_v25  ;;  %v6377_v24 = vcombine.low %v517_v9, %v521_v10  ;;  %v6384_v25 = vcombine.high %v524_v17, %v528_v18  ;;  %v545_v38 = vld [vmem:[#allocation2 + $0x4e8] sm:$0xff] }
  0xb4   : > { %3550 = vmatprep.subr.bf16.mxu0 %v6328_v26  ;;  %3714 = vmatprep.subr.bf16.mxu1 %v6330_v27  ;;  %v6386_v26 = vcombine.high %v525_v20, %v529_v21  ;;  %v532_v27 = vld [vmem:[#allocation2 + $0x480] sm:$0xff]  ;;  %v549_v44 = vld [vmem:[#allocation2 + $0x508] sm:$0xff]  ;;  %v6402_v45 = vcombine.high %v541_v36, %v545_v38 }
  0xb5   : > { %v6391_v39 = vcombine.low %v532_v27, %v536_v28  ;;  %v553_v46 = vld [vmem:[#allocation2 + $0x528] sm:$0xff] }
  0xb6   : > { %v557_v53 = vld [vmem:[#allocation2 + $0x548] sm:$0xff]  ;;  %v6410_v54 = vcombine.high %v549_v44, %v553_v46 }
  0xb7   : > { %3551 = vmatpush1.bf16.msra.mxu0 %v6327_v32  ;;  %3715 = vmatpush1.bf16.msra.mxu1 %v6329_v33  ;;  %v6385_v32 = vcombine.low %v525_v20, %v529_v21  ;;  %v6392_v33 = vcombine.high %v532_v27, %v536_v28  ;;  %v561_v55 = vld [vmem:[#allocation2 + $0x568] sm:$0xff] }
  0xb8   : > { %3552 = vmatprep.subr.bf16.mxu0 %v6336_v34  ;;  %3716 = vmatprep.subr.bf16.mxu1 %v6338_v35  ;;  %v540_v34 = vld [vmem:[#allocation2 + $0x4c0] sm:$0xff]  ;;  %v565_v62 = vld [vmem:[#allocation2 + $0x588] sm:$0xff]  ;;  %v6418_v0 = vcombine.high %v557_v53, %v561_v55 }
  0xb9   : > { %v544_v35 = vld [vmem:[#allocation2 + $0x4e0] sm:$0xff]  ;;  %v569_v1 = vld [vmem:[#allocation2 + $0x5a8] sm:$0xff] }
  0xba   : > { %v6399_v47 = vcombine.low %v540_v34, %v544_v35  ;;  %v573_v7 = vld [vmem:[#allocation2 + $0x5c8] sm:$0xff]  ;;  %v6426_v8 = vcombine.high %v565_v62, %v569_v1 }
  0xbb   : > { %3553 = vmatpush1.bf16.msra.mxu0 %v6335_v40  ;;  %3717 = vmatpush1.bf16.msra.mxu1 %v6337_v41  ;;  %v6393_v40 = vcombine.low %v533_v29, %v537_v30  ;;  %v6400_v41 = vcombine.high %v540_v34, %v544_v35  ;;  %v577_v9 = vld [vmem:[#allocation2 + $0x5e8] sm:$0xff] }
  0xbc   : > { %3554 = vmatprep.subr.bf16.mxu0 %v6344_v42  ;;  %3718 = vmatprep.subr.bf16.mxu1 %v6346_v43  ;;  %v548_v42 = vld [vmem:[#allocation2 + $0x500] sm:$0xff]  ;;  %v585_v17 = vld [vmem:[#allocation2 + $0x628] sm:$0xff]  ;;  %v6433_v20 = vcombine.low %v573_v7, %v577_v9 }
  0xbd   : > { %v552_v43 = vld [vmem:[#allocation2 + $0x520] sm:$0xff]  ;;  %v593_v27 = vld [vmem:[#allocation2 + $0x668] sm:$0xff] }
  0xbe   : > { %v6407_v56 = vcombine.low %v548_v42, %v552_v43  ;;  %v601_v35 = vld [vmem:[#allocation2 + $0x6a8] sm:$0xff] }
  0xbf   : > { %3555 = vmatpush1.bf16.msra.mxu0 %v6343_v48  ;;  %3719 = vmatpush1.bf16.msra.mxu1 %v6345_v49  ;;  %v6401_v48 = vcombine.low %v541_v36, %v545_v38  ;;  %v6408_v49 = vcombine.high %v548_v42, %v552_v43  ;;  %v609_v43 = vld [vmem:[#allocation2 + $0x6e8] sm:$0xff] }
  0xc0   : > { %3556 = vmatprep.subr.bf16.mxu0 %v6352_v50  ;;  %3720 = vmatprep.subr.bf16.mxu1 %v6354_v52  ;;  %v556_v50 = vld [vmem:[#allocation2 + $0x540] sm:$0xff]  ;;  %v793_v51 = vld [vmem:[#allocation2 + $0xca8] sm:$0xff] }
  0xc1   : > { %v560_v52 = vld [vmem:[#allocation2 + $0x560] sm:$0xff] }
  0xc2   : > { %v6415_v2 = vcombine.low %v556_v50, %v560_v52 }
  0xc3   : > { %3557 = vmatpush1.bf16.msra.mxu0 %v6351_v57  ;;  %3721 = vmatpush1.bf16.msra.mxu1 %v6353_v58  ;;  %v6409_v57 = vcombine.low %v549_v44, %v553_v46  ;;  %v6416_v58 = vcombine.high %v556_v50, %v560_v52  ;;  %v617_v52 = vld [vmem:[#allocation2 + $0x728] sm:$0xff] }
  0xc4   : > { %3558 = vmatprep.subr.bf16.mxu0 %v6360_v59  ;;  %3722 = vmatprep.subr.bf16.mxu1 %v6362_v61  ;;  %v564_v59 = vld [vmem:[#allocation2 + $0x580] sm:$0xff] }
  0xc5   : > { %v568_v61 = vld [vmem:[#allocation2 + $0x5a0] sm:$0xff] }
  0xc6   : > { %v6423_v10 = vcombine.low %v564_v59, %v568_v61 }
  0xc7   : > { %3559 = vmatpush1.bf16.msra.mxu0 %v6359_v3  ;;  %3723 = vmatpush1.bf16.msra.mxu1 %v6361_v4  ;;  %v6417_v3 = vcombine.low %v557_v53, %v561_v55  ;;  %v6424_v4 = vcombine.high %v564_v59, %v568_v61  ;;  %v625_v61 = vld [vmem:[#allocation2 + $0x768] sm:$0xff] }
  0xc8   : > { %3560 = vmatprep.subr.bf16.mxu0 %v6368_v5  ;;  %3724 = vmatprep.subr.bf16.mxu1 %v6370_v6  ;;  %v572_v5 = vld [vmem:[#allocation2 + $0x5c0] sm:$0xff] }
  0xc9   : > { %v576_v6 = vld [vmem:[#allocation2 + $0x5e0] sm:$0xff] }
  0xca   : > { %v6432_v12 = vcombine.high %v572_v5, %v576_v6  ;;  %v6431_v18 = vcombine.low %v572_v5, %v576_v6  ;;  %v633_v6 = vld [vmem:[#allocation2 + $0x7a8] sm:$0xff] }
  0xcb   : > { %3561 = vmatpush1.bf16.msra.mxu0 %v6367_v11  ;;  %3725 = vmatpush1.bf16.msra.mxu1 %v6369_v14  ;;  %v6425_v11 = vcombine.low %v565_v62, %v569_v1  ;;  %v584_v14 = vld [vmem:[#allocation2 + $0x620] sm:$0xff] }
  0xcc   : > { %3571 = vmatprep.subr.bf16.mxu0 %v6376_v15  ;;  %3735 = vmatprep.subr.bf16.mxu1 %v6378_v16  ;;  %v581_v15 = vld [vmem:[#allocation2 + $0x608] sm:$0xff]  ;;  %v6434_v16 = vcombine.high %v573_v7, %v577_v9  ;;  %v6440_v21 = vcombine.high %v580_v13, %v584_v14  ;;  %v6439_v28 = vcombine.low %v580_v13, %v584_v14 }
  0xcd   : > { %v6441_v29 = vcombine.low %v581_v15, %v585_v17  ;;  %v641_v14 = vld [vmem:[#allocation2 + $0x7e8] sm:$0xff] }
  0xce   : > { %3563 = vmatmul.mubr.bf16.vlgmr.msra.gmra.mrb[0].mxu0 %v7838_v19  ;;  %3727 = vmatmul.mubr.bf16.vlgmr.msra.gmra.mrb[0].mxu1 %v7838_v19 }
  0xcf   : > { %3572 = vmatpush1.bf16.msra.mxu0 %v6375_v23  ;;  %3736 = vmatpush1.bf16.msra.mxu1 %v6377_v24  ;;  %v588_v23 = vld [vmem:[#allocation2 + $0x640] sm:$0xff] }
  0xd0   : > { %3573 = vmatprep.subr.bf16.mxu0 %v6384_v25  ;;  %3737 = vmatprep.subr.bf16.mxu1 %v6386_v26  ;;  %v592_v24 = vld [vmem:[#allocation2 + $0x660] sm:$0xff]  ;;  %v589_v25 = vld [vmem:[#allocation2 + $0x648] sm:$0xff]  ;;  %v6442_v26 = vcombine.high %v581_v15, %v585_v17 }
  0xd1   : > { %3603 = vmatprep.mubr.bf16.mxu0 %v7846_v60  ;;  %3767 = vmatprep.mubr.bf16.mxu1 %v7846_v60  ;;  %v6448_v30 = vcombine.high %v588_v23, %v592_v24  ;;  %v6450_v34 = vcombine.high %v589_v25, %v593_v27  ;;  %v6447_v36 = vcombine.low %v588_v23, %v592_v24  ;;  %v649_v23 = vld [vmem:[#allocation2 + $0x828] sm:$0xff] }
  0xd3   : > { %3574 = vmatpush1.bf16.msra.mxu0 %v6383_v31  ;;  %3738 = vmatpush1.bf16.msra.mxu1 %v6385_v32  ;;  %v596_v31 = vld [vmem:[#allocation2 + $0x680] sm:$0xff] }
  0xd4   : > { %3575 = vmatprep.subr.bf16.mxu0 %v6392_v33  ;;  %3739 = vmatprep.subr.bf16.mxu1 %v6394_v37  ;;  %v600_v32 = vld [vmem:[#allocation2 + $0x6a0] sm:$0xff]  ;;  %v597_v33 = vld [vmem:[#allocation2 + $0x688] sm:$0xff]  ;;  %v6449_v37 = vcombine.low %v589_v25, %v593_v27  ;;  %v370_v25 = vld [vmem:[%s8030_s0 + $0x10] sm:$0xff] }
  0xd5   : > { %v6456_v38 = vcombine.high %v596_v31, %v600_v32  ;;  %v6458_v42 = vcombine.high %v597_v33, %v601_v35  ;;  %v6455_v44 = vcombine.low %v596_v31, %v600_v32  ;;  %v656_v32 = vld [vmem:[#allocation2 + $0x860] sm:$0xff] }
  0xd7   : > { %3576 = vmatpush1.bf16.msra.mxu0 %v6391_v39  ;;  %3740 = vmatpush1.bf16.msra.mxu1 %v6393_v40  ;;  %v604_v39 = vld [vmem:[#allocation2 + $0x6c0] sm:$0xff] }
  0xd8   : > { %3577 = vmatprep.subr.bf16.mxu0 %v6400_v41  ;;  %3741 = vmatprep.subr.bf16.mxu1 %v6402_v45  ;;  %v608_v40 = vld [vmem:[#allocation2 + $0x6e0] sm:$0xff]  ;;  %v605_v41 = vld [vmem:[#allocation2 + $0x6c8] sm:$0xff]  ;;  %v6457_v45 = vcombine.low %v597_v33, %v601_v35  ;;  %v7860_v33 = vcombine.low %v7842_v22, %v7842_v22 }
  0xd9   : > { %v6464_v46 = vcombine.high %v604_v39, %v608_v40  ;;  %v6466_v50 = vcombine.high %v605_v41, %v609_v43  ;;  %v6463_v53 = vcombine.low %v604_v39, %v608_v40  ;;  %v657_v35 = vld [vmem:[#allocation2 + $0x868] sm:$0xff]  ;;  %v664_v39 = vld [vmem:[#allocation2 + $0x8a0] sm:$0xff] }
  0xdb   : > { %3578 = vmatpush1.bf16.msra.mxu0 %v6399_v47  ;;  %3742 = vmatpush1.bf16.msra.mxu1 %v6401_v48  ;;  %v612_v47 = vld [vmem:[#allocation2 + $0x700] sm:$0xff] }
  0xdc   : > { %3579 = vmatprep.subr.bf16.mxu0 %v6408_v49  ;;  %3743 = vmatprep.subr.bf16.mxu1 %v6410_v54  ;;  %v616_v48 = vld [vmem:[#allocation2 + $0x720] sm:$0xff]  ;;  %v613_v49 = vld [vmem:[#allocation2 + $0x708] sm:$0xff]  ;;  %v6465_v54 = vcombine.low %v605_v41, %v609_v43 }
  0xdd   : > { %v6472_v55 = vcombine.high %v612_v47, %v616_v48  ;;  %v6474_v59 = vcombine.high %v613_v49, %v617_v52  ;;  %v6471_v62 = vcombine.low %v612_v47, %v616_v48  ;;  %v665_v43 = vld [vmem:[#allocation2 + $0x8a8] sm:$0xff]  ;;  %v672_v47 = vld [vmem:[#allocation2 + $0x8e0] sm:$0xff] }
  0xdf   : > { %3580 = vmatpush1.bf16.msra.mxu0 %v6407_v56  ;;  %3744 = vmatpush1.bf16.msra.mxu1 %v6409_v57  ;;  %v620_v56 = vld [vmem:[#allocation2 + $0x740] sm:$0xff] }
  0xe0   : > { %3581 = vmatprep.subr.bf16.mxu0 %v6416_v58  ;;  %3745 = vmatprep.subr.bf16.mxu1 %v6418_v0  ;;  %v624_v57 = vld [vmem:[#allocation2 + $0x760] sm:$0xff]  ;;  %v621_v58 = vld [vmem:[#allocation2 + $0x748] sm:$0xff]  ;;  %v6473_v0 = vcombine.low %v613_v49, %v617_v52 }
  0xe1   : > { %v6480_v1 = vcombine.high %v620_v56, %v624_v57  ;;  %v6482_v5 = vcombine.high %v621_v58, %v625_v61  ;;  %v6479_v7 = vcombine.low %v620_v56, %v624_v57  ;;  %v673_v52 = vld [vmem:[#allocation2 + $0x8e8] sm:$0xff]  ;;  %v680_v56 = vld [vmem:[#allocation2 + $0x920] sm:$0xff] }
  0xe3   : > { %3582 = vmatpush1.bf16.msra.mxu0 %v6415_v2  ;;  %3746 = vmatpush1.bf16.msra.mxu1 %v6417_v3  ;;  %v628_v2 = vld [vmem:[#allocation2 + $0x780] sm:$0xff] }
  0xe4   : > { %3583 = vmatprep.subr.bf16.mxu0 %v6424_v4  ;;  %3747 = vmatprep.subr.bf16.mxu1 %v6426_v8  ;;  %v632_v3 = vld [vmem:[#allocation2 + $0x7a0] sm:$0xff]  ;;  %v629_v4 = vld [vmem:[#allocation2 + $0x788] sm:$0xff]  ;;  %v6481_v8 = vcombine.low %v621_v58, %v625_v61 }
  0xe5   : > { %v6488_v9 = vcombine.high %v628_v2, %v632_v3  ;;  %v6490_v13 = vcombine.high %v629_v4, %v633_v6  ;;  %v6487_v15 = vcombine.low %v628_v2, %v632_v3  ;;  %v6489_v17 = vcombine.low %v629_v4, %v633_v6  ;;  %v681_v61 = vld [vmem:[#allocation2 + $0x928] sm:$0xff]  ;;  %v688_v2 = vld [vmem:[#allocation2 + $0x960] sm:$0xff] }
  0xe6   : > { %v689_v6 = vld [vmem:[#allocation2 + $0x968] sm:$0xff] }
  0xe7   : > { %3584 = vmatpush1.bf16.msra.mxu0 %v6423_v10  ;;  %3748 = vmatpush1.bf16.msra.mxu1 %v6425_v11  ;;  %v636_v10 = vld [vmem:[#allocation2 + $0x7c0] sm:$0xff] }
  0xe8   : > { %3585 = vmatprep.subr.bf16.mxu0 %v6432_v12  ;;  %3749 = vmatprep.subr.bf16.mxu1 %v6434_v16  ;;  %v640_v11 = vld [vmem:[#allocation2 + $0x7e0] sm:$0xff]  ;;  %v637_v12 = vld [vmem:[#allocation2 + $0x7c8] sm:$0xff] }
  0xe9   : > { %v644_v16 = vld [vmem:[#allocation2 + $0x800] sm:$0xff]  ;;  %v6498_v24 = vcombine.high %v637_v12, %v641_v14  ;;  %v6495_v27 = vcombine.low %v636_v10, %v640_v11 }
  0xeb   : > { %3586 = vmatpush1.bf16.msra.mxu0 %v6431_v18  ;;  %3750 = vmatpush1.bf16.msra.mxu1 %v6433_v20  ;;  %v6496_v18 = vcombine.high %v636_v10, %v640_v11  ;;  %v648_v20 = vld [vmem:[#allocation2 + $0x820] sm:$0xff] }
  0xec   : > { %3587 = vmatprep.subr.bf16.mxu0 %v6440_v21  ;;  %3751 = vmatprep.subr.bf16.mxu1 %v6442_v26  ;;  %v645_v21 = vld [vmem:[#allocation2 + $0x808] sm:$0xff]  ;;  %v374_v26 = vld [vmem:[%s8031_s1 + $0x10] sm:$0xff]  ;;  %v696_v10 = vld [vmem:[#allocation2 + $0x9a0] sm:$0xff] }
  0xed   : > { %v6506_v31 = vcombine.high %v645_v21, %v649_v23  ;;  %v6505_v40 = vcombine.low %v645_v21, %v649_v23  ;;  %v701_v23 = vld [vmem:[#allocation2 + $0x9c8] sm:$0xff] }
  0xef   : > { %3588 = vmatpush1.bf16.msra.mxu0 %v6439_v28  ;;  %3752 = vmatpush1.bf16.msra.mxu1 %v6441_v29  ;;  %v6497_v28 = vcombine.low %v637_v12, %v641_v14  ;;  %v6504_v29 = vcombine.high %v644_v16, %v648_v20  ;;  %v697_v14 = vld [vmem:[#allocation2 + $0x9a8] sm:$0xff] }
  0xf0   : > { %3589 = vmatprep.subr.bf16.mxu0 %v6448_v30  ;;  %3753 = vmatprep.subr.bf16.mxu1 %v6450_v34  ;;  %v652_v30 = vld [vmem:[#allocation2 + $0x840] sm:$0xff]  ;;  %v653_v34 = vld [vmem:[#allocation2 + $0x848] sm:$0xff] }
  0xf1   : > { %v6512_v41 = vcombine.high %v652_v30, %v656_v32  ;;  %v6513_v48 = vcombine.low %v653_v34, %v657_v35 }
  0xf3   : > { %3590 = vmatpush1.bf16.msra.mxu0 %v6447_v36  ;;  %3754 = vmatpush1.bf16.msra.mxu1 %v6449_v37  ;;  %v7864_v36 = vsel %vm7810_vm0, %v370_v25, %v374_v26  ;;  %v6503_v37 = vcombine.low %v644_v16, %v648_v20 }
  0xf4   : > { %3591 = vmatprep.subr.bf16.mxu0 %v6456_v38  ;;  %3755 = vmatprep.subr.bf16.mxu1 %v6458_v42  ;;  %v660_v38 = vld [vmem:[#allocation2 + $0x880] sm:$0xff]  ;;  %v661_v42 = vld [vmem:[#allocation2 + $0x888] sm:$0xff]  ;;  %v7868_v22 = vcombine.high %v7864_v36, %v7864_v36 }
  0xf5   : > { %v6520_v49 = vcombine.high %v660_v38, %v664_v39  ;;  %v6521_v57 = vcombine.low %v661_v42, %v665_v43 }
  0xf7   : > { %3592 = vmatpush1.bf16.msra.mxu0 %v6455_v44  ;;  %3756 = vmatpush1.bf16.msra.mxu1 %v6457_v45  ;;  %v6514_v44 = vcombine.high %v653_v34, %v657_v35  ;;  %v6511_v45 = vcombine.low %v652_v30, %v656_v32  ;;  %v713_v32 = vld [vmem:[#allocation2 + $0xa28] sm:$0xff] }
  0xf8   : > { %3593 = vmatprep.subr.bf16.mxu0 %v6464_v46  ;;  %3757 = vmatprep.subr.bf16.mxu1 %v6466_v50  ;;  %v668_v46 = vld [vmem:[#allocation2 + $0x8c0] sm:$0xff]  ;;  %v669_v50 = vld [vmem:[#allocation2 + $0x8c8] sm:$0xff] }
  0xf9   : > { %v6528_v58 = vcombine.high %v668_v46, %v672_v47  ;;  %v6529_v3 = vcombine.low %v669_v50, %v673_v52 }
  0xfb   : > { %3594 = vmatpush1.bf16.msra.mxu0 %v6463_v53  ;;  %3758 = vmatpush1.bf16.msra.mxu1 %v6465_v54  ;;  %v6522_v53 = vcombine.high %v661_v42, %v665_v43  ;;  %v6519_v54 = vcombine.low %v660_v38, %v664_v39  ;;  %v720_v38 = vld [vmem:[#allocation2 + $0xa60] sm:$0xff]  ;;  %v721_v42 = vld [vmem:[#allocation2 + $0xa68] sm:$0xff] }
  0xfc   : > { %3595 = vmatprep.subr.bf16.mxu0 %v6472_v55  ;;  %3759 = vmatprep.subr.bf16.mxu1 %v6474_v59  ;;  %v676_v55 = vld [vmem:[#allocation2 + $0x900] sm:$0xff]  ;;  %v677_v59 = vld [vmem:[#allocation2 + $0x908] sm:$0xff] }
  0xfd   : > { %v6536_v4 = vcombine.high %v676_v55, %v680_v56  ;;  %v6537_v11 = vcombine.low %v677_v59, %v681_v61 }
  0xff   : > { %3596 = vmatpush1.bf16.msra.mxu0 %v6471_v62  ;;  %3760 = vmatpush1.bf16.msra.mxu1 %v6473_v0  ;;  %v6530_v62 = vcombine.high %v669_v50, %v673_v52  ;;  %v6527_v0 = vcombine.low %v668_v46, %v672_v47  ;;  %v728_v46 = vld [vmem:[#allocation2 + $0xaa0] sm:$0xff]  ;;  %v729_v50 = vld [vmem:[#allocation2 + $0xaa8] sm:$0xff] }
 0x100   : > { %3597 = vmatprep.subr.bf16.mxu0 %v6480_v1  ;;  %3761 = vmatprep.subr.bf16.mxu1 %v6482_v5  ;;  %v684_v1 = vld [vmem:[#allocation2 + $0x940] sm:$0xff]  ;;  %v685_v5 = vld [vmem:[#allocation2 + $0x948] sm:$0xff] }
 0x101   : > { %v6544_v12 = vcombine.high %v684_v1, %v688_v2  ;;  %v6543_v16 = vcombine.low %v684_v1, %v688_v2  ;;  %v6545_v20 = vcombine.low %v685_v5, %v689_v6  ;;  %v744_v1 = vld [vmem:[#allocation2 + $0xb20] sm:$0xff] }
 0x103   : > { %3598 = vmatpush1.bf16.msra.mxu0 %v6479_v7  ;;  %3762 = vmatpush1.bf16.msra.mxu1 %v6481_v8  ;;  %v6538_v7 = vcombine.high %v677_v59, %v681_v61  ;;  %v6535_v8 = vcombine.low %v676_v55, %v680_v56  ;;  %v736_v55 = vld [vmem:[#allocation2 + $0xae0] sm:$0xff]  ;;  %v737_v59 = vld [vmem:[#allocation2 + $0xae8] sm:$0xff] }
 0x104   : > { %3599 = vmatprep.subr.bf16.mxu0 %v6488_v9  ;;  %3763 = vmatprep.subr.bf16.mxu1 %v6490_v13  ;;  %v692_v9 = vld [vmem:[#allocation2 + $0x980] sm:$0xff]  ;;  %v693_v13 = vld [vmem:[#allocation2 + $0x988] sm:$0xff] }
 0x105   : > { %v6552_v21 = vcombine.high %v692_v9, %v696_v10  ;;  %v6554_v25 = vcombine.high %v693_v13, %v697_v14  ;;  %v6551_v26 = vcombine.low %v692_v9, %v696_v10  ;;  %v752_v9 = vld [vmem:[#allocation2 + $0xb60] sm:$0xff] }
 0x107   : > { %3600 = vmatpush1.bf16.msra.mxu0 %v6487_v15  ;;  %3764 = vmatpush1.bf16.msra.mxu1 %v6489_v17  ;;  %v6546_v15 = vcombine.high %v685_v5, %v689_v6  ;;  %v700_v17 = vld [vmem:[#allocation2 + $0x9c0] sm:$0xff]  ;;  %v745_v5 = vld [vmem:[#allocation2 + $0xb28] sm:$0xff] }
 0x108   : > { %3601 = vmatprep.subr.bf16.mxu0 %v6496_v18  ;;  %3765 = vmatprep.subr.bf16.mxu1 %v6498_v24  ;;  %v704_v18 = vld [vmem:[#allocation2 + $0x9e0] sm:$0xff]  ;;  %v705_v24 = vld [vmem:[#allocation2 + $0x9e8] sm:$0xff] }
 0x109   : > { %v6560_v30 = vcombine.high %v700_v17, %v704_v18  ;;  %v6562_v34 = vcombine.high %v701_v23, %v705_v24  ;;  %v6559_v35 = vcombine.low %v700_v17, %v704_v18  ;;  %v6561_v39 = vcombine.low %v701_v23, %v705_v24  ;;  %v757_v23 = vld [vmem:[#allocation2 + $0xb88] sm:$0xff] }
 0x10a   : > { %v761_v24 = vld [vmem:[#allocation2 + $0xba8] sm:$0xff] }
 0x10b   : > { %3602 = vmatpush1.bf16.msra.mxu0 %v6495_v27  ;;  %3766 = vmatpush1.bf16.msra.mxu1 %v6497_v28  ;;  %v708_v27 = vld [vmem:[#allocation2 + $0xa00] sm:$0xff] }
 0x10c   : > { %3612 = vmatprep.subr.bf16.mxu0 %v6504_v29  ;;  %3776 = vmatprep.subr.bf16.mxu1 %v6506_v31  ;;  %v712_v28 = vld [vmem:[#allocation2 + $0xa20] sm:$0xff]  ;;  %v6553_v29 = vcombine.low %v693_v13, %v697_v14  ;;  %v709_v31 = vld [vmem:[#allocation2 + $0xa08] sm:$0xff] }
 0x10d   : > { %v6570_v43 = vcombine.high %v709_v31, %v713_v32  ;;  %v6569_v47 = vcombine.low %v709_v31, %v713_v32  ;;  %v753_v13 = vld [vmem:[#allocation2 + $0xb68] sm:$0xff] }
 0x10e   : > { %3604 = vmatmul.mubr.bf16.vlgmr.msra.gmra.mrb[0].mxu0 %v7860_v33  ;;  %3768 = vmatmul.mubr.bf16.vlgmr.msra.gmra.mrb[0].mxu1 %v7860_v33  ;;  %v765_v31 = vld [vmem:[#allocation2 + $0xbc8] sm:$0xff] }
 0x10f   : > { %3613 = vmatpush1.bf16.msra.mxu0 %v6503_v37  ;;  %3777 = vmatpush1.bf16.msra.mxu1 %v6505_v40  ;;  %v716_v37 = vld [vmem:[#allocation2 + $0xa40] sm:$0xff]  ;;  %v6568_v40 = vcombine.high %v708_v27, %v712_v28  ;;  %v769_v32 = vld [vmem:[#allocation2 + $0xbe8] sm:$0xff] }
 0x110   : > { %3614 = vmatprep.subr.bf16.mxu0 %v6512_v41  ;;  %3778 = vmatprep.subr.bf16.mxu1 %v6514_v44  ;;  %v717_v41 = vld [vmem:[#allocation2 + $0xa48] sm:$0xff]  ;;  %v6567_v44 = vcombine.low %v708_v27, %v712_v28  ;;  %v6618_v28 = vcombine.high %v757_v23, %v761_v24 }
 0x111   : > { %3644 = vmatprep.mubr.bf16.mxu0 %v7868_v22  ;;  %3808 = vmatprep.mubr.bf16.mxu1 %v7868_v22  ;;  %v6578_v52 = vcombine.high %v717_v41, %v721_v42  ;;  %v6577_v56 = vcombine.low %v717_v41, %v721_v42  ;;  %v773_v41 = vld [vmem:[#allocation2 + $0xc08] sm:$0xff] }
 0x112   : > { %v777_v42 = vld [vmem:[#allocation2 + $0xc28] sm:$0xff] }
 0x113   : > { %3615 = vmatpush1.bf16.msra.mxu0 %v6511_v45  ;;  %3779 = vmatpush1.bf16.msra.mxu1 %v6513_v48  ;;  %v724_v45 = vld [vmem:[#allocation2 + $0xa80] sm:$0xff]  ;;  %v6576_v48 = vcombine.high %v716_v37, %v720_v38 }
 0x114   : > { %3616 = vmatprep.subr.bf16.mxu0 %v6520_v49  ;;  %3780 = vmatprep.subr.bf16.mxu1 %v6522_v53  ;;  %v725_v49 = vld [vmem:[#allocation2 + $0xa88] sm:$0xff]  ;;  %v6575_v53 = vcombine.low %v716_v37, %v720_v38  ;;  %v6626_v38 = vcombine.high %v765_v31, %v769_v32 }
 0x115   : > { %v6586_v61 = vcombine.high %v725_v49, %v729_v50  ;;  %v6585_v2 = vcombine.low %v725_v49, %v729_v50  ;;  %v780_v49 = vld [vmem:[#allocation2 + $0xc40] sm:$0xff] }
 0x116   : > { %v784_v50 = vld [vmem:[#allocation2 + $0xc60] sm:$0xff] }
 0x117   : > { %3617 = vmatpush1.bf16.msra.mxu0 %v6519_v54  ;;  %3781 = vmatpush1.bf16.msra.mxu1 %v6521_v57  ;;  %v732_v54 = vld [vmem:[#allocation2 + $0xac0] sm:$0xff]  ;;  %v6584_v57 = vcombine.high %v724_v45, %v728_v46 }
 0x118   : > { %3618 = vmatprep.subr.bf16.mxu0 %v6528_v58  ;;  %3782 = vmatprep.subr.bf16.mxu1 %v6530_v62  ;;  %v733_v58 = vld [vmem:[#allocation2 + $0xac8] sm:$0xff]  ;;  %v6583_v62 = vcombine.low %v724_v45, %v728_v46  ;;  %v375_v45 = vld [vmem:[%s8031_s1 + $0x18] sm:$0xff]  ;;  %v6625_v46 = vcombine.low %v765_v31, %v769_v32  ;;  %v820_v31 = vld [vmem:[#allocation2 + $0xd80] sm:$0xff] }
 0x119   : > { %v6594_v6 = vcombine.high %v733_v58, %v737_v59  ;;  %v6593_v10 = vcombine.low %v733_v58, %v737_v59  ;;  %v6640_v58 = vcombine.high %v780_v49, %v784_v50  ;;  %v824_v32 = vld [vmem:[#allocation2 + $0xda0] sm:$0xff] }
 0x11b   : > { %3619 = vmatpush1.bf16.msra.mxu0 %v6527_v0  ;;  %3783 = vmatpush1.bf16.msra.mxu1 %v6529_v3  ;;  %v740_v0 = vld [vmem:[#allocation2 + $0xb00] sm:$0xff]  ;;  %v6592_v3 = vcombine.high %v732_v54, %v736_v55 }
 0x11c   : > { %3620 = vmatprep.subr.bf16.mxu0 %v6536_v4  ;;  %3784 = vmatprep.subr.bf16.mxu1 %v6538_v7  ;;  %v741_v4 = vld [vmem:[#allocation2 + $0xb08] sm:$0xff]  ;;  %v6591_v7 = vcombine.low %v732_v54, %v736_v55 }
 0x11d   : > { %v6602_v14 = vcombine.high %v741_v4, %v745_v5  ;;  %v785_v54 = vld [vmem:[#allocation2 + $0xc68] sm:$0xff] }
 0x11f   : > { %3621 = vmatpush1.bf16.msra.mxu0 %v6535_v8  ;;  %3785 = vmatpush1.bf16.msra.mxu1 %v6537_v11  ;;  %v748_v8 = vld [vmem:[#allocation2 + $0xb40] sm:$0xff]  ;;  %v6600_v11 = vcombine.high %v740_v0, %v744_v1 }
 0x120   : > { %3622 = vmatprep.subr.bf16.mxu0 %v6544_v12  ;;  %3786 = vmatprep.subr.bf16.mxu1 %v6546_v15  ;;  %v749_v12 = vld [vmem:[#allocation2 + $0xb48] sm:$0xff]  ;;  %v6599_v15 = vcombine.low %v740_v0, %v744_v1  ;;  %v6608_v17 = vcombine.high %v748_v8, %v752_v9  ;;  %v6639_v1 = vcombine.low %v780_v49, %v784_v50  ;;  %v836_v49 = vld [vmem:[#allocation2 + $0xe00] sm:$0xff] }
 0x121   : > { %v6610_v18 = vcombine.high %v749_v12, %v753_v13  ;;  %v789_v0 = vld [vmem:[#allocation2 + $0xc88] sm:$0xff]  ;;  %v840_v50 = vld [vmem:[#allocation2 + $0xe20] sm:$0xff] }
 0x123   : > { %3623 = vmatpush1.bf16.msra.mxu0 %v6543_v16  ;;  %3787 = vmatpush1.bf16.msra.mxu1 %v6545_v20  ;;  %v6601_v16 = vcombine.low %v741_v4, %v745_v5  ;;  %v756_v20 = vld [vmem:[#allocation2 + $0xb80] sm:$0xff]  ;;  %v6650_v4 = vcombine.high %v789_v0, %v793_v51 }
 0x124   : > { %3624 = vmatprep.subr.bf16.mxu0 %v6552_v21  ;;  %3788 = vmatprep.subr.bf16.mxu1 %v6554_v25  ;;  %v760_v21 = vld [vmem:[#allocation2 + $0xba0] sm:$0xff]  ;;  %v6607_v25 = vcombine.low %v748_v8, %v752_v9  ;;  %v801_v8 = vld [vmem:[#allocation2 + $0xce8] sm:$0xff] }
 0x125   : > { %v6616_v27 = vcombine.high %v756_v20, %v760_v21  ;;  %v796_v5 = vld [vmem:[#allocation2 + $0xcc0] sm:$0xff] }
 0x127   : > { %3625 = vmatpush1.bf16.msra.mxu0 %v6551_v26  ;;  %3789 = vmatpush1.bf16.msra.mxu1 %v6553_v29  ;;  %v6609_v26 = vcombine.low %v749_v12, %v753_v13  ;;  %v764_v29 = vld [vmem:[#allocation2 + $0xbc0] sm:$0xff] }
 0x128   : > { %3626 = vmatprep.subr.bf16.mxu0 %v6560_v30  ;;  %3790 = vmatprep.subr.bf16.mxu1 %v6562_v34  ;;  %v768_v30 = vld [vmem:[#allocation2 + $0xbe0] sm:$0xff]  ;;  %v6615_v34 = vcombine.low %v756_v20, %v760_v21 }
 0x129   : > { %v6624_v37 = vcombine.high %v764_v29, %v768_v30  ;;  %v804_v13 = vld [vmem:[#allocation2 + $0xd00] sm:$0xff] }
 0x12b   : > { %3627 = vmatpush1.bf16.msra.mxu0 %v6559_v35  ;;  %3791 = vmatpush1.bf16.msra.mxu1 %v6561_v39  ;;  %v6617_v35 = vcombine.low %v757_v23, %v761_v24  ;;  %v772_v39 = vld [vmem:[#allocation2 + $0xc00] sm:$0xff] }
 0x12c   : > { %3628 = vmatprep.subr.bf16.mxu0 %v6568_v40  ;;  %3792 = vmatprep.subr.bf16.mxu1 %v6570_v43  ;;  %v776_v40 = vld [vmem:[#allocation2 + $0xc20] sm:$0xff]  ;;  %v6623_v43 = vcombine.low %v764_v29, %v768_v30 }
 0x12d   : > { %v812_v23 = vld [vmem:[#allocation2 + $0xd40] sm:$0xff] }
 0x12e   : > { %v816_v24 = vld [vmem:[#allocation2 + $0xd60] sm:$0xff] }
 0x12f   : > { %3629 = vmatpush1.bf16.msra.mxu0 %v6567_v44  ;;  %3793 = vmatpush1.bf16.msra.mxu1 %v6569_v47  ;;  %v371_v44 = vld [vmem:[%s8030_s0 + $0x18] sm:$0xff]  ;;  %v6632_v47 = vcombine.high %v772_v39, %v776_v40  ;;  %v6672_v29 = vcombine.high %v812_v23, %v816_v24 }
 0x130   : > { %3630 = vmatprep.subr.bf16.mxu0 %v6576_v48  ;;  %3794 = vmatprep.subr.bf16.mxu1 %v6578_v52  ;;  %v6634_v48 = vcombine.high %v773_v41, %v777_v42  ;;  %v7882_v52 = vcombine.low %v7864_v36, %v7864_v36  ;;  %v7886_v55 = vsel %vm7810_vm0, %v371_v44, %v375_v45  ;;  %v833_v44 = vld [vmem:[#allocation2 + $0xde8] sm:$0xff] }
 0x131   : > { %v7890_v36 = vcombine.high %v7886_v55, %v7886_v55  ;;  %v6679_v45 = vcombine.low %v820_v31, %v824_v32 }
 0x133   : > { %3631 = vmatpush1.bf16.msra.mxu0 %v6575_v53  ;;  %3795 = vmatpush1.bf16.msra.mxu1 %v6577_v56  ;;  %v781_v53 = vld [vmem:[#allocation2 + $0xc48] sm:$0xff]  ;;  %v6631_v56 = vcombine.low %v772_v39, %v776_v40  ;;  %v6680_v39 = vcombine.high %v820_v31, %v824_v32  ;;  %v876_v31 = vld [vmem:[#allocation2 + $0xf40] sm:$0xff] }
 0x134   : > { %3632 = vmatprep.subr.bf16.mxu0 %v6584_v57  ;;  %3796 = vmatprep.subr.bf16.mxu1 %v6586_v61  ;;  %v6633_v57 = vcombine.low %v773_v41, %v777_v42  ;;  %v6642_v59 = vcombine.high %v781_v53, %v785_v54  ;;  %v788_v61 = vld [vmem:[#allocation2 + $0xc80] sm:$0xff] }
 0x135   : > { %v828_v41 = vld [vmem:[#allocation2 + $0xdc0] sm:$0xff] }
 0x136   : > { %v832_v42 = vld [vmem:[#allocation2 + $0xde0] sm:$0xff] }
 0x137   : > { %3633 = vmatpush1.bf16.msra.mxu0 %v6583_v62  ;;  %3797 = vmatpush1.bf16.msra.mxu1 %v6585_v2  ;;  %v792_v62 = vld [vmem:[#allocation2 + $0xca0] sm:$0xff]  ;;  %v6641_v2 = vcombine.low %v781_v53, %v785_v54  ;;  %v837_v53 = vld [vmem:[#allocation2 + $0xe08] sm:$0xff] }
 0x138   : > { %3634 = vmatprep.subr.bf16.mxu0 %v6592_v3  ;;  %3798 = vmatprep.subr.bf16.mxu1 %v6594_v6  ;;  %v6648_v3 = vcombine.high %v788_v61, %v792_v62  ;;  %v800_v6 = vld [vmem:[#allocation2 + $0xce0] sm:$0xff]  ;;  %v6647_v9 = vcombine.low %v788_v61, %v792_v62  ;;  %v841_v54 = vld [vmem:[#allocation2 + $0xe28] sm:$0xff] }
 0x139   : > { %v844_v61 = vld [vmem:[#allocation2 + $0xe40] sm:$0xff] }
 0x13a   : > { %v848_v62 = vld [vmem:[#allocation2 + $0xe60] sm:$0xff] }
 0x13b   : > { %3635 = vmatpush1.bf16.msra.mxu0 %v6591_v7  ;;  %3799 = vmatpush1.bf16.msra.mxu1 %v6593_v10  ;;  %v797_v7 = vld [vmem:[#allocation2 + $0xcc8] sm:$0xff]  ;;  %v6649_v10 = vcombine.low %v789_v0, %v793_v51  ;;  %v880_v32 = vld [vmem:[#allocation2 + $0xf60] sm:$0xff] }
 0x13c   : > { %3636 = vmatprep.subr.bf16.mxu0 %v6600_v11  ;;  %3800 = vmatprep.subr.bf16.mxu1 %v6602_v14  ;;  %v6656_v11 = vcombine.high %v796_v5, %v800_v6  ;;  %v6658_v12 = vcombine.high %v797_v7, %v801_v8  ;;  %v808_v14 = vld [vmem:[#allocation2 + $0xd20] sm:$0xff]  ;;  %v845_v0 = vld [vmem:[#allocation2 + $0xe48] sm:$0xff] }
 0x13d   : > { %v6664_v20 = vcombine.high %v804_v13, %v808_v14  ;;  %v849_v51 = vld [vmem:[#allocation2 + $0xe68] sm:$0xff] }
 0x13f   : > { %3637 = vmatpush1.bf16.msra.mxu0 %v6599_v15  ;;  %3801 = vmatpush1.bf16.msra.mxu1 %v6601_v16  ;;  %v805_v15 = vld [vmem:[#allocation2 + $0xd08] sm:$0xff] }
 0x140   : > { %3638 = vmatprep.subr.bf16.mxu0 %v6608_v17  ;;  %3802 = vmatprep.subr.bf16.mxu1 %v6610_v18  ;;  %v809_v16 = vld [vmem:[#allocation2 + $0xd28] sm:$0xff]  ;;  %v6655_v17 = vcombine.low %v796_v5, %v800_v6  ;;  %v6657_v18 = vcombine.low %v797_v7, %v801_v8  ;;  %v852_v5 = vld [vmem:[#allocation2 + $0xe80] sm:$0xff] }
 0x141   : > { %v6666_v21 = vcombine.high %v805_v15, %v809_v16  ;;  %v856_v6 = vld [vmem:[#allocation2 + $0xea0] sm:$0xff]  ;;  %v853_v7 = vld [vmem:[#allocation2 + $0xe88] sm:$0xff] }
 0x142   : > { %v857_v8 = vld [vmem:[#allocation2 + $0xea8] sm:$0xff] }
 0x143   : > { %3639 = vmatpush1.bf16.msra.mxu0 %v6607_v25  ;;  %3803 = vmatpush1.bf16.msra.mxu1 %v6609_v26  ;;  %v813_v25 = vld [vmem:[#allocation2 + $0xd48] sm:$0xff] }
 0x144   : > { %3640 = vmatprep.subr.bf16.mxu0 %v6616_v27  ;;  %3804 = vmatprep.subr.bf16.mxu1 %v6618_v28  ;;  %v817_v26 = vld [vmem:[#allocation2 + $0xd68] sm:$0xff]  ;;  %v6663_v27 = vcombine.low %v804_v13, %v808_v14  ;;  %v6665_v28 = vcombine.low %v805_v15, %v809_v16  ;;  %v860_v13 = vld [vmem:[#allocation2 + $0xec0] sm:$0xff] }
 0x145   : > { %v6674_v30 = vcombine.high %v813_v25, %v817_v26  ;;  %v864_v14 = vld [vmem:[#allocation2 + $0xee0] sm:$0xff]  ;;  %v861_v15 = vld [vmem:[#allocation2 + $0xec8] sm:$0xff] }
 0x146   : > { %v865_v16 = vld [vmem:[#allocation2 + $0xee8] sm:$0xff] }
 0x147   : > { %3641 = vmatpush1.bf16.msra.mxu0 %v6615_v34  ;;  %3805 = vmatpush1.bf16.msra.mxu1 %v6617_v35  ;;  %v821_v34 = vld [vmem:[#allocation2 + $0xd88] sm:$0xff] }
 0x148   : > { %3642 = vmatprep.subr.bf16.mxu0 %v6624_v37  ;;  %3806 = vmatprep.subr.bf16.mxu1 %v6626_v38  ;;  %v825_v35 = vld [vmem:[#allocation2 + $0xda8] sm:$0xff]  ;;  %v6671_v37 = vcombine.low %v812_v23, %v816_v24  ;;  %v6673_v38 = vcombine.low %v813_v25, %v817_v26  ;;  %v868_v23 = vld [vmem:[#allocation2 + $0xf00] sm:$0xff] }
 0x149   : > { %v6682_v40 = vcombine.high %v821_v34, %v825_v35  ;;  %v872_v24 = vld [vmem:[#allocation2 + $0xf20] sm:$0xff]  ;;  %v869_v25 = vld [vmem:[#allocation2 + $0xf08] sm:$0xff] }
 0x14a   : > { %v873_v26 = vld [vmem:[#allocation2 + $0xf28] sm:$0xff] }
 0x14b   : > { %3643 = vmatpush1.bf16.msra.mxu0 %v6623_v43  ;;  %3807 = vmatpush1.bf16.msra.mxu1 %v6625_v46  ;;  %v829_v43 = vld [vmem:[#allocation2 + $0xdc8] sm:$0xff]  ;;  %v6681_v46 = vcombine.low %v821_v34, %v825_v35 }
 0x14c   : > { %3653 = vmatprep.subr.bf16.mxu0 %v6632_v47  ;;  %3817 = vmatprep.subr.bf16.mxu1 %v6634_v48  ;;  %v6688_v47 = vcombine.high %v828_v41, %v832_v42  ;;  %v6690_v48 = vcombine.high %v829_v43, %v833_v44  ;;  %v877_v34 = vld [vmem:[#allocation2 + $0xf48] sm:$0xff] }
 0x14d   : > { %v881_v35 = vld [vmem:[#allocation2 + $0xf68] sm:$0xff] }
 0x14e   : > { %3645 = vmatmul.mubr.bf16.vlgmr.msra.gmra.mrb[0].mxu0 %v7882_v52  ;;  %3809 = vmatmul.mubr.bf16.vlgmr.msra.gmra.mrb[0].mxu1 %v7882_v52 }
 0x14f   : > { %3654 = vmatpush1.bf16.msra.mxu0 %v6631_v56  ;;  %3818 = vmatpush1.bf16.msra.mxu1 %v6633_v57  ;;  %v6687_v56 = vcombine.low %v828_v41, %v832_v42  ;;  %v6689_v57 = vcombine.low %v829_v43, %v833_v44  ;;  %v884_v41 = vld [vmem:[#allocation2 + $0xf80] sm:$0xff]  ;;  %v885_v43 = vld [vmem:[#allocation2 + $0xf88] sm:$0xff] }
 0x150   : > { %3655 = vmatprep.subr.bf16.mxu0 %v6640_v58  ;;  %3819 = vmatprep.subr.bf16.mxu1 %v6642_v59  ;;  %v6696_v58 = vcombine.high %v836_v49, %v840_v50  ;;  %v6698_v59 = vcombine.high %v837_v53, %v841_v54  ;;  %v888_v42 = vld [vmem:[#allocation2 + $0xfa0] sm:$0xff]  ;;  %v889_v44 = vld [vmem:[#allocation2 + $0xfa8] sm:$0xff] }
 0x151   : > { %3685 = vmatprep.mubr.bf16.mxu0 %v7890_v36  ;;  %3849 = vmatprep.mubr.bf16.mxu1 %v7890_v36 }
 0x153   : > { %3656 = vmatpush1.bf16.msra.mxu0 %v6639_v1  ;;  %3820 = vmatpush1.bf16.msra.mxu1 %v6641_v2  ;;  %v6695_v1 = vcombine.low %v836_v49, %v840_v50  ;;  %v6697_v2 = vcombine.low %v837_v53, %v841_v54  ;;  %v892_v49 = vld [vmem:[#allocation2 + $0xfc0] sm:$0xff]  ;;  %v893_v53 = vld [vmem:[#allocation2 + $0xfc8] sm:$0xff] }
 0x154   : > { %3657 = vmatprep.subr.bf16.mxu0 %v6648_v3  ;;  %3821 = vmatprep.subr.bf16.mxu1 %v6650_v4  ;;  %v6704_v3 = vcombine.high %v844_v61, %v848_v62  ;;  %v6706_v4 = vcombine.high %v845_v0, %v849_v51  ;;  %v896_v50 = vld [vmem:[#allocation2 + $0xfe0] sm:$0xff]  ;;  %v897_v54 = vld [vmem:[#allocation2 + $0xfe8] sm:$0xff] }
 0x157   : > { %3658 = vmatpush1.bf16.msra.mxu0 %v6647_v9  ;;  %3822 = vmatpush1.bf16.msra.mxu1 %v6649_v10  ;;  %v6703_v9 = vcombine.low %v844_v61, %v848_v62  ;;  %v6705_v10 = vcombine.low %v845_v0, %v849_v51  ;;  %v390_v61 = vld [vmem:[#allocation2 + $0x10] sm:$0xff]  ;;  %v6751_v0 = vcombine.low %v892_v49, %v896_v50 }
 0x158   : > { %3659 = vmatprep.subr.bf16.mxu0 %v6656_v11  ;;  %3823 = vmatprep.subr.bf16.mxu1 %v6658_v12  ;;  %v6712_v11 = vcombine.high %v852_v5, %v856_v6  ;;  %v6714_v12 = vcombine.high %v853_v7, %v857_v8  ;;  %v394_v62 = vld [vmem:[#allocation2 + $0x30] sm:$0xff]  ;;  %v6753_v51 = vcombine.low %v893_v53, %v897_v54 }
 0x15b   : > { %3660 = vmatpush1.bf16.msra.mxu0 %v6655_v17  ;;  %3824 = vmatpush1.bf16.msra.mxu1 %v6657_v18  ;;  %v6711_v17 = vcombine.low %v852_v5, %v856_v6  ;;  %v6713_v18 = vcombine.low %v853_v7, %v857_v8  ;;  %v6251_v5 = vcombine.low %v390_v61, %v394_v62  ;;  %v406_v7 = vld [vmem:[#allocation2 + $0x90] sm:$0xff] }
 0x15c   : > { %3661 = vmatprep.subr.bf16.mxu0 %v6664_v20  ;;  %3825 = vmatprep.subr.bf16.mxu1 %v6666_v21  ;;  %v6720_v20 = vcombine.high %v860_v13, %v864_v14  ;;  %v6722_v21 = vcombine.high %v861_v15, %v865_v16  ;;  %v410_v8 = vld [vmem:[#allocation2 + $0xb0] sm:$0xff] }
 0x15f   : > { %3662 = vmatpush1.bf16.msra.mxu0 %v6663_v27  ;;  %3826 = vmatpush1.bf16.msra.mxu1 %v6665_v28  ;;  %v6719_v27 = vcombine.low %v860_v13, %v864_v14  ;;  %v6721_v28 = vcombine.low %v861_v15, %v865_v16  ;;  %v422_v14 = vld [vmem:[#allocation2 + $0x110] sm:$0xff] }
 0x160   : > { %3663 = vmatprep.subr.bf16.mxu0 %v6672_v29  ;;  %3827 = vmatprep.subr.bf16.mxu1 %v6674_v30  ;;  %v6728_v29 = vcombine.high %v868_v23, %v872_v24  ;;  %v6730_v30 = vcombine.high %v869_v25, %v873_v26  ;;  %v426_v15 = vld [vmem:[#allocation2 + $0x130] sm:$0xff] }
 0x163   : > { %3664 = vmatpush1.bf16.msra.mxu0 %v6671_v37  ;;  %3828 = vmatpush1.bf16.msra.mxu1 %v6673_v38  ;;  %v6727_v37 = vcombine.low %v868_v23, %v872_v24  ;;  %v6729_v38 = vcombine.low %v869_v25, %v873_v26  ;;  %v438_v24 = vld [vmem:[#allocation2 + $0x190] sm:$0xff] }
 0x164   : > { %3665 = vmatprep.subr.bf16.mxu0 %v6680_v39  ;;  %3829 = vmatprep.subr.bf16.mxu1 %v6682_v40  ;;  %v6736_v39 = vcombine.high %v876_v31, %v880_v32  ;;  %v6738_v40 = vcombine.high %v877_v34, %v881_v35  ;;  %v442_v25 = vld [vmem:[#allocation2 + $0x1b0] sm:$0xff] }
 0x165   : > { %v6300_v26 = vcombine.high %v438_v24, %v442_v25 }
 0x167   : > { %3666 = vmatpush1.bf16.msra.mxu0 %v6679_v45  ;;  %3830 = vmatpush1.bf16.msra.mxu1 %v6681_v46  ;;  %v6735_v45 = vcombine.low %v876_v31, %v880_v32  ;;  %v6737_v46 = vcombine.low %v877_v34, %v881_v35  ;;  %v454_v31 = vld [vmem:[#allocation2 + $0x210] sm:$0xff] }
 0x168   : > { %3667 = vmatprep.subr.bf16.mxu0 %v6688_v47  ;;  %3831 = vmatprep.subr.bf16.mxu1 %v6690_v48  ;;  %v6744_v47 = vcombine.high %v884_v41, %v888_v42  ;;  %v6746_v48 = vcombine.high %v885_v43, %v889_v44  ;;  %v458_v32 = vld [vmem:[#allocation2 + $0x230] sm:$0xff] }
 0x169   : > { %v6316_v35 = vcombine.high %v454_v31, %v458_v32 }
 0x16b   : > { %3668 = vmatpush1.bf16.msra.mxu0 %v6687_v56  ;;  %3832 = vmatpush1.bf16.msra.mxu1 %v6689_v57  ;;  %v6743_v56 = vcombine.low %v884_v41, %v888_v42  ;;  %v6745_v57 = vcombine.low %v885_v43, %v889_v44  ;;  %v470_v41 = vld [vmem:[#allocation2 + $0x290] sm:$0xff] }
 0x16c   : > { %3669 = vmatprep.subr.bf16.mxu0 %v6696_v58  ;;  %3833 = vmatprep.subr.bf16.mxu1 %v6698_v59  ;;  %v6752_v58 = vcombine.high %v892_v49, %v896_v50  ;;  %v6754_v59 = vcombine.high %v893_v53, %v897_v54  ;;  %v474_v42 = vld [vmem:[#allocation2 + $0x2b0] sm:$0xff] }
 0x16d   : > { %v6332_v44 = vcombine.high %v470_v41, %v474_v42  ;;  %v486_v49 = vld [vmem:[#allocation2 + $0x310] sm:$0xff] }
 0x16e   : > { %v490_v50 = vld [vmem:[#allocation2 + $0x330] sm:$0xff] }
 0x16f   : > { %3670 = vmatpush1.bf16.msra.mxu0 %v6695_v1  ;;  %3834 = vmatpush1.bf16.msra.mxu1 %v6697_v2  ;;  %v6252_v1 = vcombine.high %v390_v61, %v394_v62  ;;  %v398_v2 = vld [vmem:[#allocation2 + $0x50] sm:$0xff]  ;;  %v6348_v54 = vcombine.high %v486_v49, %v490_v50 }
 0x170   : > { %3671 = vmatprep.subr.bf16.mxu0 %v6704_v3  ;;  %3835 = vmatprep.subr.bf16.mxu1 %v6706_v4  ;;  %v402_v3 = vld [vmem:[#allocation2 + $0x70] sm:$0xff]  ;;  %v7898_v4 = vcombine.low %v7886_v55, %v7886_v55 }
 0x171   : > { %v6260_v6 = vcombine.high %v398_v2, %v402_v3  ;;  %v418_v55 = vld [vmem:[#allocation2 + $0xf0] sm:$0xff] }
 0x172   : > { %v502_v61 = vld [vmem:[#allocation2 + $0x390] sm:$0xff] }
 0x173   : > { %3672 = vmatpush1.bf16.msra.mxu0 %v6703_v9  ;;  %3836 = vmatpush1.bf16.msra.mxu1 %v6705_v10  ;;  %v6259_v9 = vcombine.low %v398_v2, %v402_v3  ;;  %v6268_v10 = vcombine.high %v406_v7, %v410_v8  ;;  %v506_v62 = vld [vmem:[#allocation2 + $0x3b0] sm:$0xff] }
 0x174   : > { %3673 = vmatprep.subr.bf16.mxu0 %v6712_v11  ;;  %3837 = vmatprep.subr.bf16.mxu1 %v6714_v12  ;;  %v414_v11 = vld [vmem:[#allocation2 + $0xd0] sm:$0xff]  ;;  %v6267_v12 = vcombine.low %v406_v7, %v410_v8  ;;  %v6363_v3 = vcombine.low %v502_v61, %v506_v62 }
 0x175   : > { %v6276_v13 = vcombine.high %v414_v11, %v418_v55  ;;  %v6275_v16 = vcombine.low %v414_v11, %v418_v55  ;;  %v514_v2 = vld [vmem:[#allocation2 + $0x3f0] sm:$0xff] }
 0x176   : > { %v522_v7 = vld [vmem:[#allocation2 + $0x430] sm:$0xff] }
 0x177   : > { %3674 = vmatpush1.bf16.msra.mxu0 %v6711_v17  ;;  %3838 = vmatpush1.bf16.msra.mxu1 %v6713_v18  ;;  %v6284_v17 = vcombine.high %v422_v14, %v426_v15  ;;  %v430_v18 = vld [vmem:[#allocation2 + $0x150] sm:$0xff] }
 0x178   : > { %3675 = vmatprep.subr.bf16.mxu0 %v6720_v20  ;;  %3839 = vmatprep.subr.bf16.mxu1 %v6722_v21  ;;  %v434_v20 = vld [vmem:[#allocation2 + $0x170] sm:$0xff]  ;;  %v6283_v21 = vcombine.low %v422_v14, %v426_v15 }
 0x179   : > { %v6292_v23 = vcombine.high %v430_v18, %v434_v20  ;;  %v530_v11 = vld [vmem:[#allocation2 + $0x470] sm:$0xff] }
 0x17a   : > { %v538_v14 = vld [vmem:[#allocation2 + $0x4b0] sm:$0xff] }
 0x17b   : > { %3676 = vmatpush1.bf16.msra.mxu0 %v6719_v27  ;;  %3840 = vmatpush1.bf16.msra.mxu1 %v6721_v28  ;;  %v446_v27 = vld [vmem:[#allocation2 + $0x1d0] sm:$0xff] }
 0x17c   : > { %3677 = vmatprep.subr.bf16.mxu0 %v6728_v29  ;;  %3841 = vmatprep.subr.bf16.mxu1 %v6730_v30  ;;  %v450_v28 = vld [vmem:[#allocation2 + $0x1f0] sm:$0xff]  ;;  %v6299_v29 = vcombine.low %v438_v24, %v442_v25 }
 0x17d   : > { %v6308_v30 = vcombine.high %v446_v27, %v450_v28  ;;  %v6307_v34 = vcombine.low %v446_v27, %v450_v28  ;;  %v554_v24 = vld [vmem:[#allocation2 + $0x530] sm:$0xff] }
 0x17e   : > { %v562_v27 = vld [vmem:[#allocation2 + $0x570] sm:$0xff] }
 0x17f   : > { %3678 = vmatpush1.bf16.msra.mxu0 %v6727_v37  ;;  %3842 = vmatpush1.bf16.msra.mxu1 %v6729_v38  ;;  %v462_v37 = vld [vmem:[#allocation2 + $0x250] sm:$0xff] }
 0x180   : > { %3679 = vmatprep.subr.bf16.mxu0 %v6736_v39  ;;  %3843 = vmatprep.subr.bf16.mxu1 %v6738_v40  ;;  %v466_v38 = vld [vmem:[#allocation2 + $0x270] sm:$0xff]  ;;  %v6315_v39 = vcombine.low %v454_v31, %v458_v32 }
 0x181   : > { %v6324_v40 = vcombine.high %v462_v37, %v466_v38  ;;  %v6323_v43 = vcombine.low %v462_v37, %v466_v38  ;;  %v570_v31 = vld [vmem:[#allocation2 + $0x5b0] sm:$0xff] }
 0x182   : > { %v578_v37 = vld [vmem:[#allocation2 + $0x5f0] sm:$0xff] }
 0x183   : > { %3680 = vmatpush1.bf16.msra.mxu0 %v6735_v45  ;;  %3844 = vmatpush1.bf16.msra.mxu1 %v6737_v46  ;;  %v478_v45 = vld [vmem:[#allocation2 + $0x2d0] sm:$0xff] }
 0x184   : > { %3681 = vmatprep.subr.bf16.mxu0 %v6744_v47  ;;  %3845 = vmatprep.subr.bf16.mxu1 %v6746_v48  ;;  %v482_v46 = vld [vmem:[#allocation2 + $0x2f0] sm:$0xff]  ;;  %v6331_v47 = vcombine.low %v470_v41, %v474_v42 }
 0x185   : > { %v6340_v48 = vcombine.high %v478_v45, %v482_v46  ;;  %v6339_v53 = vcombine.low %v478_v45, %v482_v46  ;;  %v586_v41 = vld [vmem:[#allocation2 + $0x630] sm:$0xff] }
 0x186   : > { %v594_v45 = vld [vmem:[#allocation2 + $0x670] sm:$0xff] }
 0x187   : > { %3682 = vmatpush1.bf16.msra.mxu0 %v6743_v56  ;;  %3846 = vmatpush1.bf16.msra.mxu1 %v6745_v57  ;;  %v494_v56 = vld [vmem:[#allocation2 + $0x350] sm:$0xff] }
 0x188   : > { %3683 = vmatprep.subr.bf16.mxu0 %v6752_v58  ;;  %3847 = vmatprep.subr.bf16.mxu1 %v6754_v59  ;;  %v498_v57 = vld [vmem:[#allocation2 + $0x370] sm:$0xff]  ;;  %v6347_v58 = vcombine.low %v486_v49, %v490_v50 }
 0x189   : > { %v6356_v59 = vcombine.high %v494_v56, %v498_v57  ;;  %v602_v49 = vld [vmem:[#allocation2 + $0x6b0] sm:$0xff] }
 0x18b   : > { %3684 = vmatpush1.bf16.msra.mxu0 %v6751_v0  ;;  %3848 = vmatpush1.bf16.msra.mxu1 %v6753_v51  ;;  %v6355_v0 = vcombine.low %v494_v56, %v498_v57  ;;  %v6364_v51 = vcombine.high %v502_v61, %v506_v62  ;;  %v610_v56 = vld [vmem:[#allocation2 + $0x6f0] sm:$0xff] }
 0x18c   : > { %3858 = vmatprep.subr.bf16.mxu0 %v6252_v1  ;;  %v510_v1 = vld [vmem:[#allocation2 + $0x3d0] sm:$0xff] }
 0x18d   : > { %v6371_v8 = vcombine.low %v510_v1, %v514_v2  ;;  %v618_v61 = vld [vmem:[#allocation2 + $0x730] sm:$0xff] }
 0x18e   : > { %3686 = vmatmul.mubr.bf16.vlgmr.msra.gmra.mrb[0].mxu0 %v7898_v4  ;;  %3850 = vmatmul.mubr.bf16.vlgmr.msra.gmra.mrb[0].mxu1 %v7898_v4 }
 0x18f   : > { %3859 = vmatpush1.bf16.msra.mxu0 %v6251_v5  ;;  %3890 = vmatprep.mubr.bf16.mxu0 %v7826_v63  ;;  %v6372_v5 = vcombine.high %v510_v1, %v514_v2  ;;  %v626_v1 = vld [vmem:[#allocation2 + $0x770] sm:$0xff] }
 0x190   : > { %3860 = vmatprep.subr.bf16.mxu0 %v6260_v6  ;;  %4054 = vmatprep.mubr.bf16.mxu1 %v7826_v63  ;;  %v6291_v63 = vcombine.low %v430_v18, %v434_v20  ;;  %v518_v6 = vld [vmem:[#allocation2 + $0x410] sm:$0xff] }
 0x191   : > { %v6379_v55 = vcombine.low %v518_v6, %v522_v7  ;;  %v546_v18 = vld [vmem:[#allocation2 + $0x4f0] sm:$0xff] }
 0x193   : > { %3861 = vmatpush1.bf16.msra.mxu0 %v6259_v9  ;;  %v6380_v9 = vcombine.high %v518_v6, %v522_v7  ;;  %v634_v6 = vld [vmem:[#allocation2 + $0x7b0] sm:$0xff] }
 0x194   : > { %3862 = vmatprep.subr.bf16.mxu0 %v6268_v10  ;;  %v526_v10 = vld [vmem:[#allocation2 + $0x450] sm:$0xff] }
 0x195   : > { %v6387_v15 = vcombine.low %v526_v10, %v530_v11 }
 0x197   : > { %3863 = vmatpush1.bf16.msra.mxu0 %v6267_v12  ;;  %v6388_v12 = vcombine.high %v526_v10, %v530_v11  ;;  %v642_v10 = vld [vmem:[#allocation2 + $0x7f0] sm:$0xff] }
 0x198   : > { %3864 = vmatprep.subr.bf16.mxu0 %v6276_v13  ;;  %v534_v13 = vld [vmem:[#allocation2 + $0x490] sm:$0xff] }
 0x199   : > { %v6395_v20 = vcombine.low %v534_v13, %v538_v14 }
 0x19b   : > { %3865 = vmatpush1.bf16.msra.mxu0 %v6275_v16  ;;  %v6396_v16 = vcombine.high %v534_v13, %v538_v14  ;;  %v650_v13 = vld [vmem:[#allocation2 + $0x830] sm:$0xff] }
 0x19c   : > { %3866 = vmatprep.subr.bf16.mxu0 %v6284_v17  ;;  %v542_v17 = vld [vmem:[#allocation2 + $0x4d0] sm:$0xff] }
 0x19d   : > { %v6403_v25 = vcombine.low %v542_v17, %v546_v18 }
 0x19f   : > { %3867 = vmatpush1.bf16.msra.mxu0 %v6283_v21  ;;  %v6404_v21 = vcombine.high %v542_v17, %v546_v18  ;;  %v658_v17 = vld [vmem:[#allocation2 + $0x870] sm:$0xff] }
 0x1a0   : > { %3868 = vmatprep.subr.bf16.mxu0 %v6292_v23  ;;  %v550_v23 = vld [vmem:[#allocation2 + $0x510] sm:$0xff] }
 0x1a1   : > { %v6411_v28 = vcombine.low %v550_v23, %v554_v24 }
 0x1a3   : > { %3869 = vmatpush1.bf16.msra.mxu0 %v6291_v63  ;;  %v6412_v63 = vcombine.high %v550_v23, %v554_v24  ;;  %v666_v23 = vld [vmem:[#allocation2 + $0x8b0] sm:$0xff] }
 0x1a4   : > { %3870 = vmatprep.subr.bf16.mxu0 %v6300_v26  ;;  %v558_v26 = vld [vmem:[#allocation2 + $0x550] sm:$0xff] }
 0x1a5   : > { %v6419_v32 = vcombine.low %v558_v26, %v562_v27 }
 0x1a7   : > { %3871 = vmatpush1.bf16.msra.mxu0 %v6299_v29  ;;  %v6420_v29 = vcombine.high %v558_v26, %v562_v27  ;;  %v674_v26 = vld [vmem:[#allocation2 + $0x8f0] sm:$0xff] }
 0x1a8   : > { %3872 = vmatprep.subr.bf16.mxu0 %v6308_v30  ;;  %v566_v30 = vld [vmem:[#allocation2 + $0x590] sm:$0xff] }
 0x1a9   : > { %v6427_v38 = vcombine.low %v566_v30, %v570_v31 }
 0x1ab   : > { %3873 = vmatpush1.bf16.msra.mxu0 %v6307_v34  ;;  %v6428_v34 = vcombine.high %v566_v30, %v570_v31  ;;  %v682_v30 = vld [vmem:[#allocation2 + $0x930] sm:$0xff] }
 0x1ac   : > { %3874 = vmatprep.subr.bf16.mxu0 %v6316_v35  ;;  %v574_v35 = vld [vmem:[#allocation2 + $0x5d0] sm:$0xff] }
 0x1ad   : > { %v6435_v42 = vcombine.low %v574_v35, %v578_v37 }
 0x1af   : > { %3875 = vmatpush1.bf16.msra.mxu0 %v6315_v39  ;;  %v6436_v39 = vcombine.high %v574_v35, %v578_v37  ;;  %v690_v35 = vld [vmem:[#allocation2 + $0x970] sm:$0xff] }
 0x1b0   : > { %3876 = vmatprep.subr.bf16.mxu0 %v6324_v40  ;;  %v582_v40 = vld [vmem:[#allocation2 + $0x610] sm:$0xff] }
 0x1b1   : > { %v6443_v46 = vcombine.low %v582_v40, %v586_v41 }
 0x1b3   : > { %3877 = vmatpush1.bf16.msra.mxu0 %v6323_v43  ;;  %v6444_v43 = vcombine.high %v582_v40, %v586_v41  ;;  %v698_v40 = vld [vmem:[#allocation2 + $0x9b0] sm:$0xff] }
 0x1b4   : > { %3878 = vmatprep.subr.bf16.mxu0 %v6332_v44  ;;  %v590_v44 = vld [vmem:[#allocation2 + $0x650] sm:$0xff] }
 0x1b5   : > { %v6451_v50 = vcombine.low %v590_v44, %v594_v45 }
 0x1b7   : > { %3879 = vmatpush1.bf16.msra.mxu0 %v6331_v47  ;;  %v6452_v47 = vcombine.high %v590_v44, %v594_v45  ;;  %v706_v44 = vld [vmem:[#allocation2 + $0x9f0] sm:$0xff] }
 0x1b8   : > { %3880 = vmatprep.subr.bf16.mxu0 %v6340_v48  ;;  %v598_v48 = vld [vmem:[#allocation2 + $0x690] sm:$0xff] }
 0x1b9   : > { %v6459_v57 = vcombine.low %v598_v48, %v602_v49 }
 0x1bb   : > { %3881 = vmatpush1.bf16.msra.mxu0 %v6339_v53  ;;  %v6460_v53 = vcombine.high %v598_v48, %v602_v49  ;;  %v714_v48 = vld [vmem:[#allocation2 + $0xa30] sm:$0xff] }
 0x1bc   : > { %3882 = vmatprep.subr.bf16.mxu0 %v6348_v54  ;;  %v606_v54 = vld [vmem:[#allocation2 + $0x6d0] sm:$0xff] }
 0x1bd   : > { %v6467_v62 = vcombine.low %v606_v54, %v610_v56 }
 0x1bf   : > { %3883 = vmatpush1.bf16.msra.mxu0 %v6347_v58  ;;  %v6468_v58 = vcombine.high %v606_v54, %v610_v56  ;;  %v722_v54 = vld [vmem:[#allocation2 + $0xa70] sm:$0xff] }
 0x1c0   : > { %3884 = vmatprep.subr.bf16.mxu0 %v6356_v59  ;;  %v614_v59 = vld [vmem:[#allocation2 + $0x710] sm:$0xff] }
 0x1c1   : > { %v6475_v2 = vcombine.low %v614_v59, %v618_v61 }
 0x1c3   : > { %3885 = vmatpush1.bf16.msra.mxu0 %v6355_v0  ;;  %v6476_v0 = vcombine.high %v614_v59, %v618_v61  ;;  %v730_v59 = vld [vmem:[#allocation2 + $0xab0] sm:$0xff] }
 0x1c4   : > { %3886 = vmatprep.subr.bf16.mxu0 %v6364_v51  ;;  %v622_v51 = vld [vmem:[#allocation2 + $0x750] sm:$0xff] }
 0x1c5   : > { %v6483_v7 = vcombine.low %v622_v51, %v626_v1 }
 0x1c7   : > { %3887 = vmatpush1.bf16.msra.mxu0 %v6363_v3  ;;  %v6484_v3 = vcombine.high %v622_v51, %v626_v1  ;;  %v738_v51 = vld [vmem:[#allocation2 + $0xaf0] sm:$0xff] }
 0x1c8   : > { %3888 = vmatprep.subr.bf16.mxu0 %v6372_v5  ;;  %v630_v5 = vld [vmem:[#allocation2 + $0x790] sm:$0xff] }
 0x1c9   : > { %v6491_v11 = vcombine.low %v630_v5, %v634_v6 }
 0x1cb   : > { %3889 = vmatpush1.bf16.msra.mxu0 %v6371_v8  ;;  %v6492_v8 = vcombine.high %v630_v5, %v634_v6  ;;  %v746_v5 = vld [vmem:[#allocation2 + $0xb30] sm:$0xff] }
 0x1cc   : > { %3899 = vmatprep.subr.bf16.mxu0 %v6380_v9  ;;  %v638_v9 = vld [vmem:[#allocation2 + $0x7d0] sm:$0xff] }
 0x1cd   : > { %v6499_v14 = vcombine.low %v638_v9, %v642_v10 }
 0x1ce   : > { %3891 = vmatmul.mubr.bf16.vlgmr.msra.gmra.mrb[4].mxu0 %v7838_v19 }
 0x1cf   : > { %3900 = vmatpush1.bf16.msra.mxu0 %v6379_v55  ;;  %3931 = vmatprep.mubr.bf16.mxu0 %v7846_v60  ;;  %v6500_v55 = vcombine.high %v638_v9, %v642_v10  ;;  %v754_v9 = vld [vmem:[#allocation2 + $0xb70] sm:$0xff] }
 0x1d0   : > { %3901 = vmatprep.subr.bf16.mxu0 %v6388_v12  ;;  %v646_v12 = vld [vmem:[#allocation2 + $0x810] sm:$0xff] }
 0x1d1   : > { %v6507_v18 = vcombine.low %v646_v12, %v650_v13 }
 0x1d3   : > { %3902 = vmatpush1.bf16.msra.mxu0 %v6387_v15  ;;  %v6508_v15 = vcombine.high %v646_v12, %v650_v13  ;;  %v762_v12 = vld [vmem:[#allocation2 + $0xbb0] sm:$0xff] }
 0x1d4   : > { %3903 = vmatprep.subr.bf16.mxu0 %v6396_v16  ;;  %v654_v16 = vld [vmem:[#allocation2 + $0x850] sm:$0xff] }
 0x1d5   : > { %v6515_v24 = vcombine.low %v654_v16, %v658_v17 }
 0x1d7   : > { %3904 = vmatpush1.bf16.msra.mxu0 %v6395_v20  ;;  %v6516_v20 = vcombine.high %v654_v16, %v658_v17  ;;  %v770_v16 = vld [vmem:[#allocation2 + $0xbf0] sm:$0xff] }
 0x1d8   : > { %3905 = vmatprep.subr.bf16.mxu0 %v6404_v21  ;;  %v662_v21 = vld [vmem:[#allocation2 + $0x890] sm:$0xff] }
 0x1d9   : > { %v6523_v27 = vcombine.low %v662_v21, %v666_v23 }
 0x1db   : > { %3906 = vmatpush1.bf16.msra.mxu0 %v6403_v25  ;;  %v6524_v25 = vcombine.high %v662_v21, %v666_v23  ;;  %v778_v21 = vld [vmem:[#allocation2 + $0xc30] sm:$0xff] }
 0x1dc   : > { %3907 = vmatprep.subr.bf16.mxu0 %v6412_v63  ;;  %v670_v63 = vld [vmem:[#allocation2 + $0x8d0] sm:$0xff] }
 0x1dd   : > { %v6531_v31 = vcombine.low %v670_v63, %v674_v26 }
 0x1df   : > { %3908 = vmatpush1.bf16.msra.mxu0 %v6411_v28  ;;  %v6532_v28 = vcombine.high %v670_v63, %v674_v26  ;;  %v786_v63 = vld [vmem:[#allocation2 + $0xc70] sm:$0xff] }
 0x1e0   : > { %3909 = vmatprep.subr.bf16.mxu0 %v6420_v29  ;;  %v678_v29 = vld [vmem:[#allocation2 + $0x910] sm:$0xff] }
 0x1e1   : > { %v6539_v37 = vcombine.low %v678_v29, %v682_v30 }
 0x1e3   : > { %3910 = vmatpush1.bf16.msra.mxu0 %v6419_v32  ;;  %v6540_v32 = vcombine.high %v678_v29, %v682_v30  ;;  %v794_v29 = vld [vmem:[#allocation2 + $0xcb0] sm:$0xff] }
 0x1e4   : > { %3911 = vmatprep.subr.bf16.mxu0 %v6428_v34  ;;  %v686_v34 = vld [vmem:[#allocation2 + $0x950] sm:$0xff] }
 0x1e5   : > { %v6547_v41 = vcombine.low %v686_v34, %v690_v35 }
 0x1e7   : > { %3912 = vmatpush1.bf16.msra.mxu0 %v6427_v38  ;;  %v6548_v38 = vcombine.high %v686_v34, %v690_v35  ;;  %v802_v34 = vld [vmem:[#allocation2 + $0xcf0] sm:$0xff] }
 0x1e8   : > { %3913 = vmatprep.subr.bf16.mxu0 %v6436_v39  ;;  %v694_v39 = vld [vmem:[#allocation2 + $0x990] sm:$0xff] }
 0x1e9   : > { %v6555_v45 = vcombine.low %v694_v39, %v698_v40 }
 0x1eb   : > { %3914 = vmatpush1.bf16.msra.mxu0 %v6435_v42  ;;  %v6556_v42 = vcombine.high %v694_v39, %v698_v40  ;;  %v810_v39 = vld [vmem:[#allocation2 + $0xd30] sm:$0xff] }
 0x1ec   : > { %3915 = vmatprep.subr.bf16.mxu0 %v6444_v43  ;;  %v702_v43 = vld [vmem:[#allocation2 + $0x9d0] sm:$0xff] }
 0x1ed   : > { %v6563_v49 = vcombine.low %v702_v43, %v706_v44 }
 0x1ef   : > { %3916 = vmatpush1.bf16.msra.mxu0 %v6443_v46  ;;  %v6564_v46 = vcombine.high %v702_v43, %v706_v44  ;;  %v818_v43 = vld [vmem:[#allocation2 + $0xd70] sm:$0xff] }
 0x1f0   : > { %3917 = vmatprep.subr.bf16.mxu0 %v6452_v47  ;;  %v710_v47 = vld [vmem:[#allocation2 + $0xa10] sm:$0xff] }
 0x1f1   : > { %v6571_v56 = vcombine.low %v710_v47, %v714_v48 }
 0x1f3   : > { %3918 = vmatpush1.bf16.msra.mxu0 %v6451_v50  ;;  %v6572_v50 = vcombine.high %v710_v47, %v714_v48  ;;  %v826_v47 = vld [vmem:[#allocation2 + $0xdb0] sm:$0xff] }
 0x1f4   : > { %3919 = vmatprep.subr.bf16.mxu0 %v6460_v53  ;;  %v718_v53 = vld [vmem:[#allocation2 + $0xa50] sm:$0xff] }
 0x1f5   : > { %v6579_v61 = vcombine.low %v718_v53, %v722_v54 }
 0x1f7   : > { %3920 = vmatpush1.bf16.msra.mxu0 %v6459_v57  ;;  %v6580_v57 = vcombine.high %v718_v53, %v722_v54  ;;  %v830_v53 = vld [vmem:[#allocation2 + $0xdd0] sm:$0xff] }
 0x1f8   : > { %3921 = vmatprep.subr.bf16.mxu0 %v6468_v58  ;;  %v726_v58 = vld [vmem:[#allocation2 + $0xa90] sm:$0xff] }
 0x1f9   : > { %v6587_v1 = vcombine.low %v726_v58, %v730_v59  ;;  %v834_v54 = vld [vmem:[#allocation2 + $0xdf0] sm:$0xff] }
 0x1fb   : > { %3922 = vmatpush1.bf16.msra.mxu0 %v6467_v62  ;;  %v6588_v62 = vcombine.high %v726_v58, %v730_v59 }
 0x1fc   : > { %3923 = vmatprep.subr.bf16.mxu0 %v6476_v0  ;;  %v734_v0 = vld [vmem:[#allocation2 + $0xad0] sm:$0xff] }
 0x1fd   : > { %v6595_v6 = vcombine.low %v734_v0, %v738_v51 }
 0x1ff   : > { %3924 = vmatpush1.bf16.msra.mxu0 %v6475_v2  ;;  %v6596_v2 = vcombine.high %v734_v0, %v738_v51  ;;  %v6692_v51 = vcombine.high %v830_v53, %v834_v54 }
 0x200   : > { %3925 = vmatprep.subr.bf16.mxu0 %v6484_v3  ;;  %v742_v3 = vld [vmem:[#allocation2 + $0xb10] sm:$0xff] }
 0x201   : > { %v6603_v10 = vcombine.low %v742_v3, %v746_v5 }
 0x203   : > { %3926 = vmatpush1.bf16.msra.mxu0 %v6483_v7  ;;  %v6604_v7 = vcombine.high %v742_v3, %v746_v5  ;;  %v842_v3 = vld [vmem:[#allocation2 + $0xe30] sm:$0xff]  ;;  %v6691_v5 = vcombine.low %v830_v53, %v834_v54  ;;  %v399_v53 = vld [vmem:[#allocation2 + $0x58] sm:$0xff] }
 0x204   : > { %3927 = vmatprep.subr.bf16.mxu0 %v6492_v8  ;;  %v750_v8 = vld [vmem:[#allocation2 + $0xb50] sm:$0xff] }
 0x205   : > { %v6611_v13 = vcombine.low %v750_v8, %v754_v9  ;;  %v7163_v54 = vld [vmem:[#allocation4 + $0x20] ss:$16 sps:$4 sm:$0xff]  }
 0x207   : > { %3928 = vmatpush1.bf16.msra.mxu0 %v6491_v11  ;;  %v6612_v11 = vcombine.high %v750_v8, %v754_v9  ;;  %v850_v8 = vld [vmem:[#allocation2 + $0xe70] sm:$0xff] }
 0x208   : > { %3929 = vmatprep.subr.bf16.mxu0 %v6500_v55  ;;  %v758_v55 = vld [vmem:[#allocation2 + $0xb90] sm:$0xff] }
 0x209   : > { %v6619_v17 = vcombine.low %v758_v55, %v762_v12 }
 0x20b   : > { %3930 = vmatpush1.bf16.msra.mxu0 %v6499_v14  ;;  %v6620_v14 = vcombine.high %v758_v55, %v762_v12  ;;  %v858_v55 = vld [vmem:[#allocation2 + $0xeb0] sm:$0xff] }
 0x20c   : > { %3940 = vmatprep.subr.bf16.mxu0 %v6508_v15  ;;  %v766_v15 = vld [vmem:[#allocation2 + $0xbd0] sm:$0xff] }
 0x20d   : > { %v6627_v23 = vcombine.low %v766_v15, %v770_v16 }
 0x20e   : > { %3932 = vmatmul.mubr.bf16.vlgmr.msra.gmra.mrb[4].mxu0 %v7860_v33 }
 0x20f   : > { %3941 = vmatpush1.bf16.msra.mxu0 %v6507_v18  ;;  %3972 = vmatprep.mubr.bf16.mxu0 %v7868_v22  ;;  %v6628_v18 = vcombine.high %v766_v15, %v770_v16  ;;  %v866_v15 = vld [vmem:[#allocation2 + $0xef0] sm:$0xff] }
 0x210   : > { %3942 = vmatprep.subr.bf16.mxu0 %v6516_v20  ;;  %v774_v20 = vld [vmem:[#allocation2 + $0xc10] sm:$0xff] }
 0x211   : > { %v6635_v26 = vcombine.low %v774_v20, %v778_v21 }
 0x213   : > { %3943 = vmatpush1.bf16.msra.mxu0 %v6515_v24  ;;  %v6636_v24 = vcombine.high %v774_v20, %v778_v21  ;;  %v874_v20 = vld [vmem:[#allocation2 + $0xf30] sm:$0xff] }
 0x214   : > { %3944 = vmatprep.subr.bf16.mxu0 %v6524_v25  ;;  %v782_v25 = vld [vmem:[#allocation2 + $0xc50] sm:$0xff] }
 0x215   : > { %v6643_v30 = vcombine.low %v782_v25, %v786_v63 }
 0x217   : > { %3945 = vmatpush1.bf16.msra.mxu0 %v6523_v27  ;;  %v6644_v27 = vcombine.high %v782_v25, %v786_v63  ;;  %v878_v25 = vld [vmem:[#allocation2 + $0xf50] sm:$0xff] }
 0x218   : > { %3946 = vmatprep.subr.bf16.mxu0 %v6532_v28  ;;  %v790_v28 = vld [vmem:[#allocation2 + $0xc90] sm:$0xff] }
 0x219   : > { %v6651_v35 = vcombine.low %v790_v28, %v794_v29  ;;  %v882_v63 = vld [vmem:[#allocation2 + $0xf70] sm:$0xff] }
 0x21b   : > { %3947 = vmatpush1.bf16.msra.mxu0 %v6531_v31  ;;  %v6652_v31 = vcombine.high %v790_v28, %v794_v29  ;;  %v886_v29 = vld [vmem:[#allocation2 + $0xf90] sm:$0xff] }
 0x21c   : > { %3948 = vmatprep.subr.bf16.mxu0 %v6540_v32  ;;  %v798_v32 = vld [vmem:[#allocation2 + $0xcd0] sm:$0xff] }
 0x21d   : > { %v6659_v40 = vcombine.low %v798_v32, %v802_v34 }
 0x21f   : > { %3949 = vmatpush1.bf16.msra.mxu0 %v6539_v37  ;;  %v6660_v37 = vcombine.high %v798_v32, %v802_v34 }
 0x220   : > { %3950 = vmatprep.subr.bf16.mxu0 %v6548_v38  ;;  %v806_v38 = vld [vmem:[#allocation2 + $0xd10] sm:$0xff] }
 0x221   : > { %v6667_v44 = vcombine.low %v806_v38, %v810_v39 }
 0x223   : > { %3951 = vmatpush1.bf16.msra.mxu0 %v6547_v41  ;;  %v6668_v41 = vcombine.high %v806_v38, %v810_v39  ;;  %v7923_v38 = vld [vmem:[#allocation9] sm:$0xff] }
 0x224   : > { %3952 = vmatprep.subr.bf16.mxu0 %v6556_v42  ;;  %v814_v42 = vld [vmem:[#allocation2 + $0xd50] sm:$0xff] }
 0x225   : > { %v6675_v48 = vcombine.low %v814_v42, %v818_v43 }
 0x227   : > { %3953 = vmatpush1.bf16.msra.mxu0 %v6555_v45  ;;  %v6676_v45 = vcombine.high %v814_v42, %v818_v43  ;;  %v7162_v43 = vld [vmem:[#allocation4 + $0x4] ss:$16 sps:$4 sm:$0xff]  }
 0x228   : > { %3954 = vmatprep.subr.bf16.mxu0 %v6564_v46  ;;  %v822_v46 = vld [vmem:[#allocation2 + $0xd90] sm:$0xff] }
 0x22b   : > { %3955 = vmatpush1.bf16.msra.mxu0 %v6563_v49  ;;  %v6684_v49 = vcombine.high %v822_v46, %v826_v47 }
 0x22c   : > { %3956 = vmatprep.subr.bf16.mxu0 %v6572_v50 }
 0x22f   : > { %3957 = vmatpush1.bf16.msra.mxu0 %v6571_v56 }
 0x230   : > { %3958 = vmatprep.subr.bf16.mxu0 %v6580_v57 }
 0x233   : > { %3959 = vmatpush1.bf16.msra.mxu0 %v6579_v61  ;;  %v6683_v61 = vcombine.low %v822_v46, %v826_v47  ;;  %v7165_v46 = vld [vmem:[#allocation4 + $0x24] ss:$16 sps:$4 sm:$0xff]  }
 0x234   : > { %3960 = vmatprep.subr.bf16.mxu0 %v6588_v62 }
 0x237   : > { %3961 = vmatpush1.bf16.msra.mxu0 %v6587_v1 }
 0x238   : > { %3962 = vmatprep.subr.bf16.mxu0 %v6596_v2  ;;  %v838_v2 = vld [vmem:[#allocation2 + $0xe10] sm:$0xff] }
 0x239   : > { %v6699_v9 = vcombine.low %v838_v2, %v842_v3 }
 0x23b   : > { %3963 = vmatpush1.bf16.msra.mxu0 %v6595_v6  ;;  %v6700_v6 = vcombine.high %v838_v2, %v842_v3  ;;  %v7166_v3 = vld [vmem:[#allocation4 + $0x40] ss:$16 sps:$4 sm:$0xff]  }
 0x23c   : > { %3964 = vmatprep.subr.bf16.mxu0 %v6604_v7  ;;  %v846_v7 = vld [vmem:[#allocation2 + $0xe50] sm:$0xff] }
 0x23d   : > { %v6707_v12 = vcombine.low %v846_v7, %v850_v8 }
 0x23f   : > { %3965 = vmatpush1.bf16.msra.mxu0 %v6603_v10  ;;  %v6708_v10 = vcombine.high %v846_v7, %v850_v8  ;;  %v415_v7 = vld [vmem:[#allocation2 + $0xd8] sm:$0xff] }
 0x240   : > { %3966 = vmatprep.subr.bf16.mxu0 %v6612_v11  ;;  %v854_v11 = vld [vmem:[#allocation2 + $0xe90] sm:$0xff]  ;;  %v419_v8 = vld [vmem:[#allocation2 + $0xf8] sm:$0xff] }
 0x241   : > { %v6715_v16 = vcombine.low %v854_v11, %v858_v55 }
 0x243   : > { %3967 = vmatpush1.bf16.msra.mxu0 %v6611_v13  ;;  %v6716_v13 = vcombine.high %v854_v11, %v858_v55  ;;  %v6278_v11 = vcombine.high %v415_v7, %v419_v8  ;;  %v7174_v55 = vld [vmem:[#allocation4 + $0x84] ss:$16 sps:$4 sm:$0xff]  }
 0x244   : > { %3968 = vmatprep.subr.bf16.mxu0 %v6620_v14  ;;  %v862_v14 = vld [vmem:[#allocation2 + $0xed0] sm:$0xff] }
 0x245   : > { %v6723_v21 = vcombine.low %v862_v14, %v866_v15 }
 0x247   : > { %3969 = vmatpush1.bf16.msra.mxu0 %v6619_v17  ;;  %v6724_v17 = vcombine.high %v862_v14, %v866_v15  ;;  %v6277_v14 = vcombine.low %v415_v7, %v419_v8  ;;  %v7172_v15 = vld [vmem:[#allocation4 + $0x80] ss:$16 sps:$4 sm:$0xff]  }
 0x248   : > { %3970 = vmatprep.subr.bf16.mxu0 %v6628_v18  ;;  %v870_v18 = vld [vmem:[#allocation2 + $0xf10] sm:$0xff] }
 0x249   : > { %v7193_v7 = vld [vmem:[#allocation4 + $0x160] ss:$16 sps:$4 sm:$0xff]  }
 0x24b   : > { %3971 = vmatpush1.bf16.msra.mxu0 %v6627_v23  ;;  %v6732_v23 = vcombine.high %v870_v18, %v874_v20 }
 0x24c   : > { %3981 = vmatprep.subr.bf16.mxu0 %v6636_v24  ;;  %v383_v24 = vlaneseq }
 0x24e   : > { %3973 = vmatmul.mubr.bf16.vlgmr.msra.gmra.mrb[4].mxu0 %v7882_v52  ;;  %v7918_v28 = vshrl.u32 %v383_v24, 7 }
 0x24f   : > { %3982 = vmatpush1.bf16.msra.mxu0 %v6635_v26  ;;  %4013 = vmatprep.mubr.bf16.mxu0 %v7890_v36  ;;  %v6731_v26 = vcombine.low %v870_v18, %v874_v20  ;;  %v431_v18 = vld [vmem:[#allocation2 + $0x158] sm:$0xff] }
 0x250   : > { %3983 = vmatprep.subr.bf16.mxu0 %v6644_v27  ;;  %v6740_v27 = vcombine.high %v878_v25, %v882_v63  ;;  %v7921_v34 = vsub.s32 1, %v7918_v28  ;;  %v435_v20 = vld [vmem:[#allocation2 + $0x178] sm:$0xff]  ;;  %vm385_vm1 = vcmp.lt.s32.totalorder %v7918_v28, 2 }
 0x251   : > { %v6294_v24 = vcombine.high %v431_v18, %v435_v20 }
 0x253   : > { %3984 = vmatpush1.bf16.msra.mxu0 %v6643_v30  ;;  %v890_v30 = vld [vmem:[#allocation2 + $0xfb0] sm:$0xff] }
 0x254   : > { %3985 = vmatprep.subr.bf16.mxu0 %v6652_v31  ;;  %v6739_v31 = vcombine.low %v878_v25, %v882_v63  ;;  %v6748_v32 = vcombine.high %v886_v29, %v890_v30  ;;  %v6747_v39 = vcombine.low %v886_v29, %v890_v30  ;;  %v7180_v25 = vld [vmem:[#allocation4 + $0xc4] ss:$16 sps:$4 sm:$0xff]   ;;  %v439_v63 = vld [vmem:[#allocation2 + $0x198] sm:$0xff]  ;;  %v7178_v29 = vld [vmem:[#allocation4 + $0xc0] ss:$16 sps:$4 sm:$0xff]  }
 0x257   : > { %3986 = vmatpush1.bf16.msra.mxu0 %v6651_v35  ;;  %v894_v35 = vld [vmem:[#allocation2 + $0xfd0] sm:$0xff] }
 0x258   : > { %3987 = vmatprep.subr.bf16.mxu0 %v6660_v37  ;;  %v898_v37 = vld [vmem:[#allocation2 + $0xff0] sm:$0xff] }
 0x259   : > { %v6755_v42 = vcombine.low %v894_v35, %v898_v37 }
 0x25b   : > { %3988 = vmatpush1.bf16.msra.mxu0 %v6659_v40  ;;  %v6756_v40 = vcombine.high %v894_v35, %v898_v37  ;;  %v451_v35 = vld [vmem:[#allocation2 + $0x1f8] sm:$0xff] }
 0x25c   : > { %3989 = vmatprep.subr.bf16.mxu0 %v6668_v41  ;;  %v909_v41 = vrot.slane %v7923_v38, %v7921_v34 }
 0x25f   : > { %3990 = vmatpush1.bf16.msra.mxu0 %v6667_v44 }
 0x260   : > { %3991 = vmatprep.subr.bf16.mxu0 %v6676_v45  ;;  %v7160_v45 = vld [vmem:[#allocation4] ss:$16 sps:$4 sm:$0xff]  }
 0x261   : > { %v7910_v50 = vpop.f32.mrb[0].mxu0  ;;  %v7912_v56 = vpop.f32.mrb[0].mxu1 }
 0x262   : > { %v7914_v57 = vpop.f32.mrb[1].mxu0  ;;  %v7916_v58 = vpop.f32.mrb[1].mxu1 }
 0x263   : > { %v3691_v59 = vpop.f32.mrb[2].mxu0  ;;  %3992 = vmatpush1.bf16.msra.mxu0 %v6675_v48  ;;  %v3855_v62 = vpop.f32.mrb[2].mxu1  ;;  %v7023_v44 = vadd.f32 %v7914_v57, %v909_v41  ;;  %v391_v48 = vld [vmem:[#allocation2 + $0x18] sm:$0xff]  ;;  %v7186_v41 = vld [vmem:[#allocation4 + $0x104] ss:$16 sps:$4 sm:$0xff]  }
 0x264   : > { %v3692_v0 = vpop.f32.mrb[3].mxu0  ;;  %3993 = vmatprep.subr.bf16.mxu0 %v6684_v49  ;;  %v3856_v1 = vpop.f32.mrb[3].mxu1  ;;  %v395_v49 = vld [vmem:[#allocation2 + $0x38] sm:$0xff] }
 0x265   : > { %v4287_v47 = vpack.c.bf16 %v7023_v44, %v7023_v44  ;;  %v6253_v59 = vcombine.low %v391_v48, %v395_v49  ;;  %v403_v62 = vld [vmem:[#allocation2 + $0x78] sm:$0xff]  ;;  %v7168_v0 = vld [vmem:[#allocation4 + $0x44] ss:$16 sps:$4 sm:$0xff]  }
 0x266   : > { %v407_v57 = vld [vmem:[#allocation2 + $0x98] sm:$0xff]  ;;  %v6261_v2 = vcombine.low %v399_v53, %v403_v62 }
 0x267   : > { %3994 = vmatpush1.bf16.msra.mxu0 %v6683_v61  ;;  %v6254_v61 = vcombine.high %v391_v48, %v395_v49  ;;  %v411_v1 = vld [vmem:[#allocation2 + $0xb8] sm:$0xff] }
 0x268   : > { %3995 = vmatprep.subr.bf16.mxu0 %v6692_v51  ;;  %v6262_v51 = vcombine.high %v399_v53, %v403_v62  ;;  %v463_v48 = vld [vmem:[#allocation2 + $0x258] sm:$0xff] }
 0x269   : > { %4022 = vmatprep.subr.bf16.mxu1 %v6254_v61  ;;  %v467_v49 = vld [vmem:[#allocation2 + $0x278] sm:$0xff]  ;;  %v7192_v61 = vld [vmem:[#allocation4 + $0x144] ss:$16 sps:$4 sm:$0xff]  }
 0x26a   : > { %4023 = vmatpush1.bf16.msra.mxu1 %v6253_v59  ;;  %v6326_v59 = vcombine.high %v463_v48, %v467_v49  ;;  %v471_v62 = vld [vmem:[#allocation2 + $0x298] sm:$0xff] }
 0x26b   : > { %3996 = vmatpush1.bf16.msra.mxu0 %v6691_v5  ;;  %4024 = vmatprep.subr.bf16.mxu1 %v6262_v51  ;;  %v6270_v5 = vcombine.high %v407_v57, %v411_v1  ;;  %v6325_v51 = vcombine.low %v463_v48, %v467_v49  ;;  %v7213_v48 = vld [vmem:[#allocation4 + $0x224] ss:$16 sps:$4 sm:$0xff]  }
 0x26c   : > { %3997 = vmatprep.subr.bf16.mxu0 %v6700_v6  ;;  %v7171_v6 = vld [vmem:[#allocation4 + $0x64] ss:$16 sps:$4 sm:$0xff]  }
 0x26e   : > { %4025 = vmatpush1.bf16.msra.mxu1 %v6261_v2  ;;  %v7195_v2 = vld [vmem:[#allocation4 + $0x164] ss:$16 sps:$4 sm:$0xff]  }
 0x26f   : > { %3998 = vmatpush1.bf16.msra.mxu0 %v6699_v9  ;;  %v6269_v9 = vcombine.low %v407_v57, %v411_v1  ;;  %4026 = vmatprep.subr.bf16.mxu1 %v6270_v5  ;;  %v7190_v57 = vld [vmem:[#allocation4 + $0x140] ss:$16 sps:$4 sm:$0xff]   ;;  %v483_v5 = vld [vmem:[#allocation2 + $0x2f8] sm:$0xff] }
 0x270   : > { %3999 = vmatprep.subr.bf16.mxu0 %v6708_v10  ;;  %v7169_v10 = vld [vmem:[#allocation4 + $0x60] ss:$16 sps:$4 sm:$0xff]  }
 0x272   : > { %4027 = vmatpush1.bf16.msra.mxu1 %v6269_v9  ;;  %v7198_v9 = vld [vmem:[#allocation4 + $0x184] ss:$16 sps:$4 sm:$0xff]  }
 0x273   : > { %4000 = vmatpush1.bf16.msra.mxu0 %v6707_v12  ;;  %v423_v12 = vld [vmem:[#allocation2 + $0x118] sm:$0xff]  ;;  %4028 = vmatprep.subr.bf16.mxu1 %v6278_v11 }
 0x274   : > { %4001 = vmatprep.subr.bf16.mxu0 %v6716_v13  ;;  %v427_v13 = vld [vmem:[#allocation2 + $0x138] sm:$0xff] }
 0x275   : > { %v491_v11 = vld [vmem:[#allocation2 + $0x338] sm:$0xff] }
 0x276   : > { %4029 = vmatpush1.bf16.msra.mxu1 %v6277_v14  ;;  %v7201_v14 = vld [vmem:[#allocation4 + $0x1a4] ss:$16 sps:$4 sm:$0xff]  }
 0x277   : > { %4002 = vmatpush1.bf16.msra.mxu0 %v6715_v16  ;;  %v6286_v16 = vcombine.high %v423_v12, %v427_v13 }
 0x278   : > { %4003 = vmatprep.subr.bf16.mxu0 %v6724_v17  ;;  %v7177_v17 = vld [vmem:[#allocation4 + $0xa4] ss:$16 sps:$4 sm:$0xff]  }
 0x279   : > { %4030 = vmatprep.subr.bf16.mxu1 %v6286_v16  ;;  %v499_v16 = vld [vmem:[#allocation2 + $0x378] sm:$0xff] }
 0x27b   : > { %4004 = vmatpush1.bf16.msra.mxu0 %v6723_v21  ;;  %v6285_v21 = vcombine.low %v423_v12, %v427_v13  ;;  %v7196_v12 = vld [vmem:[#allocation4 + $0x180] ss:$16 sps:$4 sm:$0xff]  }
 0x27c   : > { %4005 = vmatprep.subr.bf16.mxu0 %v6732_v23  ;;  %v7175_v23 = vld [vmem:[#allocation4 + $0xa0] ss:$16 sps:$4 sm:$0xff]  }
 0x27d   : > { %4031 = vmatpush1.bf16.msra.mxu1 %v6285_v21  ;;  %v7930_v21 = vsub.s32 0, %v7918_v28 }
 0x27e   : > { %4032 = vmatprep.subr.bf16.mxu1 %v6294_v24  ;;  %v503_v24 = vld [vmem:[#allocation2 + $0x398] sm:$0xff] }
 0x27f   : > { %4006 = vmatpush1.bf16.msra.mxu0 %v6731_v26  ;;  %v443_v26 = vld [vmem:[#allocation2 + $0x1b8] sm:$0xff] }
 0x280   : > { %4007 = vmatprep.subr.bf16.mxu0 %v6740_v27  ;;  %v6293_v27 = vcombine.low %v431_v18, %v435_v20  ;;  %v6302_v30 = vcombine.high %v439_v63, %v443_v26  ;;  %v6301_v37 = vcombine.low %v439_v63, %v443_v26  ;;  %v7199_v18 = vld [vmem:[#allocation4 + $0x1a0] ss:$16 sps:$4 sm:$0xff]   ;;  %v916_v63 = vsub.s32 3, %v7918_v28 }
 0x282   : > { %4033 = vmatpush1.bf16.msra.mxu1 %v6293_v27  ;;  %v7202_v27 = vld [vmem:[#allocation4 + $0x1c0] ss:$16 sps:$4 sm:$0xff]  }
 0x283   : > { %4008 = vmatpush1.bf16.msra.mxu0 %v6739_v31  ;;  %v7183_v31 = vld [vmem:[#allocation4 + $0xe4] ss:$16 sps:$4 sm:$0xff]   ;;  %4034 = vmatprep.subr.bf16.mxu1 %v6302_v30  ;;  %v905_v30 = vrot.slane %v7923_v38, %v7930_v21 }
 0x284   : > { %4009 = vmatprep.subr.bf16.mxu0 %v6748_v32  ;;  %v447_v32 = vld [vmem:[#allocation2 + $0x1d8] sm:$0xff] }
 0x285   : > { %v6309_v44 = vcombine.low %v447_v32, %v451_v35 }
 0x286   : > { %4035 = vmatpush1.bf16.msra.mxu1 %v6301_v37  ;;  %v917_v37 = vrot.slane %v7923_v38, %v916_v63 }
 0x287   : > { %4010 = vmatpush1.bf16.msra.mxu0 %v6747_v39  ;;  %v7181_v39 = vld [vmem:[#allocation4 + $0xe0] ss:$16 sps:$4 sm:$0xff]  }
 0x288   : > { %4011 = vmatprep.subr.bf16.mxu0 %v6756_v40  ;;  %v6310_v40 = vcombine.high %v447_v32, %v451_v35  ;;  %v511_v32 = vld [vmem:[#allocation2 + $0x3d8] sm:$0xff] }
 0x289   : > { %v515_v35 = vld [vmem:[#allocation2 + $0x3f8] sm:$0xff] }
 0x28a   : > { %4036 = vmatprep.subr.bf16.mxu1 %v6310_v40  ;;  %v7205_v40 = vld [vmem:[#allocation4 + $0x1e0] ss:$16 sps:$4 sm:$0xff]  }
 0x28b   : > { %4012 = vmatpush1.bf16.msra.mxu0 %v6755_v42  ;;  %v455_v42 = vld [vmem:[#allocation2 + $0x218] sm:$0xff]  ;;  %4037 = vmatpush1.bf16.msra.mxu1 %v6309_v44  ;;  %v7025_v44 = vadd.f32 %v7916_v58, %v917_v37  ;;  %v7214_v58 = vld [vmem:[#allocation4 + $0x240] ss:$16 sps:$4 sm:$0xff]  }
 0x28c   : > { %4621 = vmatprep.subr.bf16.mxu0 %v7162_v43  ;;  %v459_v43 = vld [vmem:[#allocation2 + $0x238] sm:$0xff] }
 0x28d   : > { %v6317_v53 = vcombine.low %v455_v42, %v459_v43  ;;  %v4289_v49 = vpack.c.bf16 %v7025_v44, %v7025_v44  ;;  %v571_v37 = vld [vmem:[#allocation2 + $0x5b8] sm:$0xff] }
 0x28e   : > { %4014 = vmatmul.mubr.bf16.vlgmr.msra.gmra.mrb[4].mxu0 %v7898_v4  ;;  %v579_v44 = vld [vmem:[#allocation2 + $0x5f8] sm:$0xff] }
 0x28f   : > { %4622 = vmatpush1.bf16.msra.mxu0 %v7160_v45  ;;  %4653 = vmatprep.mubr.bf16.mxu0 %v4287_v47  ;;  %v7184_v45 = vld [vmem:[#allocation4 + $0x100] ss:$16 sps:$4 sm:$0xff]   ;;  %v7189_v47 = vld [vmem:[#allocation4 + $0x124] ss:$16 sps:$4 sm:$0xff]  }
 0x290   : > { %4623 = vmatprep.subr.bf16.mxu0 %v7165_v46  ;;  %v6318_v46 = vcombine.high %v455_v42, %v459_v43  ;;  %v7022_v42 = vadd.f32 %v7910_v50, %v905_v30  ;;  %v7210_v43 = vld [vmem:[#allocation4 + $0x204] ss:$16 sps:$4 sm:$0xff]  }
 0x291   : > { %v7216_v50 = vld [vmem:[#allocation4 + $0x244] ss:$16 sps:$4 sm:$0xff]  }
 0x292   : > { %4038 = vmatprep.subr.bf16.mxu1 %v6318_v46  ;;  %v7208_v46 = vld [vmem:[#allocation4 + $0x200] ss:$16 sps:$4 sm:$0xff]   ;;  %v7240_v30 = vld [vmem:[#allocation4 + $0x344] ss:$16 sps:$4 sm:$0xff]  }
 0x293   : > { %4624 = vmatpush1.bf16.msra.mxu0 %v7163_v54  ;;  %v7187_v54 = vld [vmem:[#allocation4 + $0x120] ss:$16 sps:$4 sm:$0xff]   ;;  %4039 = vmatpush1.bf16.msra.mxu1 %v6317_v53 }
 0x294   : > { %4625 = vmatprep.subr.bf16.mxu0 %v7168_v0  ;;  %v475_v0 = vld [vmem:[#allocation2 + $0x2b8] sm:$0xff]  ;;  %4040 = vmatprep.subr.bf16.mxu1 %v6326_v59  ;;  %v7211_v53 = vld [vmem:[#allocation4 + $0x220] ss:$16 sps:$4 sm:$0xff]  }
 0x295   : > { %v6334_v1 = vcombine.high %v471_v62, %v475_v0  ;;  %v7217_v59 = vld [vmem:[#allocation4 + $0x260] ss:$16 sps:$4 sm:$0xff]  }
 0x297   : > { %4626 = vmatpush1.bf16.msra.mxu0 %v7166_v3  ;;  %v479_v3 = vld [vmem:[#allocation2 + $0x2d8] sm:$0xff]  ;;  %4041 = vmatpush1.bf16.msra.mxu1 %v6325_v51  ;;  %v7223_v51 = vld [vmem:[#allocation4 + $0x2a0] ss:$16 sps:$4 sm:$0xff]  }
 0x298   : > { %4627 = vmatprep.subr.bf16.mxu0 %v7171_v6  ;;  %v6333_v6 = vcombine.low %v471_v62, %v475_v0  ;;  %4042 = vmatprep.subr.bf16.mxu1 %v6334_v1  ;;  %v6342_v8 = vcombine.high %v479_v3, %v483_v5  ;;  %v7220_v62 = vld [vmem:[#allocation4 + $0x280] ss:$16 sps:$4 sm:$0xff]   ;;  %v7225_v0 = vld [vmem:[#allocation4 + $0x2a4] ss:$16 sps:$4 sm:$0xff]   ;;  %v519_v1 = vld [vmem:[#allocation2 + $0x418] sm:$0xff] }
 0x29b   : > { %4628 = vmatpush1.bf16.msra.mxu0 %v7169_v10  ;;  %v487_v10 = vld [vmem:[#allocation2 + $0x318] sm:$0xff]  ;;  %4043 = vmatpush1.bf16.msra.mxu1 %v6333_v6 }
 0x29c   : > { %4629 = vmatprep.subr.bf16.mxu0 %v7174_v55  ;;  %v6341_v55 = vcombine.low %v479_v3, %v483_v5  ;;  %4044 = vmatprep.subr.bf16.mxu1 %v6342_v8  ;;  %v6350_v13 = vcombine.high %v487_v10, %v491_v11  ;;  %v7226_v3 = vld [vmem:[#allocation4 + $0x2c0] ss:$16 sps:$4 sm:$0xff]   ;;  %v7231_v5 = vld [vmem:[#allocation4 + $0x2e4] ss:$16 sps:$4 sm:$0xff]   ;;  %v527_v6 = vld [vmem:[#allocation2 + $0x458] sm:$0xff] }
 0x29f   : > { %4630 = vmatpush1.bf16.msra.mxu0 %v7172_v15  ;;  %v495_v15 = vld [vmem:[#allocation2 + $0x358] sm:$0xff]  ;;  %4045 = vmatpush1.bf16.msra.mxu1 %v6341_v55 }
 0x2a0   : > { %4631 = vmatprep.subr.bf16.mxu0 %v7177_v17  ;;  %v6349_v17 = vcombine.low %v487_v10, %v491_v11  ;;  %4046 = vmatprep.subr.bf16.mxu1 %v6350_v13  ;;  %v6358_v20 = vcombine.high %v495_v15, %v499_v16  ;;  %v6357_v26 = vcombine.low %v495_v15, %v499_v16  ;;  %v535_v10 = vld [vmem:[#allocation2 + $0x498] sm:$0xff]  ;;  %v7234_v15 = vld [vmem:[#allocation4 + $0x304] ss:$16 sps:$4 sm:$0xff]  }
 0x2a1   : > { %v539_v11 = vld [vmem:[#allocation2 + $0x4b8] sm:$0xff] }
 0x2a2   : > { %v6398_v55 = vcombine.high %v535_v10, %v539_v11  ;;  %v547_v13 = vld [vmem:[#allocation2 + $0x4f8] sm:$0xff]  ;;  %v6397_v16 = vcombine.low %v535_v10, %v539_v11  ;;  %v7253_v11 = vld [vmem:[#allocation4 + $0x3e0] ss:$16 sps:$4 sm:$0xff]  }
 0x2a3   : > { %4632 = vmatpush1.bf16.msra.mxu0 %v7175_v23  ;;  %v7204_v23 = vld [vmem:[#allocation4 + $0x1c4] ss:$16 sps:$4 sm:$0xff]   ;;  %4047 = vmatpush1.bf16.msra.mxu1 %v6349_v17  ;;  %v611_v10 = vld [vmem:[#allocation2 + $0x6f8] sm:$0xff] }
 0x2a4   : > { %4633 = vmatprep.subr.bf16.mxu0 %v7180_v25  ;;  %v507_v25 = vld [vmem:[#allocation2 + $0x3b8] sm:$0xff]  ;;  %4048 = vmatprep.subr.bf16.mxu1 %v6358_v20 }
 0x2a5   : > { %v555_v20 = vld [vmem:[#allocation2 + $0x538] sm:$0xff] }
 0x2a7   : > { %4634 = vmatpush1.bf16.msra.mxu0 %v7178_v29  ;;  %v6366_v29 = vcombine.high %v503_v24, %v507_v25  ;;  %4049 = vmatpush1.bf16.msra.mxu1 %v6357_v26  ;;  %v559_v26 = vld [vmem:[#allocation2 + $0x558] sm:$0xff] }
 0x2a8   : > { %4635 = vmatprep.subr.bf16.mxu0 %v7183_v31  ;;  %v7207_v31 = vld [vmem:[#allocation4 + $0x1e4] ss:$16 sps:$4 sm:$0xff]  }
 0x2a9   : > { %4050 = vmatprep.subr.bf16.mxu1 %v6366_v29  ;;  %v7235_v29 = vld [vmem:[#allocation4 + $0x320] ss:$16 sps:$4 sm:$0xff]  }
 0x2ab   : > { %4636 = vmatpush1.bf16.msra.mxu0 %v7181_v39  ;;  %v6365_v39 = vcombine.low %v503_v24, %v507_v25  ;;  %v7237_v24 = vld [vmem:[#allocation4 + $0x324] ss:$16 sps:$4 sm:$0xff]  }
 0x2ac   : > { %4637 = vmatprep.subr.bf16.mxu0 %v7186_v41  ;;  %v6374_v41 = vcombine.high %v511_v32, %v515_v35 }
 0x2ad   : > { %4051 = vmatpush1.bf16.msra.mxu1 %v6365_v39  ;;  %v7238_v39 = vld [vmem:[#allocation4 + $0x340] ss:$16 sps:$4 sm:$0xff]  }
 0x2ae   : > { %4052 = vmatprep.subr.bf16.mxu1 %v6374_v41 }
 0x2af   : > { %4638 = vmatpush1.bf16.msra.mxu0 %v7184_v45  ;;  %v6373_v45 = vcombine.low %v511_v32, %v515_v35  ;;  %v567_v35 = vld [vmem:[#allocation2 + $0x598] sm:$0xff] }
 0x2b0   : > { %4639 = vmatprep.subr.bf16.mxu0 %v7189_v47  ;;  %v4286_v47 = vpack.c.bf16 %v7022_v42, %v7022_v42  ;;  %v6430_v42 = vcombine.high %v567_v35, %v571_v37 }
 0x2b1   : > { %4053 = vmatpush1.bf16.msra.mxu1 %v6373_v45  ;;  %v7241_v45 = vld [vmem:[#allocation4 + $0x360] ss:$16 sps:$4 sm:$0xff]  }
 0x2b3   : > { %4640 = vmatpush1.bf16.msra.mxu0 %v7187_v54  ;;  %v7219_v54 = vld [vmem:[#allocation4 + $0x264] ss:$16 sps:$4 sm:$0xff]  }
 0x2b4   : > { %4641 = vmatprep.subr.bf16.mxu0 %v7192_v61  ;;  %4055 = vmatmul.mubr.bf16.vlgmr.msra.gmra.mrb[4].mxu1 %v7838_v19  ;;  %v7222_v61 = vld [vmem:[#allocation4 + $0x284] ss:$16 sps:$4 sm:$0xff]   ;;  %v523_v19 = vld [vmem:[#allocation2 + $0x438] sm:$0xff] }
 0x2b5   : > { %4095 = vmatprep.mubr.bf16.mxu1 %v7846_v60  ;;  %v6381_v60 = vcombine.low %v519_v1, %v523_v19 }
 0x2b7   : > { %4642 = vmatpush1.bf16.msra.mxu0 %v7190_v57  ;;  %v7228_v57 = vld [vmem:[#allocation4 + $0x2c4] ss:$16 sps:$4 sm:$0xff]  }
 0x2b8   : > { %4643 = vmatprep.subr.bf16.mxu0 %v7195_v2  ;;  %v6382_v2 = vcombine.high %v519_v1, %v523_v19 }
 0x2ba   : > { %4063 = vmatprep.subr.bf16.mxu1 %v6382_v2  ;;  %v599_v2 = vld [vmem:[#allocation2 + $0x698] sm:$0xff] }
 0x2bb   : > { %4644 = vmatpush1.bf16.msra.mxu0 %v7193_v7  ;;  %4064 = vmatpush1.bf16.msra.mxu1 %v6381_v60  ;;  %v531_v7 = vld [vmem:[#allocation2 + $0x478] sm:$0xff] }
 0x2bc   : > { %4645 = vmatprep.subr.bf16.mxu0 %v7198_v9  ;;  %v6389_v8 = vcombine.low %v527_v6, %v531_v7  ;;  %v6390_v9 = vcombine.high %v527_v6, %v531_v7  ;;  %v603_v60 = vld [vmem:[#allocation2 + $0x6b8] sm:$0xff]  ;;  %v7255_v6 = vld [vmem:[#allocation4 + $0x3e4] ss:$16 sps:$4 sm:$0xff]  }
 0x2be   : > { %4065 = vmatprep.subr.bf16.mxu1 %v6390_v9  ;;  %v607_v9 = vld [vmem:[#allocation2 + $0x6d8] sm:$0xff] }
 0x2bf   : > { %4646 = vmatpush1.bf16.msra.mxu0 %v7196_v12  ;;  %v543_v12 = vld [vmem:[#allocation2 + $0x4d8] sm:$0xff]  ;;  %4066 = vmatpush1.bf16.msra.mxu1 %v6389_v8  ;;  %v6462_v8 = vcombine.high %v599_v2, %v603_v60 }
 0x2c0   : > { %4647 = vmatprep.subr.bf16.mxu0 %v7201_v14  ;;  %v7229_v14 = vld [vmem:[#allocation4 + $0x2e0] ss:$16 sps:$4 sm:$0xff]   ;;  %4067 = vmatprep.subr.bf16.mxu1 %v6398_v55  ;;  %v6406_v17 = vcombine.high %v543_v12, %v547_v13  ;;  %v6405_v25 = vcombine.low %v543_v12, %v547_v13  ;;  %v6461_v12 = vcombine.low %v599_v2, %v603_v60  ;;  %v703_v2 = vld [vmem:[#allocation2 + $0x9d8] sm:$0xff] }
 0x2c1   : > { %v6470_v13 = vcombine.high %v607_v9, %v611_v10  ;;  %v707_v60 = vld [vmem:[#allocation2 + $0x9f8] sm:$0xff] }
 0x2c3   : > { %4648 = vmatpush1.bf16.msra.mxu0 %v7199_v18  ;;  %v551_v18 = vld [vmem:[#allocation2 + $0x518] sm:$0xff]  ;;  %4068 = vmatpush1.bf16.msra.mxu1 %v6397_v16  ;;  %v6469_v16 = vcombine.low %v607_v9, %v611_v10 }
 0x2c4   : > { %4649 = vmatprep.subr.bf16.mxu0 %v7204_v23  ;;  %v7232_v23 = vld [vmem:[#allocation4 + $0x300] ss:$16 sps:$4 sm:$0xff]   ;;  %4069 = vmatprep.subr.bf16.mxu1 %v6406_v17  ;;  %v6414_v63 = vcombine.high %v551_v18, %v555_v20  ;;  %v719_v10 = vld [vmem:[#allocation2 + $0xa58] sm:$0xff] }
 0x2c7   : > { %4650 = vmatpush1.bf16.msra.mxu0 %v7202_v27  ;;  %v563_v27 = vld [vmem:[#allocation2 + $0x578] sm:$0xff]  ;;  %4070 = vmatpush1.bf16.msra.mxu1 %v6405_v25 }
 0x2c8   : > { %4651 = vmatprep.subr.bf16.mxu0 %v7207_v31  ;;  %v6413_v31 = vcombine.low %v551_v18, %v555_v20  ;;  %4071 = vmatprep.subr.bf16.mxu1 %v6414_v63  ;;  %v6422_v32 = vcombine.high %v559_v26, %v563_v27  ;;  %v6421_v41 = vcombine.low %v559_v26, %v563_v27  ;;  %v623_v18 = vld [vmem:[#allocation2 + $0x758] sm:$0xff] }
 0x2c9   : > { %v627_v20 = vld [vmem:[#allocation2 + $0x778] sm:$0xff] }
 0x2ca   : > { %v635_v25 = vld [vmem:[#allocation2 + $0x7b8] sm:$0xff]  ;;  %v6485_v63 = vcombine.low %v623_v18, %v627_v20 }
 0x2cb   : > { %4652 = vmatpush1.bf16.msra.mxu0 %v7205_v40  ;;  %v7243_v40 = vld [vmem:[#allocation4 + $0x364] ss:$16 sps:$4 sm:$0xff]   ;;  %4072 = vmatpush1.bf16.msra.mxu1 %v6413_v31  ;;  %v639_v27 = vld [vmem:[#allocation2 + $0x7d8] sm:$0xff] }
 0x2cc   : > { %4662 = vmatprep.subr.bf16.mxu0 %v7210_v43  ;;  %4073 = vmatprep.subr.bf16.mxu1 %v6422_v32  ;;  %v575_v43 = vld [vmem:[#allocation2 + $0x5d8] sm:$0xff] }
 0x2cd   : > { %v647_v32 = vld [vmem:[#allocation2 + $0x818] sm:$0xff] }
 0x2ce   : > { %4654 = vmatmul.mubr.bf16.vlgmr.msra.gmra.mrb[8].mxu0 %v4286_v47  ;;  %v6429_v47 = vcombine.low %v567_v35, %v571_v37  ;;  %v651_v35 = vld [vmem:[#allocation2 + $0x838] sm:$0xff] }
 0x2cf   : > { %4663 = vmatpush1.bf16.msra.mxu0 %v7208_v46  ;;  %4694 = vmatprep.mubr.bf16.mxu0 %v4289_v49  ;;  %v7246_v46 = vld [vmem:[#allocation4 + $0x384] ss:$16 sps:$4 sm:$0xff]   ;;  %v583_v49 = vld [vmem:[#allocation2 + $0x618] sm:$0xff] }
 0x2d0   : > { %4664 = vmatprep.subr.bf16.mxu0 %v7213_v48  ;;  %4074 = vmatpush1.bf16.msra.mxu1 %v6421_v41  ;;  %v6438_v48 = vcombine.high %v575_v43, %v579_v44  ;;  %v659_v41 = vld [vmem:[#allocation2 + $0x878] sm:$0xff] }
 0x2d1   : > { %4075 = vmatprep.subr.bf16.mxu1 %v6430_v42  ;;  %v6509_v42 = vcombine.low %v647_v32, %v651_v35 }
 0x2d3   : > { %4665 = vmatpush1.bf16.msra.mxu0 %v7211_v53  ;;  %v587_v53 = vld [vmem:[#allocation2 + $0x638] sm:$0xff] }
 0x2d4   : > { %4666 = vmatprep.subr.bf16.mxu0 %v7216_v50  ;;  %v7244_v50 = vld [vmem:[#allocation4 + $0x380] ss:$16 sps:$4 sm:$0xff]   ;;  %4076 = vmatpush1.bf16.msra.mxu1 %v6429_v47  ;;  %v6445_v1 = vcombine.low %v583_v49, %v587_v53 }
 0x2d5   : > { %4077 = vmatprep.subr.bf16.mxu1 %v6438_v48  ;;  %v671_v48 = vld [vmem:[#allocation2 + $0x8d8] sm:$0xff] }
 0x2d7   : > { %4667 = vmatpush1.bf16.msra.mxu0 %v7214_v58  ;;  %v7249_v58 = vld [vmem:[#allocation4 + $0x3a4] ss:$16 sps:$4 sm:$0xff]  }
 0x2d8   : > { %4668 = vmatprep.subr.bf16.mxu0 %v7219_v54  ;;  %v6437_v54 = vcombine.low %v575_v43, %v579_v44  ;;  %v663_v44 = vld [vmem:[#allocation2 + $0x898] sm:$0xff] }
 0x2da   : > { %4078 = vmatpush1.bf16.msra.mxu1 %v6437_v54  ;;  %v683_v54 = vld [vmem:[#allocation2 + $0x938] sm:$0xff] }
 0x2db   : > { %4669 = vmatpush1.bf16.msra.mxu0 %v7217_v59  ;;  %v6446_v59 = vcombine.high %v583_v49, %v587_v53  ;;  %v675_v49 = vld [vmem:[#allocation2 + $0x8f8] sm:$0xff] }
 0x2dc   : > { %4670 = vmatprep.subr.bf16.mxu0 %v7222_v61  ;;  %v591_v61 = vld [vmem:[#allocation2 + $0x658] sm:$0xff] }
 0x2dd   : > { %4079 = vmatprep.subr.bf16.mxu1 %v6446_v59  ;;  %v6533_v59 = vcombine.low %v671_v48, %v675_v49 }
 0x2de   : > { %4080 = vmatpush1.bf16.msra.mxu1 %v6445_v1 }
 0x2df   : > { %4671 = vmatpush1.bf16.msra.mxu0 %v7220_v62  ;;  %v595_v62 = vld [vmem:[#allocation2 + $0x678] sm:$0xff] }
 0x2e0   : > { %4672 = vmatprep.subr.bf16.mxu0 %v7225_v0  ;;  %v7247_v0 = vld [vmem:[#allocation4 + $0x3a0] ss:$16 sps:$4 sm:$0xff]   ;;  %v6454_v19 = vcombine.high %v591_v61, %v595_v62  ;;  %v6453_v7 = vcombine.low %v591_v61, %v595_v62  ;;  %v687_v62 = vld [vmem:[#allocation2 + $0x958] sm:$0xff] }
 0x2e2   : > { %4081 = vmatprep.subr.bf16.mxu1 %v6454_v19 }
 0x2e3   : > { %4673 = vmatpush1.bf16.msra.mxu0 %v7223_v51  ;;  %v912_v51 = vsub.s32 2, %v7918_v28  ;;  %4082 = vmatpush1.bf16.msra.mxu1 %v6453_v7  ;;  %v715_v7 = vld [vmem:[#allocation2 + $0xa38] sm:$0xff] }
 0x2e4   : > { %4674 = vmatprep.subr.bf16.mxu0 %v7228_v57  ;;  %v7252_v57 = vld [vmem:[#allocation4 + $0x3c4] ss:$16 sps:$4 sm:$0xff]   ;;  %4083 = vmatprep.subr.bf16.mxu1 %v6462_v8  ;;  %v6565_v8 = vcombine.low %v703_v2, %v707_v60 }
 0x2e7   : > { %4675 = vmatpush1.bf16.msra.mxu0 %v7226_v3  ;;  %v7250_v3 = vld [vmem:[#allocation4 + $0x3c0] ss:$16 sps:$4 sm:$0xff]   ;;  %4084 = vmatpush1.bf16.msra.mxu1 %v6461_v12 }
 0x2e8   : > { %4676 = vmatprep.subr.bf16.mxu0 %v7231_v5  ;;  %v913_v5 = vrot.slane %v7923_v38, %v912_v51  ;;  %4085 = vmatprep.subr.bf16.mxu1 %v6470_v13  ;;  %v695_v51 = vld [vmem:[#allocation2 + $0x998] sm:$0xff] }
 0x2e9   : > { %v727_v13 = vld [vmem:[#allocation2 + $0xa98] sm:$0xff] }
 0x2ea   : > { %v7024_v55 = vadd.f32 %v7912_v56, %v913_v5  ;;  %v6486_v56 = vcombine.high %v623_v18, %v627_v20  ;;  %v6566_v5 = vcombine.high %v703_v2, %v707_v60  ;;  %v815_v60 = vld [vmem:[#allocation2 + $0xd58] sm:$0xff] }
 0x2eb   : > { %4677 = vmatpush1.bf16.msra.mxu0 %v7229_v14  ;;  %v615_v14 = vld [vmem:[#allocation2 + $0x718] sm:$0xff]  ;;  %4086 = vmatpush1.bf16.msra.mxu1 %v6469_v16 }
 0x2ec   : > { %4678 = vmatprep.subr.bf16.mxu0 %v7234_v15  ;;  %v619_v15 = vld [vmem:[#allocation2 + $0x738] sm:$0xff]  ;;  %v4288_v38 = vpack.c.bf16 %v7024_v55, %v7024_v55 }
 0x2ed   : > { %v6478_v17 = vcombine.high %v615_v14, %v619_v15  ;;  %v735_v16 = vld [vmem:[#allocation2 + $0xad8] sm:$0xff] }
 0x2ef   : > { %4679 = vmatpush1.bf16.msra.mxu0 %v7232_v23  ;;  %v6477_v23 = vcombine.low %v615_v14, %v619_v15  ;;  %4087 = vmatprep.subr.bf16.mxu1 %v6478_v17  ;;  %v731_v14 = vld [vmem:[#allocation2 + $0xab8] sm:$0xff] }
 0x2f0   : > { %4680 = vmatprep.subr.bf16.mxu0 %v7237_v24  ;;  %v631_v24 = vld [vmem:[#allocation2 + $0x798] sm:$0xff]  ;;  %v6589_v18 = vcombine.low %v727_v13, %v731_v14 }
 0x2f1   : > { %4088 = vmatpush1.bf16.msra.mxu1 %v6477_v23  ;;  %v6494_v26 = vcombine.high %v631_v24, %v635_v25  ;;  %v739_v17 = vld [vmem:[#allocation2 + $0xaf8] sm:$0xff] }
 0x2f2   : > { %4089 = vmatprep.subr.bf16.mxu1 %v6486_v56  ;;  %v6598_v20 = vcombine.high %v735_v16, %v739_v17  ;;  %v743_v23 = vld [vmem:[#allocation2 + $0xb18] sm:$0xff] }
 0x2f3   : > { %4681 = vmatpush1.bf16.msra.mxu0 %v7235_v29  ;;  %v643_v29 = vld [vmem:[#allocation2 + $0x7f8] sm:$0xff] }
 0x2f4   : > { %4682 = vmatprep.subr.bf16.mxu0 %v7240_v30  ;;  %v6493_v30 = vcombine.low %v631_v24, %v635_v25  ;;  %v6502_v31 = vcombine.high %v639_v27, %v643_v29  ;;  %v6501_v37 = vcombine.low %v639_v27, %v643_v29  ;;  %v747_v56 = vld [vmem:[#allocation2 + $0xb38] sm:$0xff]  ;;  %v6597_v24 = vcombine.low %v735_v16, %v739_v17 }
 0x2f5   : > { %4090 = vmatpush1.bf16.msra.mxu1 %v6485_v63  ;;  %v6606_v25 = vcombine.high %v743_v23, %v747_v56  ;;  %v751_v63 = vld [vmem:[#allocation2 + $0xb58] sm:$0xff]  ;;  %v6605_v27 = vcombine.low %v743_v23, %v747_v56  ;;  %v7256_v56 = vld [vmem:[#allocation7 + $0xc0] ss:$12 sps:$4 sm:$0xff]  }
 0x2f6   : > { %4091 = vmatprep.subr.bf16.mxu1 %v6494_v26  ;;  %v755_v26 = vld [vmem:[#allocation2 + $0xb78] sm:$0xff] }
 0x2f7   : > { %4683 = vmatpush1.bf16.msra.mxu0 %v7238_v39  ;;  %v6510_v39 = vcombine.high %v647_v32, %v651_v35  ;;  %v6614_v29 = vcombine.high %v751_v63, %v755_v26  ;;  %v6613_v32 = vcombine.low %v751_v63, %v755_v26  ;;  %v847_v17 = vld [vmem:[#allocation2 + $0xe58] sm:$0xff]  ;;  %v7257_v26 = vld [vmem:[#allocation7] ss:$12 sps:$4 sm:$0xff]  }
 0x2f8   : > { %4684 = vmatprep.subr.bf16.mxu0 %v7243_v40  ;;  %v655_v40 = vld [vmem:[#allocation2 + $0x858] sm:$0xff] }
 0x2f9   : > { %4092 = vmatpush1.bf16.msra.mxu1 %v6493_v30  ;;  %v6518_v43 = vcombine.high %v655_v40, %v659_v41  ;;  %v759_v30 = vld [vmem:[#allocation2 + $0xb98] sm:$0xff] }
 0x2fa   : > { %4093 = vmatprep.subr.bf16.mxu1 %v6502_v31  ;;  %v763_v31 = vld [vmem:[#allocation2 + $0xbb8] sm:$0xff] }
 0x2fb   : > { %4685 = vmatpush1.bf16.msra.mxu0 %v7241_v45  ;;  %v667_v45 = vld [vmem:[#allocation2 + $0x8b8] sm:$0xff]  ;;  %v6622_v35 = vcombine.high %v759_v30, %v763_v31 }
 0x2fc   : > { %4686 = vmatprep.subr.bf16.mxu0 %v7246_v46  ;;  %v6517_v46 = vcombine.low %v655_v40, %v659_v41  ;;  %v6526_v47 = vcombine.high %v663_v44, %v667_v45  ;;  %v6525_v53 = vcombine.low %v663_v44, %v667_v45  ;;  %v6621_v40 = vcombine.low %v759_v30, %v763_v31  ;;  %v779_v44 = vld [vmem:[#allocation2 + $0xc38] sm:$0xff] }
 0x2fd   : > { %4094 = vmatpush1.bf16.msra.mxu1 %v6501_v37  ;;  %v767_v37 = vld [vmem:[#allocation2 + $0xbd8] sm:$0xff] }
 0x2fe   : > { %4104 = vmatprep.subr.bf16.mxu1 %v6510_v39  ;;  %v771_v39 = vld [vmem:[#allocation2 + $0xbf8] sm:$0xff] }
 0x2ff   : > { %4687 = vmatpush1.bf16.msra.mxu0 %v7244_v50  ;;  %v6534_v50 = vcombine.high %v671_v48, %v675_v49  ;;  %v6630_v41 = vcombine.high %v767_v37, %v771_v39  ;;  %v863_v30 = vld [vmem:[#allocation2 + $0xed8] sm:$0xff] }
 0x300   : > { %4688 = vmatprep.subr.bf16.mxu0 %v7249_v58  ;;  %4096 = vmatmul.mubr.bf16.vlgmr.msra.gmra.mrb[4].mxu1 %v7860_v33  ;;  %v679_v58 = vld [vmem:[#allocation2 + $0x918] sm:$0xff] }
 0x301   : > { %4105 = vmatpush1.bf16.msra.mxu1 %v6509_v42  ;;  %4136 = vmatprep.mubr.bf16.mxu1 %v7868_v22  ;;  %v6542_v61 = vcombine.high %v679_v58, %v683_v54  ;;  %v691_v33 = vld [vmem:[#allocation2 + $0x978] sm:$0xff]  ;;  %v6629_v42 = vcombine.low %v767_v37, %v771_v39 }
 0x302   : > { %4106 = vmatprep.subr.bf16.mxu1 %v6518_v43  ;;  %v6550_v22 = vcombine.high %v687_v62, %v691_v33  ;;  %v6549_v1 = vcombine.low %v687_v62, %v691_v33  ;;  %v775_v43 = vld [vmem:[#allocation2 + $0xc18] sm:$0xff] }
 0x303   : > { %4689 = vmatpush1.bf16.msra.mxu0 %v7247_v0  ;;  %v6541_v0 = vcombine.low %v679_v58, %v683_v54  ;;  %v6637_v48 = vcombine.low %v775_v43, %v779_v44  ;;  %v787_v58 = vld [vmem:[#allocation2 + $0xc78] sm:$0xff] }
 0x304   : > { %4690 = vmatprep.subr.bf16.mxu0 %v7252_v57  ;;  %v699_v57 = vld [vmem:[#allocation2 + $0x9b8] sm:$0xff] }
 0x305   : > { %4107 = vmatpush1.bf16.msra.mxu1 %v6517_v46  ;;  %v6558_v19 = vcombine.high %v695_v51, %v699_v57  ;;  %v6638_v46 = vcombine.high %v775_v43, %v779_v44  ;;  %v795_v62 = vld [vmem:[#allocation2 + $0xcb8] sm:$0xff] }
 0x306   : > { %4108 = vmatprep.subr.bf16.mxu1 %v6526_v47  ;;  %v867_v31 = vld [vmem:[#allocation2 + $0xef8] sm:$0xff] }
 0x307   : > { %4691 = vmatpush1.bf16.msra.mxu0 %v7250_v3  ;;  %v6557_v3 = vcombine.low %v695_v51, %v699_v57  ;;  %v803_v51 = vld [vmem:[#allocation2 + $0xcf8] sm:$0xff]  ;;  %v6725_v37 = vcombine.low %v863_v30, %v867_v31 }
 0x308   : > { %4692 = vmatprep.subr.bf16.mxu0 %v7255_v6  ;;  %v711_v6 = vld [vmem:[#allocation2 + $0xa18] sm:$0xff] }
 0x309   : > { %4109 = vmatpush1.bf16.msra.mxu1 %v6525_v53  ;;  %v6574_v9 = vcombine.high %v711_v6, %v715_v7  ;;  %v6573_v55 = vcombine.low %v711_v6, %v715_v7  ;;  %v823_v7 = vld [vmem:[#allocation2 + $0xd98] sm:$0xff] }
 0x30a   : > { %4110 = vmatprep.subr.bf16.mxu1 %v6534_v50  ;;  %v783_v50 = vld [vmem:[#allocation2 + $0xc58] sm:$0xff] }
 0x30b   : > { %4693 = vmatpush1.bf16.msra.mxu0 %v7253_v11  ;;  %v723_v11 = vld [vmem:[#allocation2 + $0xa78] sm:$0xff]  ;;  %v6646_v54 = vcombine.high %v783_v50, %v787_v58 }
 0x30c   : > { %v6582_v12 = vcombine.high %v719_v10, %v723_v11  ;;  %v6581_v15 = vcombine.low %v719_v10, %v723_v11  ;;  %v831_v11 = vld [vmem:[#allocation2 + $0xdd8] sm:$0xff]  ;;  %6956 = vmatprep.subr.bf16.mxu0 %v7256_v56 }
 0x30d   : > { %4111 = vmatpush1.bf16.msra.mxu1 %v6533_v59  ;;  %v6645_v59 = vcombine.low %v783_v50, %v787_v58  ;;  %v7260_v39 = vld [vmem:[#allocation7 + $0xf0] ss:$12 sps:$4 sm:$0xff]   ;;  %v7263_v50 = vld [vmem:[#allocation7 + $0x48] ss:$12 sps:$4 sm:$0xff]  }
 0x30e   : > { %4695 = vmatmul.mubr.bf16.vlgmr.msra.gmra.mrb[8].mxu0 %v4288_v38  ;;  %4112 = vmatprep.subr.bf16.mxu1 %v6542_v61  ;;  %v6590_v38 = vcombine.high %v727_v13, %v731_v14  ;;  %v791_v61 = vld [vmem:[#allocation2 + $0xc98] sm:$0xff] }
 0x30f   : > { %v6654_v33 = vcombine.high %v791_v61, %v795_v62  ;;  %v839_v14 = vld [vmem:[#allocation2 + $0xe18] sm:$0xff]  ;;  %6957 = vmatpush3.bf16.msra.mxu0 %v7257_v26 }
 0x310   : > { %v7261_v43 = vld [vmem:[#allocation7 + $0x30] ss:$12 sps:$4 sm:$0xff]  }
 0x311   : > { %4113 = vmatpush1.bf16.msra.mxu1 %v6541_v0  ;;  %v6653_v0 = vcombine.low %v791_v61, %v795_v62  ;;  %v891_v61 = vld [vmem:[#allocation2 + $0xfb8] sm:$0xff] }
 0x312   : > { %4114 = vmatprep.subr.bf16.mxu1 %v6550_v22  ;;  %v799_v22 = vld [vmem:[#allocation2 + $0xcd8] sm:$0xff] }
 0x313   : > { %v6662_v57 = vcombine.high %v799_v22, %v803_v51 }
 0x315   : > { %4115 = vmatpush1.bf16.msra.mxu1 %v6549_v1  ;;  %v807_v1 = vld [vmem:[#allocation2 + $0xd18] sm:$0xff] }
 0x316   : > { %4116 = vmatprep.subr.bf16.mxu1 %v6558_v19  ;;  %v811_v19 = vld [vmem:[#allocation2 + $0xd38] sm:$0xff] }
 0x317   : > { %v6670_v2 = vcombine.high %v807_v1, %v811_v19 }
 0x319   : > { %4117 = vmatpush1.bf16.msra.mxu1 %v6557_v3  ;;  %v819_v3 = vld [vmem:[#allocation2 + $0xd78] sm:$0xff] }
 0x31a   : > { %4118 = vmatprep.subr.bf16.mxu1 %v6566_v5  ;;  %v6678_v5 = vcombine.high %v815_v60, %v819_v3  ;;  %v6677_v6 = vcombine.low %v815_v60, %v819_v3  ;;  %v7270_v60 = vld [vmem:[#allocation7 + $0x168] ss:$12 sps:$4 sm:$0xff]  }
 0x31b   : > { %v7271_v3 = vld [vmem:[#allocation7 + $0xa8] ss:$12 sps:$4 sm:$0xff]  }
 0x31d   : > { %4119 = vmatpush1.bf16.msra.mxu1 %v6565_v8  ;;  %v827_v8 = vld [vmem:[#allocation2 + $0xdb8] sm:$0xff] }
 0x31e   : > { %4120 = vmatprep.subr.bf16.mxu1 %v6574_v9  ;;  %v6686_v9 = vcombine.high %v823_v7, %v827_v8  ;;  %v6685_v10 = vcombine.low %v823_v7, %v827_v8  ;;  %v7277_v7 = vld [vmem:[#allocation6 + $0x14] ss:$8 sps:$4 sm:$0xff]   ;;  %v7275_v8 = vld [vmem:[#allocation6 + $0x10] ss:$8 sps:$4 sm:$0xff]  }
 0x321   : > { %4121 = vmatpush1.bf16.msra.mxu1 %v6573_v55  ;;  %v835_v55 = vld [vmem:[#allocation2 + $0xdf8] sm:$0xff] }
 0x322   : > { %4122 = vmatprep.subr.bf16.mxu1 %v6582_v12  ;;  %v6694_v12 = vcombine.high %v831_v11, %v835_v55  ;;  %v6693_v13 = vcombine.low %v831_v11, %v835_v55  ;;  %v7283_v11 = vld [vmem:[#allocation6 + $0x34] ss:$8 sps:$4 sm:$0xff]   ;;  %v7281_v55 = vld [vmem:[#allocation6 + $0x30] ss:$8 sps:$4 sm:$0xff]  }
 0x325   : > { %4123 = vmatpush1.bf16.msra.mxu1 %v6581_v15  ;;  %v843_v15 = vld [vmem:[#allocation2 + $0xe38] sm:$0xff] }
 0x326   : > { %4124 = vmatprep.subr.bf16.mxu1 %v6590_v38  ;;  %v6702_v38 = vcombine.high %v839_v14, %v843_v15  ;;  %v6701_v16 = vcombine.low %v839_v14, %v843_v15 }
 0x329   : > { %4125 = vmatpush1.bf16.msra.mxu1 %v6589_v18  ;;  %v851_v18 = vld [vmem:[#allocation2 + $0xe78] sm:$0xff] }
 0x32a   : > { %4126 = vmatprep.subr.bf16.mxu1 %v6598_v20  ;;  %v6710_v20 = vcombine.high %v847_v17, %v851_v18  ;;  %v6709_v23 = vcombine.low %v847_v17, %v851_v18 }
 0x32d   : > { %4127 = vmatpush1.bf16.msra.mxu1 %v6597_v24  ;;  %v855_v24 = vld [vmem:[#allocation2 + $0xe98] sm:$0xff] }
 0x32e   : > { %4128 = vmatprep.subr.bf16.mxu1 %v6606_v25  ;;  %v859_v25 = vld [vmem:[#allocation2 + $0xeb8] sm:$0xff] }
 0x32f   : > { %v6718_v63 = vcombine.high %v855_v24, %v859_v25 }
 0x331   : > { %4129 = vmatpush1.bf16.msra.mxu1 %v6605_v27  ;;  %v6717_v27 = vcombine.low %v855_v24, %v859_v25 }
 0x332   : > { %4130 = vmatprep.subr.bf16.mxu1 %v6614_v29  ;;  %v7258_v29 = vld [vmem:[#allocation7 + $0xd8] ss:$12 sps:$4 sm:$0xff]  }
 0x333   : > { %6958 = vmatprep.subr.bf16.mxu0 %v7258_v29 }
 0x335   : > { %4131 = vmatpush1.bf16.msra.mxu1 %v6613_v32  ;;  %v6726_v32 = vcombine.high %v863_v30, %v867_v31 }
 0x336   : > { %4132 = vmatprep.subr.bf16.mxu1 %v6622_v35  ;;  %v7259_v35 = vld [vmem:[#allocation7 + $0x18] ss:$12 sps:$4 sm:$0xff]  }
 0x337   : > { %6959 = vmatpush3.bf16.msra.mxu0 %v7259_v35 }
 0x338   : > { %6960 = vmatprep.subr.bf16.mxu0 %v7260_v39 }
 0x339   : > { %4133 = vmatpush1.bf16.msra.mxu1 %v6621_v40  ;;  %v871_v40 = vld [vmem:[#allocation2 + $0xf18] sm:$0xff] }
 0x33a   : > { %4134 = vmatprep.subr.bf16.mxu1 %v6630_v41  ;;  %v875_v41 = vld [vmem:[#allocation2 + $0xf38] sm:$0xff] }
 0x33b   : > { %v6733_v44 = vcombine.low %v871_v40, %v875_v41  ;;  %6961 = vmatpush3.bf16.msra.mxu0 %v7261_v43 }
 0x33d   : > { %4135 = vmatpush1.bf16.msra.mxu1 %v6629_v42  ;;  %v6734_v42 = vcombine.high %v871_v40, %v875_v41 }
 0x33e   : > { %4145 = vmatprep.subr.bf16.mxu1 %v6638_v46  ;;  %v7262_v46 = vld [vmem:[#allocation7 + $0x108] ss:$12 sps:$4 sm:$0xff]  }
 0x33f   : > { %6962 = vmatprep.subr.bf16.mxu0 %v7262_v46 }
 0x340   : > { %4137 = vmatmul.mubr.bf16.vlgmr.msra.gmra.mrb[4].mxu1 %v7882_v52  ;;  %v6661_v52 = vcombine.low %v799_v22, %v803_v51  ;;  %6963 = vmatpush3.bf16.msra.mxu0 %v7263_v50  ;;  %v7266_v22 = vld [vmem:[#allocation7 + $0x138] ss:$12 sps:$4 sm:$0xff]  }
 0x341   : > { %4146 = vmatpush1.bf16.msra.mxu1 %v6637_v48  ;;  %4177 = vmatprep.mubr.bf16.mxu1 %v7890_v36  ;;  %v6669_v36 = vcombine.low %v807_v1, %v811_v19  ;;  %v879_v48 = vld [vmem:[#allocation2 + $0xf58] sm:$0xff] }
 0x342   : > { %4147 = vmatprep.subr.bf16.mxu1 %v6646_v54  ;;  %v7264_v54 = vld [vmem:[#allocation7 + $0x120] ss:$12 sps:$4 sm:$0xff]   ;;  %v895_v51 = vld [vmem:[#allocation2 + $0xfd8] sm:$0xff] }
 0x343   : > { %6964 = vmatprep.subr.bf16.mxu0 %v7264_v54  ;;  %v7267_v1 = vld [vmem:[#allocation7 + $0x78] ss:$12 sps:$4 sm:$0xff]  }
 0x345   : > { %4148 = vmatpush1.bf16.msra.mxu1 %v6645_v59  ;;  %v887_v59 = vld [vmem:[#allocation2 + $0xf98] sm:$0xff] }
 0x346   : > { %4149 = vmatprep.subr.bf16.mxu1 %v6654_v33  ;;  %v6750_v62 = vcombine.high %v887_v59, %v891_v61  ;;  %v7265_v33 = vld [vmem:[#allocation7 + $0x60] ss:$12 sps:$4 sm:$0xff]  }
 0x347   : > { %6965 = vmatpush3.bf16.msra.mxu0 %v7265_v33 }
 0x348   : > { %6966 = vmatprep.subr.bf16.mxu0 %v7266_v22 }
 0x349   : > { %4150 = vmatpush1.bf16.msra.mxu1 %v6653_v0  ;;  %v6749_v0 = vcombine.low %v887_v59, %v891_v61  ;;  %v7287_v59 = vld [vmem:[#allocation6 + $0x50] ss:$8 sps:$4 sm:$0xff]   ;;  %v7289_v61 = vld [vmem:[#allocation6 + $0x54] ss:$8 sps:$4 sm:$0xff]  }
 0x34a   : > { %4151 = vmatprep.subr.bf16.mxu1 %v6662_v57  ;;  %v899_v57 = vld [vmem:[#allocation2 + $0xff8] sm:$0xff] }
 0x34b   : > { %v6757_v19 = vcombine.low %v895_v51, %v899_v57  ;;  %6967 = vmatpush3.bf16.msra.mxu0 %v7267_v1 }
 0x34d   : > { %4152 = vmatpush1.bf16.msra.mxu1 %v6661_v52  ;;  %v6758_v52 = vcombine.high %v895_v51, %v899_v57 }
 0x34e   : > { %4153 = vmatprep.subr.bf16.mxu1 %v6670_v2  ;;  %v7268_v2 = vld [vmem:[#allocation7 + $0x150] ss:$12 sps:$4 sm:$0xff]  }
 0x34f   : > { %6968 = vmatprep.subr.bf16.mxu0 %v7268_v2 }
 0x351   : > { %4154 = vmatpush1.bf16.msra.mxu1 %v6669_v36  ;;  %v7269_v36 = vld [vmem:[#allocation7 + $0x90] ss:$12 sps:$4 sm:$0xff]  }
 0x352   : > { %4155 = vmatprep.subr.bf16.mxu1 %v6678_v5  ;;  %6969 = vmatpush3.bf16.msra.mxu0 %v7269_v36  ;;  %v7272_v5 = vld [vmem:[#allocation6] ss:$8 sps:$4 sm:$0xff]  }
 0x353   : > { %6970 = vmatprep.subr.bf16.mxu0 %v7270_v60 }
 0x355   : > { %4156 = vmatpush1.bf16.msra.mxu1 %v6677_v6  ;;  %v7274_v6 = vld [vmem:[#allocation6 + $0x4] ss:$8 sps:$4 sm:$0xff]  }
 0x356   : > { %4157 = vmatprep.subr.bf16.mxu1 %v6686_v9  ;;  %6971 = vmatpush3.bf16.msra.mxu0 %v7271_v3  ;;  %v7280_v9 = vld [vmem:[#allocation6 + $0x24] ss:$8 sps:$4 sm:$0xff]  }
 0x359   : > { %4158 = vmatpush1.bf16.msra.mxu1 %v6685_v10  ;;  %v7278_v10 = vld [vmem:[#allocation6 + $0x20] ss:$8 sps:$4 sm:$0xff]  }
 0x35a   : > { %4159 = vmatprep.subr.bf16.mxu1 %v6694_v12  ;;  %v7284_v12 = vld [vmem:[#allocation6 + $0x40] ss:$8 sps:$4 sm:$0xff]  }
 0x35d   : > { %4160 = vmatpush1.bf16.msra.mxu1 %v6693_v13  ;;  %v4282_v13 = vld [vmem:[#allocation9 + $0x8] sm:$0x3] }
 0x35e   : > { %4161 = vmatprep.subr.bf16.mxu1 %v6702_v38  ;;  %v4294_v14 = vrot.slane %v4282_v13, %v7930_v21  ;;  %v4298_v15 = vrot.slane %v4282_v13, %v7921_v34  ;;  %v7610_v38 = vmov 0.0   ;;  %v4283_v13 = vld [vmem:[#allocation9 + $0xa] sm:$0x3] }
 0x361   : > { %v7945_v45 = vpop.f32.mrb[4].mxu0  ;;  %4162 = vmatpush1.bf16.msra.mxu1 %v6701_v16  ;;  %v7955_v16 = vsel %vm385_vm1, 1.0, %v7610_v38 }
 0x362   : > { %v7947_v47 = vpop.f32.mrb[5].mxu0  ;;  %4163 = vmatprep.subr.bf16.mxu1 %v6710_v20 }
 0x363   : > { %v4019_v49 = vpop.f32.mrb[6].mxu0 }
 0x364   : > { %v4020_v53 = vpop.f32.mrb[7].mxu0  ;;  %v883_v49 = vld [vmem:[#allocation2 + $0xf78] sm:$0xff] }
 0x365   : > { %4164 = vmatpush1.bf16.msra.mxu1 %v6709_v23  ;;  %v6742_v53 = vcombine.high %v879_v48, %v883_v49  ;;  %v6741_v58 = vcombine.low %v879_v48, %v883_v49 }
 0x366   : > { %4165 = vmatprep.subr.bf16.mxu1 %v6718_v63 }
 0x369   : > { %4166 = vmatpush1.bf16.msra.mxu1 %v6717_v27 }
 0x36a   : > { %4167 = vmatprep.subr.bf16.mxu1 %v6726_v32 }
 0x36d   : > { %4168 = vmatpush1.bf16.msra.mxu1 %v6725_v37 }
 0x36e   : > { %4169 = vmatprep.subr.bf16.mxu1 %v6734_v42 }
 0x371   : > { %4170 = vmatpush1.bf16.msra.mxu1 %v6733_v44 }
 0x372   : > { %4171 = vmatprep.subr.bf16.mxu1 %v6742_v53 }
 0x375   : > { %4172 = vmatpush1.bf16.msra.mxu1 %v6741_v58 }
 0x376   : > { %4173 = vmatprep.subr.bf16.mxu1 %v6750_v62 }
 0x379   : > { %4174 = vmatpush1.bf16.msra.mxu1 %v6749_v0 }
 0x37a   : > { %4175 = vmatprep.subr.bf16.mxu1 %v6758_v52 }
 0x37d   : > { %4176 = vmatpush1.bf16.msra.mxu1 %v6757_v19 }
 0x37e   : > { %5078 = vmatprep.subr.bf16.mxu1 %v7274_v6 }
 0x380   : > { %4178 = vmatmul.mubr.bf16.vlgmr.msra.gmra.mrb[4].mxu1 %v7898_v4  ;;  %v7286_v4 = vld [vmem:[#allocation6 + $0x44] ss:$8 sps:$4 sm:$0xff]  }
 0x381   : > { %5079 = vmatpush1.bf16.msra.mxu1 %v7272_v5 }
 0x382   : > { %5080 = vmatprep.subr.bf16.mxu1 %v7277_v7  ;;  %v7611_v7 = vmov 1966171168  }
 0x385   : > { %5081 = vmatpush1.bf16.msra.mxu1 %v7275_v8  ;;  %v4747_v8 = vunpack.c.l.s4 %v7611_v7  ;;  %v4982_v7 = vld [vmem:[#allocation9 + $0x10] sm:$0x3] }
 0x386   : > { %5082 = vmatprep.subr.bf16.mxu1 %v7280_v9 }
 0x387   : > { %v4748_v9 = vunpack.c.0.s8 %v4747_v8  ;;  %v4991_v8 = vrot.slane %v4982_v7, %v7930_v21 }
 0x389   : > { %5083 = vmatpush1.bf16.msra.mxu1 %v7278_v10 }
 0x38a   : > { %5084 = vmatprep.subr.bf16.mxu1 %v7283_v11  ;;  %v7962_v11 = vsub.s32 %v4748_v9, %v7918_v28  ;;  %v4995_v9 = vrot.slane %v4982_v7, %v7921_v34 }
 0x38d   : > { %5085 = vmatpush1.bf16.msra.mxu1 %v7281_v55 }
 0x38e   : > { %5086 = vmatprep.subr.bf16.mxu1 %v7286_v4 }
 0x391   : > { %5087 = vmatpush1.bf16.msra.mxu1 %v7284_v12 }
 0x392   : > { %5088 = vmatprep.subr.bf16.mxu1 %v7289_v61  ;;  %v7297_v61 = vld [vmem:[#allocation7 + $0x4] ss:$12 sps:$4 sm:$0xff]  }
 0x395   : > { %5089 = vmatpush1.bf16.msra.mxu1 %v7287_v59  ;;  %v7296_v59 = vld [vmem:[#allocation7 + $0xc4] ss:$12 sps:$4 sm:$0xff]  }
 0x3e1   : > { %v4696_v17 = vpop.f32.mrb[8].mxu0 }
 0x3e2   : > { %v7030_v18 = vadd.f32 %v4696_v17, %v4294_v14  ;;  %v4698_v20 = vpop.f32.mrb[9].mxu0 }
 0x3e3   : > { %v7031_v23 = vadd.f32 %v4698_v20, %v4298_v15  ;;  %v4700_v56 = vpop.f32.mrb[10].mxu0  ;;  %v4284_v15 = vld [vmem:[#allocation9 + $0xc] sm:$0x3] }
 0x3e4   : > { %v4703_v24 = vmul.f32 %v7030_v18, %v7955_v16  ;;  %v4701_v25 = vpop.f32.mrb[11].mxu0  ;;  %v4779_v20 = vrot.slane %v4284_v15, %v7930_v21 }
 0x3e5   : > { %v4704_v63 = vmul.f32 %v7031_v23, %v7955_v16 }
 0x3e6   : > { %v4705_v26 = vrot.slane %v4703_v24, 4 }
 0x3e7   : > { %v4711_v27 = vrot.slane %v4704_v63, 4 }
 0x3e8   : > { %v4706_v29 = vadd.f32 %v4705_v26, %v4703_v24 }
 0x3e9   : > { %v4712_v30 = vadd.f32 %v4711_v27, %v4704_v63 }
 0x3ea   : > { %v4707_v31 = vrot.slane %v4706_v29, 2 }
 0x3eb   : > { %v4713_v32 = vrot.slane %v4712_v30, 2 }
 0x3ec   : > { %v4708_v35 = vadd.f32 %v4707_v31, %v4706_v29 }
 0x3ed   : > { %v4714_v37 = vadd.f32 %v4713_v32, %v4712_v30 }
 0x3ee   : > { %v4709_v39 = vrot.slane %v4708_v35, 1 }
 0x3ef   : > { %v4715_v40 = vrot.slane %v4714_v37, 1 }
 0x3f0   : > { %v4710_v41 = vadd.f32 %v4709_v39, %v4708_v35  ;;  %v7292_v39 = vld [vmem:[#allocation6 + $0x64] ss:$8 sps:$4 sm:$0xff]  }
 0x3f1   : > { %v4716_v42 = vadd.f32 %v4715_v40, %v4714_v37  ;;  %v7290_v40 = vld [vmem:[#allocation6 + $0x60] ss:$8 sps:$4 sm:$0xff]   ;;  %5090 = vmatprep.subr.bf16.mxu1 %v7292_v39 }
 0x3f2   : > { %v4717_v43 = vmul.f32 0.5, %v4710_v41  ;;  %5091 = vmatpush1.bf16.msra.mxu1 %v7290_v40  ;;  %v7295_v41 = vld [vmem:[#allocation6 + $0x74] ss:$8 sps:$4 sm:$0xff]  }
 0x3f3   : > { %v4718_v44 = vmul.f32 0.5, %v4716_v42  ;;  %v7293_v42 = vld [vmem:[#allocation6 + $0x70] ss:$8 sps:$4 sm:$0xff]   ;;  %5092 = vmatprep.subr.bf16.mxu1 %v7295_v41 }
 0x3f4   : > { %v4719_v46 = vsub.f32 %v7030_v18, %v4717_v43  ;;  %v7612_v43 = vmov 0  }
 0x3f5   : > { %v4720_v48 = vsub.f32 %v7031_v23, %v4718_v44  ;;  %v4783_v23 = vrot.slane %v4284_v15, %v7921_v34  ;;  %5110 = vmatprep.mubr.bf16.mxu1 %v7612_v43 }
 0x3f6   : > { %v4721_v49 = vmul.f32 %v4719_v46, %v4719_v46  ;;  %5093 = vmatpush1.bf16.msra.mxu1 %v7293_v42 }
 0x3f7   : > { %v4722_v53 = vmul.f32 %v4720_v48, %v4720_v48  ;;  %6978 = vmatprep.subr.bf16.mxu1 %v7296_v59 }
 0x3f8   : > { %v4723_v50 = vmul.f32 %v7955_v16, %v4721_v49 }
 0x3f9   : > { %v4724_v58 = vmul.f32 %v7955_v16, %v4722_v53 }
 0x3fa   : > { %v4725_v54 = vrot.slane %v4723_v50, 4 }
 0x3fb   : > { %v4731_v62 = vrot.slane %v4724_v58, 4 }
 0x3fc   : > { %v4726_v33 = vadd.f32 %v4725_v54, %v4723_v50 }
 0x3fd   : > { %v4732_v0 = vadd.f32 %v4731_v62, %v4724_v58  ;;  %v7298_v62 = vld [vmem:[#allocation7 + $0xdc] ss:$12 sps:$4 sm:$0xff]  }
 0x3fe   : > { %v4727_v22 = vrot.slane %v4726_v33, 2 }
 0x3ff   : > { %v4733_v51 = vrot.slane %v4732_v0, 2 }
 0x400   : > { %v4728_v57 = vadd.f32 %v4727_v22, %v4726_v33  ;;  %v7299_v33 = vld [vmem:[#allocation7 + $0x1c] ss:$12 sps:$4 sm:$0xff]   ;;  %v7301_v22 = vld [vmem:[#allocation7 + $0x34] ss:$12 sps:$4 sm:$0xff]  }
 0x401   : > { %v4734_v52 = vadd.f32 %v4733_v51, %v4732_v0  ;;  %v7300_v0 = vld [vmem:[#allocation7 + $0xf4] ss:$12 sps:$4 sm:$0xff]   ;;  %v7302_v51 = vld [vmem:[#allocation7 + $0x10c] ss:$12 sps:$4 sm:$0xff]  }
 0x402   : > { %v4729_v1 = vrot.slane %v4728_v57, 1 }
 0x403   : > { %v4735_v19 = vrot.slane %v4734_v52, 1 }
 0x404   : > { %v4730_v2 = vadd.f32 %v4729_v1, %v4728_v57  ;;  %v7303_v57 = vld [vmem:[#allocation7 + $0x4c] ss:$12 sps:$4 sm:$0xff]   ;;  %v7305_v1 = vld [vmem:[#allocation7 + $0x64] ss:$12 sps:$4 sm:$0xff]  }
 0x405   : > { %v4736_v36 = vadd.f32 %v4735_v19, %v4734_v52  ;;  %v7304_v52 = vld [vmem:[#allocation7 + $0x124] ss:$12 sps:$4 sm:$0xff]   ;;  %v7306_v19 = vld [vmem:[#allocation7 + $0x13c] ss:$12 sps:$4 sm:$0xff]  }
 0x406   : > { %v4737_v60 = vmul.f32 0.5, %v4730_v2  ;;  %v7307_v2 = vld [vmem:[#allocation7 + $0x7c] ss:$12 sps:$4 sm:$0xff]  }
 0x407   : > { %v4738_v3 = vmul.f32 0.5, %v4736_v36  ;;  %v7308_v36 = vld [vmem:[#allocation7 + $0x154] ss:$12 sps:$4 sm:$0xff]  }
 0x408   : > { %v4739_v5 = vadd.f32 1e-05, %v4737_v60  ;;  %v7309_v60 = vld [vmem:[#allocation7 + $0x94] ss:$12 sps:$4 sm:$0xff]  }
 0x409   : > { %v4740_v6 = vadd.f32 1e-05, %v4738_v3  ;;  %v7310_v3 = vld [vmem:[#allocation7 + $0x16c] ss:$12 sps:$4 sm:$0xff]  }
 0x40a   : > { %7424 = vrsqrt.f32 %v4739_v5  ;;  %v7311_v5 = vld [vmem:[#allocation7 + $0xac] ss:$12 sps:$4 sm:$0xff]  }
 0x40b   : > { %7426 = vrsqrt.f32 %v4740_v6  ;;  %v7314_v6 = vld [vmem:[#allocation4 + $0xc] ss:$16 sps:$4 sm:$0xff]  }
 0x414   : > { %v7425_v10 = vpop.eup %7424 }
 0x415   : > { %v7427_v55 = vpop.eup %7426 }
 0x416   : > { %v4745_v4 = vcombine.low %v7425_v10, %v7427_v55 }
 0x418   : > { %v4752_v12 = vrot.slane %v4745_v4, %v7962_v11 }
 0x41a   : > { %v4759_v14 = vrot.slane %v4752_v12, %v7962_v11 }
 0x41c   : > { %v4761_v38 = vmul.f32 %v4759_v14, %v4283_v13 }
 0x41e   : > { %v4766_v17 = vrot.slane %v4761_v38, %v7930_v21  ;;  %v4770_v18 = vrot.slane %v4761_v38, %v7921_v34 }
 0x420   : > { %v4774_v56 = vmul.f32 %v4770_v18, %v4720_v48  ;;  %v4773_v24 = vmul.f32 %v4766_v17, %v4719_v46  ;;  %v6823_v46 = vld [vmem:[#allocation9 + $0xe] ss:$0 sm:$0xff] }
 0x422   : > { %v4787_v25 = vadd.f32 %v4783_v23, %v4774_v56  ;;  %v4786_v63 = vadd.f32 %v4779_v20, %v4773_v24 }
 0x424   : > { %v4789_v26 = vmax.f32 %v4787_v25, 0.0  ;;  %v4788_v27 = vmax.f32 %v4786_v63, 0.0 }
 0x426   : > { %v4791_v29 = vpack.c.bf16 %v4789_v26, %v4789_v26  ;;  %v4790_v30 = vpack.c.bf16 %v4788_v27, %v4788_v27 }
 0x428   : > { %4926 = vmatprep.mubr.bf16.mxu0 %v4791_v29 }
 0x429   : > { %4927 = vmatmul.mubr.bf16.vlgmr.msra.gmra.mrb[12].mxu0 %v4790_v30 }
 0x453   : > { %v7970_v31 = vpop.f32.mrb[4].mxu1 }
 0x454   : > { %v7972_v32 = vpop.f32.mrb[5].mxu1 }
 0x455   : > { %v4183_v35 = vpop.f32.mrb[6].mxu1 }
 0x456   : > { %v4184_v37 = vpop.f32.mrb[7].mxu1 }
 0x4fc   : > { %v6972_v44 = vpop.f32.mrb[12].mxu0 }
 0x4fd   : > { %v6973_v48 = vpop.f32.mrb[13].mxu0 }
 0x4fe   : > { %v6974_v49 = vadd.f32 %v6973_v48, %v6972_v44  ;;  %v6975_v53 = vpop.f32.mrb[14].mxu0 }
 0x4ff   : > { %v6976_v50 = vpop.f32.mrb[15].mxu0 }
 0x500   : > { %v4929_v58 = vadd.f32 %v6974_v49, %v6823_v46 }
 0x502   : > { %v4986_v54 = vpack.c.bf16 %v4929_v58, %v4929_v58 }
 0x504   : > { %5111 = vmatmul.mubr.bf16.vlgmr.msra.gmra.mrb[8].mxu1 %v4986_v54 }
 0x505   : > { %6979 = vmatpush3.bf16.msra.mxu1 %v7297_v61 }
 0x506   : > { %6980 = vmatprep.subr.bf16.mxu1 %v7298_v62 }
 0x509   : > { %6981 = vmatpush3.bf16.msra.mxu1 %v7299_v33 }
 0x50a   : > { %6982 = vmatprep.subr.bf16.mxu1 %v7300_v0 }
 0x50d   : > { %6983 = vmatpush3.bf16.msra.mxu1 %v7301_v22 }
 0x50e   : > { %6984 = vmatprep.subr.bf16.mxu1 %v7302_v51 }
 0x511   : > { %6985 = vmatpush3.bf16.msra.mxu1 %v7303_v57 }
 0x512   : > { %6986 = vmatprep.subr.bf16.mxu1 %v7304_v52 }
 0x515   : > { %6987 = vmatpush3.bf16.msra.mxu1 %v7305_v1 }
 0x516   : > { %6988 = vmatprep.subr.bf16.mxu1 %v7306_v19 }
 0x519   : > { %6989 = vmatpush3.bf16.msra.mxu1 %v7307_v2 }
 0x51a   : > { %6990 = vmatprep.subr.bf16.mxu1 %v7308_v36 }
 0x51d   : > { %6991 = vmatpush3.bf16.msra.mxu1 %v7309_v60  ;;  %v4983_v60 = vld [vmem:[#allocation9 + $0x12] sm:$0x3] }
 0x51e   : > { %6992 = vmatprep.subr.bf16.mxu1 %v7310_v3 }
 0x521   : > { %6993 = vmatpush3.bf16.msra.mxu1 %v7311_v5  ;;  %v4984_v5 = vld [vmem:[#allocation9 + $0x14] sm:$0x3] }
 0x522   : > { %5786 = vmatprep.subr.bf16.mxu1 %v7314_v6  ;;  %v924_v6 = vsub.s32 5, %v7918_v28 }
 0x5d7   : > { %v5112_v10 = vpop.f32.mrb[8].mxu1 }
 0x5d8   : > { %v5113_v55 = vadd.f32 %v5112_v10, %v4991_v8  ;;  %v5114_v4 = vpop.f32.mrb[9].mxu1  ;;  %v5195_v10 = vrot.slane %v4984_v5, %v7930_v21 }
 0x5d9   : > { %v5115_v12 = vadd.f32 %v5114_v4, %v4995_v9  ;;  %v5116_v13 = vpop.f32.mrb[10].mxu1  ;;  %v7987_v4 = vld [vmem:[#allocation9] sm:$0xff] }
 0x5da   : > { %v5119_v14 = vmul.f32 %v7955_v16, %v5113_v55  ;;  %v5117_v15 = vpop.f32.mrb[11].mxu1 }
 0x5db   : > { %v5120_v38 = vmul.f32 %v7955_v16, %v5115_v12 }
 0x5dc   : > { %v5121_v17 = vrot.slane %v5119_v14, 4 }
 0x5dd   : > { %v5127_v18 = vrot.slane %v5120_v38, 4 }
 0x5de   : > { %v5122_v20 = vadd.f32 %v5121_v17, %v5119_v14 }
 0x5df   : > { %v5128_v23 = vadd.f32 %v5127_v18, %v5120_v38 }
 0x5e0   : > { %v5123_v56 = vrot.slane %v5122_v20, 2 }
 0x5e1   : > { %v5129_v24 = vrot.slane %v5128_v23, 2 }
 0x5e2   : > { %v5124_v25 = vadd.f32 %v5123_v56, %v5122_v20  ;;  %v7312_v56 = vld [vmem:[#allocation4 + $0x8] ss:$16 sps:$4 sm:$0xff]  }
 0x5e3   : > { %v5130_v63 = vadd.f32 %v5129_v24, %v5128_v23 }
 0x5e4   : > { %v5125_v26 = vrot.slane %v5124_v25, 1 }
 0x5e5   : > { %v5131_v27 = vrot.slane %v5130_v63, 1 }
 0x5e6   : > { %v5126_v29 = vadd.f32 %v5125_v26, %v5124_v25  ;;  %v7317_v25 = vld [vmem:[#allocation4 + $0x2c] ss:$16 sps:$4 sm:$0xff]   ;;  %v7315_v26 = vld [vmem:[#allocation4 + $0x28] ss:$16 sps:$4 sm:$0xff]  }
 0x5e7   : > { %v5132_v30 = vadd.f32 %v5131_v27, %v5130_v63  ;;  %v7320_v27 = vld [vmem:[#allocation4 + $0x4c] ss:$16 sps:$4 sm:$0xff]  }
 0x5e8   : > { %v5133_v35 = vmul.f32 0.5, %v5126_v29  ;;  %v7318_v29 = vld [vmem:[#allocation4 + $0x48] ss:$16 sps:$4 sm:$0xff]  }
 0x5e9   : > { %v5134_v37 = vmul.f32 0.5, %v5132_v30  ;;  %v7323_v30 = vld [vmem:[#allocation4 + $0x6c] ss:$16 sps:$4 sm:$0xff]  }
 0x5ea   : > { %v5135_v39 = vsub.f32 %v5113_v55, %v5133_v35  ;;  %v5199_v55 = vrot.slane %v4984_v5, %v7921_v34  ;;  %v7326_v35 = vld [vmem:[#allocation4 + $0x8c] ss:$16 sps:$4 sm:$0xff]  }
 0x5eb   : > { %v5136_v40 = vsub.f32 %v5115_v12, %v5134_v37  ;;  %v925_v12 = vrot.slane %v7987_v4, %v924_v6  ;;  %v7324_v37 = vld [vmem:[#allocation4 + $0x88] ss:$16 sps:$4 sm:$0xff]  }
 0x5ec   : > { %v5137_v41 = vmul.f32 %v5135_v39, %v5135_v39  ;;  %v7360_v6 = vld [vmem:[#allocation4 + $0x208] ss:$16 sps:$4 sm:$0xff]  }
 0x5ed   : > { %v5138_v42 = vmul.f32 %v5136_v40, %v5136_v40  ;;  %v7027_v17 = vadd.f32 %v7947_v47, %v925_v12  ;;  %v7321_v47 = vld [vmem:[#allocation4 + $0x68] ss:$16 sps:$4 sm:$0xff]  }
 0x5ee   : > { %v5139_v43 = vmul.f32 %v7955_v16, %v5137_v41  ;;  %v7332_v41 = vld [vmem:[#allocation4 + $0xcc] ss:$16 sps:$4 sm:$0xff]   ;;  %v7366_v12 = vld [vmem:[#allocation4 + $0x248] ss:$16 sps:$4 sm:$0xff]  }
 0x5ef   : > { %v5140_v44 = vmul.f32 %v7955_v16, %v5138_v42  ;;  %v5452_v63 = vpack.c.bf16 %v7027_v17, %v7027_v17  ;;  %v7330_v42 = vld [vmem:[#allocation4 + $0xc8] ss:$16 sps:$4 sm:$0xff]   ;;  %v7380_v17 = vld [vmem:[#allocation4 + $0x2cc] ss:$16 sps:$4 sm:$0xff]  }
 0x5f0   : > { %v5141_v46 = vrot.slane %v5139_v43, 4 }
 0x5f1   : > { %v5147_v48 = vrot.slane %v5140_v44, 4 }
 0x5f2   : > { %v5142_v49 = vadd.f32 %v5141_v46, %v5139_v43  ;;  %v7335_v43 = vld [vmem:[#allocation4 + $0xec] ss:$16 sps:$4 sm:$0xff]  }
 0x5f3   : > { %v5148_v53 = vadd.f32 %v5147_v48, %v5140_v44  ;;  %v7333_v44 = vld [vmem:[#allocation4 + $0xe8] ss:$16 sps:$4 sm:$0xff]   ;;  %v7338_v46 = vld [vmem:[#allocation4 + $0x10c] ss:$16 sps:$4 sm:$0xff]  }
 0x5f4   : > { %v5143_v50 = vrot.slane %v5142_v49, 2  ;;  %v7336_v48 = vld [vmem:[#allocation4 + $0x108] ss:$16 sps:$4 sm:$0xff]  }
 0x5f5   : > { %v5149_v58 = vrot.slane %v5148_v53, 2 }
 0x5f6   : > { %v5144_v54 = vadd.f32 %v5143_v50, %v5142_v49  ;;  %v7341_v49 = vld [vmem:[#allocation4 + $0x12c] ss:$16 sps:$4 sm:$0xff]  }
 0x5f7   : > { %v5150_v59 = vadd.f32 %v5149_v58, %v5148_v53  ;;  %v7339_v53 = vld [vmem:[#allocation4 + $0x128] ss:$16 sps:$4 sm:$0xff]   ;;  %v7344_v50 = vld [vmem:[#allocation4 + $0x14c] ss:$16 sps:$4 sm:$0xff]  }
 0x5f8   : > { %v5145_v61 = vrot.slane %v5144_v54, 1  ;;  %v7342_v58 = vld [vmem:[#allocation4 + $0x148] ss:$16 sps:$4 sm:$0xff]  }
 0x5f9   : > { %v5151_v62 = vrot.slane %v5150_v59, 1 }
 0x5fa   : > { %v5146_v33 = vadd.f32 %v5145_v61, %v5144_v54  ;;  %v7347_v54 = vld [vmem:[#allocation4 + $0x16c] ss:$16 sps:$4 sm:$0xff]  }
 0x5fb   : > { %v5152_v0 = vadd.f32 %v5151_v62, %v5150_v59  ;;  %v7345_v59 = vld [vmem:[#allocation4 + $0x168] ss:$16 sps:$4 sm:$0xff]   ;;  %v7350_v61 = vld [vmem:[#allocation4 + $0x18c] ss:$16 sps:$4 sm:$0xff]  }
 0x5fc   : > { %v5153_v22 = vmul.f32 0.5, %v5146_v33  ;;  %v7348_v62 = vld [vmem:[#allocation4 + $0x188] ss:$16 sps:$4 sm:$0xff]   ;;  %v7353_v33 = vld [vmem:[#allocation4 + $0x1ac] ss:$16 sps:$4 sm:$0xff]  }
 0x5fd   : > { %v5154_v51 = vmul.f32 0.5, %v5152_v0  ;;  %v7351_v0 = vld [vmem:[#allocation4 + $0x1a8] ss:$16 sps:$4 sm:$0xff]  }
 0x5fe   : > { %v5155_v57 = vadd.f32 1e-05, %v5153_v22  ;;  %v920_v22 = vsub.s32 4, %v7918_v28 }
 0x5ff   : > { %v5156_v52 = vadd.f32 1e-05, %v5154_v51  ;;  %v7356_v51 = vld [vmem:[#allocation4 + $0x1cc] ss:$16 sps:$4 sm:$0xff]  }
 0x600   : > { %7428 = vrsqrt.f32 %v5155_v57  ;;  %v932_v57 = vsub.s32 7, %v7918_v28 }
 0x601   : > { %7430 = vrsqrt.f32 %v5156_v52  ;;  %v7354_v52 = vld [vmem:[#allocation4 + $0x1c8] ss:$16 sps:$4 sm:$0xff]  }
 0x60a   : > { %v7429_v1 = vpop.eup %7428 }
 0x60b   : > { %v7431_v19 = vpop.eup %7430 }
 0x60c   : > { %v5161_v2 = vcombine.low %v7429_v1, %v7431_v19  ;;  %v921_v1 = vrot.slane %v7987_v4, %v920_v22  ;;  %v7359_v19 = vld [vmem:[#allocation4 + $0x1ec] ss:$16 sps:$4 sm:$0xff]   ;;  %v7413_v22 = vld [vmem:[#allocation7 + $0x38] ss:$12 sps:$4 sm:$0xff]  }
 0x60e   : > { %v5168_v36 = vrot.slane %v5161_v2, %v7962_v11  ;;  %v933_v2 = vrot.slane %v7987_v4, %v932_v57  ;;  %v7415_v57 = vld [vmem:[#allocation7 + $0x50] ss:$12 sps:$4 sm:$0xff]  }
 0x610   : > { %v5175_v3 = vrot.slane %v5168_v36, %v7962_v11  ;;  %v7357_v36 = vld [vmem:[#allocation4 + $0x1e8] ss:$16 sps:$4 sm:$0xff]   ;;  %v7029_v5 = vadd.f32 %v7972_v32, %v933_v2  ;;  %v7374_v32 = vld [vmem:[#allocation4 + $0x28c] ss:$16 sps:$4 sm:$0xff]  }
 0x611   : > { %v7419_v2 = vld [vmem:[#allocation7 + $0x80] ss:$12 sps:$4 sm:$0xff]  }
 0x612   : > { %v5177_v7 = vmul.f32 %v5175_v3, %v4983_v60  ;;  %v7026_v60 = vadd.f32 %v7945_v45, %v921_v1  ;;  %v7362_v3 = vld [vmem:[#allocation4 + $0x20c] ss:$16 sps:$4 sm:$0xff]   ;;  %v7417_v1 = vld [vmem:[#allocation7 + $0x68] ss:$12 sps:$4 sm:$0xff]  }
 0x613   : > { %v7371_v45 = vld [vmem:[#allocation4 + $0x26c] ss:$16 sps:$4 sm:$0xff]  }
 0x614   : > { %v5182_v8 = vrot.slane %v5177_v7, %v7930_v21  ;;  %v5186_v9 = vrot.slane %v5177_v7, %v7921_v34  ;;  %v5451_v7 = vpack.c.bf16 %v7026_v60, %v7026_v60  ;;  %v7421_v60 = vld [vmem:[#allocation7 + $0x98] ss:$12 sps:$4 sm:$0xff]  }
 0x616   : > { %v5190_v13 = vmul.f32 %v5186_v9, %v5136_v40  ;;  %v5189_v14 = vmul.f32 %v5182_v8, %v5135_v39  ;;  %v7329_v39 = vld [vmem:[#allocation4 + $0xac] ss:$16 sps:$4 sm:$0xff]   ;;  %v7327_v40 = vld [vmem:[#allocation4 + $0xa8] ss:$16 sps:$4 sm:$0xff]   ;;  %v5454_v9 = vpack.c.bf16 %v7029_v5, %v7029_v5 }
 0x617   : > { %v7365_v8 = vld [vmem:[#allocation4 + $0x22c] ss:$16 sps:$4 sm:$0xff]  }
 0x618   : > { %v5203_v15 = vadd.f32 %v5199_v55, %v5190_v13  ;;  %v5202_v38 = vadd.f32 %v5195_v10, %v5189_v14  ;;  %v7363_v10 = vld [vmem:[#allocation4 + $0x228] ss:$16 sps:$4 sm:$0xff]   ;;  %v7368_v55 = vld [vmem:[#allocation4 + $0x24c] ss:$16 sps:$4 sm:$0xff]  }
 0x619   : > { %v7369_v13 = vld [vmem:[#allocation4 + $0x268] ss:$16 sps:$4 sm:$0xff]   ;;  %v7423_v5 = vld [vmem:[#allocation7 + $0xb0] ss:$12 sps:$4 sm:$0xff]  }
 0x61a   : > { %v5205_v18 = vmax.f32 %v5203_v15, 0.0  ;;  %v5204_v20 = vmax.f32 %v5202_v38, 0.0  ;;  %v7372_v14 = vld [vmem:[#allocation4 + $0x288] ss:$16 sps:$4 sm:$0xff]   ;;  %v7377_v15 = vld [vmem:[#allocation4 + $0x2ac] ss:$16 sps:$4 sm:$0xff]  }
 0x61b   : > { %v7375_v38 = vld [vmem:[#allocation4 + $0x2a8] ss:$16 sps:$4 sm:$0xff]  }
 0x61c   : > { %v5207_v23 = vpack.c.bf16 %v5205_v18, %v5205_v18  ;;  %v5206_v24 = vpack.c.bf16 %v5204_v20, %v5204_v20  ;;  %v7378_v18 = vld [vmem:[#allocation4 + $0x2c8] ss:$16 sps:$4 sm:$0xff]   ;;  %v7383_v20 = vld [vmem:[#allocation4 + $0x2ec] ss:$16 sps:$4 sm:$0xff]  }
 0x61e   : > { %5342 = vmatprep.mubr.bf16.mxu1 %v5207_v23  ;;  %v7381_v23 = vld [vmem:[#allocation4 + $0x2e8] ss:$16 sps:$4 sm:$0xff]  }
 0x61f   : > { %5343 = vmatmul.mubr.bf16.vlgmr.msra.gmra.mrb[12].mxu1 %v5206_v24  ;;  %v7384_v24 = vld [vmem:[#allocation4 + $0x308] ss:$16 sps:$4 sm:$0xff]  }
 0x620   : > { %5787 = vmatpush1.bf16.msra.mxu1 %v7312_v56  ;;  %5818 = vmatprep.mubr.bf16.mxu1 %v5452_v63  ;;  %v7386_v56 = vld [vmem:[#allocation4 + $0x30c] ss:$16 sps:$4 sm:$0xff]   ;;  %v7387_v63 = vld [vmem:[#allocation4 + $0x328] ss:$16 sps:$4 sm:$0xff]  }
 0x621   : > { %5788 = vmatprep.subr.bf16.mxu1 %v7317_v25  ;;  %v7389_v25 = vld [vmem:[#allocation4 + $0x32c] ss:$16 sps:$4 sm:$0xff]  }
 0x624   : > { %5789 = vmatpush1.bf16.msra.mxu1 %v7315_v26  ;;  %v7392_v26 = vld [vmem:[#allocation4 + $0x34c] ss:$16 sps:$4 sm:$0xff]  }
 0x625   : > { %5790 = vmatprep.subr.bf16.mxu1 %v7320_v27  ;;  %v7390_v27 = vld [vmem:[#allocation4 + $0x348] ss:$16 sps:$4 sm:$0xff]  }
 0x628   : > { %5791 = vmatpush1.bf16.msra.mxu1 %v7318_v29  ;;  %v7395_v29 = vld [vmem:[#allocation4 + $0x36c] ss:$16 sps:$4 sm:$0xff]  }
 0x629   : > { %5792 = vmatprep.subr.bf16.mxu1 %v7323_v30  ;;  %v7393_v30 = vld [vmem:[#allocation4 + $0x368] ss:$16 sps:$4 sm:$0xff]  }
 0x62c   : > { %5793 = vmatpush1.bf16.msra.mxu1 %v7321_v47  ;;  %v7398_v47 = vld [vmem:[#allocation4 + $0x38c] ss:$16 sps:$4 sm:$0xff]  }
 0x62d   : > { %5794 = vmatprep.subr.bf16.mxu1 %v7326_v35  ;;  %v7396_v35 = vld [vmem:[#allocation4 + $0x388] ss:$16 sps:$4 sm:$0xff]  }
 0x630   : > { %5795 = vmatpush1.bf16.msra.mxu1 %v7324_v37  ;;  %v7401_v37 = vld [vmem:[#allocation4 + $0x3ac] ss:$16 sps:$4 sm:$0xff]  }
 0x631   : > { %5796 = vmatprep.subr.bf16.mxu1 %v7329_v39  ;;  %v7399_v39 = vld [vmem:[#allocation4 + $0x3a8] ss:$16 sps:$4 sm:$0xff]  }
 0x634   : > { %5797 = vmatpush1.bf16.msra.mxu1 %v7327_v40  ;;  %v928_v40 = vsub.s32 6, %v7918_v28 }
 0x635   : > { %5798 = vmatprep.subr.bf16.mxu1 %v7332_v41  ;;  %v7404_v41 = vld [vmem:[#allocation4 + $0x3cc] ss:$16 sps:$4 sm:$0xff]  }
 0x638   : > { %5799 = vmatpush1.bf16.msra.mxu1 %v7330_v42  ;;  %v7402_v42 = vld [vmem:[#allocation4 + $0x3c8] ss:$16 sps:$4 sm:$0xff]  }
 0x639   : > { %5800 = vmatprep.subr.bf16.mxu1 %v7335_v43  ;;  %v929_v43 = vrot.slane %v7987_v4, %v928_v40 }
 0x63c   : > { %5801 = vmatpush1.bf16.msra.mxu1 %v7333_v44  ;;  %v7407_v44 = vld [vmem:[#allocation4 + $0x3ec] ss:$16 sps:$4 sm:$0xff]  }
 0x63d   : > { %5802 = vmatprep.subr.bf16.mxu1 %v7338_v46  ;;  %v7405_v46 = vld [vmem:[#allocation4 + $0x3e8] ss:$16 sps:$4 sm:$0xff]  }
 0x640   : > { %5803 = vmatpush1.bf16.msra.mxu1 %v7336_v48  ;;  %v7028_v48 = vadd.f32 %v7970_v31, %v929_v43 }
 0x641   : > { %5804 = vmatprep.subr.bf16.mxu1 %v7341_v49 }
 0x642   : > { %v5453_v49 = vpack.c.bf16 %v7028_v48, %v7028_v48 }
 0x644   : > { %5805 = vmatpush1.bf16.msra.mxu1 %v7339_v53  ;;  %v6856_v53 = vld [vmem:[#allocation9 + $0x16] ss:$0 sm:$0xff] }
 0x645   : > { %5806 = vmatprep.subr.bf16.mxu1 %v7344_v50 }
 0x648   : > { %5807 = vmatpush1.bf16.msra.mxu1 %v7342_v58 }
 0x649   : > { %5808 = vmatprep.subr.bf16.mxu1 %v7347_v54 }
 0x64c   : > { %5809 = vmatpush1.bf16.msra.mxu1 %v7345_v59  ;;  %v7408_v59 = vld [vmem:[#allocation7 + $0xc8] ss:$12 sps:$4 sm:$0xff]  }
 0x64d   : > { %5810 = vmatprep.subr.bf16.mxu1 %v7350_v61  ;;  %v7409_v61 = vld [vmem:[#allocation7 + $0x8] ss:$12 sps:$4 sm:$0xff]   ;;  %7000 = vmatprep.subr.bf16.mxu0 %v7408_v59 }
 0x64e   : > { %7001 = vmatpush3.bf16.msra.mxu0 %v7409_v61 }
 0x650   : > { %5811 = vmatpush1.bf16.msra.mxu1 %v7348_v62  ;;  %v7410_v62 = vld [vmem:[#allocation7 + $0xe0] ss:$12 sps:$4 sm:$0xff]  }
 0x651   : > { %5812 = vmatprep.subr.bf16.mxu1 %v7353_v33  ;;  %v7411_v33 = vld [vmem:[#allocation7 + $0x20] ss:$12 sps:$4 sm:$0xff]   ;;  %7002 = vmatprep.subr.bf16.mxu0 %v7410_v62 }
 0x652   : > { %7003 = vmatpush3.bf16.msra.mxu0 %v7411_v33 }
 0x654   : > { %5813 = vmatpush1.bf16.msra.mxu1 %v7351_v0  ;;  %v7412_v0 = vld [vmem:[#allocation7 + $0xf8] ss:$12 sps:$4 sm:$0xff]  }
 0x655   : > { %5814 = vmatprep.subr.bf16.mxu1 %v7356_v51  ;;  %7004 = vmatprep.subr.bf16.mxu0 %v7412_v0  ;;  %v7414_v51 = vld [vmem:[#allocation7 + $0x110] ss:$12 sps:$4 sm:$0xff]  }
 0x656   : > { %7005 = vmatpush3.bf16.msra.mxu0 %v7413_v22 }
 0x657   : > { %7006 = vmatprep.subr.bf16.mxu0 %v7414_v51  ;;  %v5448_v51 = vld [vmem:[#allocation9 + $0x1a] sm:$0x3] }
 0x658   : > { %5815 = vmatpush1.bf16.msra.mxu1 %v7354_v52  ;;  %v7416_v52 = vld [vmem:[#allocation7 + $0x128] ss:$12 sps:$4 sm:$0xff]  }
 0x659   : > { %5816 = vmatprep.subr.bf16.mxu1 %v7359_v19  ;;  %v7418_v19 = vld [vmem:[#allocation7 + $0x140] ss:$12 sps:$4 sm:$0xff]  }
 0x65a   : > { %7007 = vmatpush3.bf16.msra.mxu0 %v7415_v57 }
 0x65b   : > { %7008 = vmatprep.subr.bf16.mxu0 %v7416_v52  ;;  %v5449_v52 = vld [vmem:[#allocation9 + $0x1c] sm:$0x3] }
 0x65c   : > { %5817 = vmatpush1.bf16.msra.mxu1 %v7357_v36  ;;  %v7420_v36 = vld [vmem:[#allocation7 + $0x158] ss:$12 sps:$4 sm:$0xff]  }
 0x65d   : > { %5827 = vmatprep.subr.bf16.mxu1 %v7362_v3  ;;  %v7422_v3 = vld [vmem:[#allocation7 + $0x170] ss:$12 sps:$4 sm:$0xff]  }
 0x65e   : > { %7009 = vmatpush3.bf16.msra.mxu0 %v7417_v1 }
 0x65f   : > { %5819 = vmatmul.mubr.bf16.vlgmr.msra.gmra.mrb[16].mxu1 %v5451_v7  ;;  %7010 = vmatprep.subr.bf16.mxu0 %v7418_v19 }
 0x660   : > { %5828 = vmatpush1.bf16.msra.mxu1 %v7360_v6  ;;  %5859 = vmatprep.mubr.bf16.mxu1 %v5454_v9  ;;  %v5447_v6 = vld [vmem:[#allocation9 + $0x18] sm:$0x3] }
 0x661   : > { %5829 = vmatprep.subr.bf16.mxu1 %v7365_v8  ;;  %v5459_v7 = vrot.slane %v5447_v6, %v7930_v21  ;;  %v5463_v8 = vrot.slane %v5447_v6, %v7921_v34 }
 0x662   : > { %7011 = vmatpush3.bf16.msra.mxu0 %v7419_v2 }
 0x663   : > { %7012 = vmatprep.subr.bf16.mxu0 %v7420_v36  ;;  %v5944_v36 = vrot.slane %v5449_v52, %v7930_v21 }
 0x664   : > { %5830 = vmatpush1.bf16.msra.mxu1 %v7363_v10 }
 0x665   : > { %5831 = vmatprep.subr.bf16.mxu1 %v7368_v55 }
 0x666   : > { %7013 = vmatpush3.bf16.msra.mxu0 %v7421_v60  ;;  %v5948_v60 = vrot.slane %v5449_v52, %v7921_v34 }
 0x667   : > { %7014 = vmatprep.subr.bf16.mxu0 %v7422_v3 }
 0x668   : > { %5832 = vmatpush1.bf16.msra.mxu1 %v7366_v12 }
 0x669   : > { %5833 = vmatprep.subr.bf16.mxu1 %v7371_v45 }
 0x66a   : > { %7015 = vmatpush3.bf16.msra.mxu0 %v7423_v5 }
 0x66c   : > { %5834 = vmatpush1.bf16.msra.mxu1 %v7369_v13 }
 0x66d   : > { %5835 = vmatprep.subr.bf16.mxu1 %v7374_v32 }
 0x670   : > { %5836 = vmatpush1.bf16.msra.mxu1 %v7372_v14 }
 0x671   : > { %5837 = vmatprep.subr.bf16.mxu1 %v7377_v15 }
 0x674   : > { %5838 = vmatpush1.bf16.msra.mxu1 %v7375_v38 }
 0x675   : > { %5839 = vmatprep.subr.bf16.mxu1 %v7380_v17 }
 0x678   : > { %5840 = vmatpush1.bf16.msra.mxu1 %v7378_v18 }
 0x679   : > { %5841 = vmatprep.subr.bf16.mxu1 %v7383_v20 }
 0x67c   : > { %5842 = vmatpush1.bf16.msra.mxu1 %v7381_v23 }
 0x67d   : > { %5843 = vmatprep.subr.bf16.mxu1 %v7386_v56 }
 0x680   : > { %5844 = vmatpush1.bf16.msra.mxu1 %v7384_v24 }
 0x681   : > { %5845 = vmatprep.subr.bf16.mxu1 %v7389_v25 }
 0x684   : > { %5846 = vmatpush1.bf16.msra.mxu1 %v7387_v63 }
 0x685   : > { %5847 = vmatprep.subr.bf16.mxu1 %v7392_v26 }
 0x688   : > { %5848 = vmatpush1.bf16.msra.mxu1 %v7390_v27 }
 0x689   : > { %5849 = vmatprep.subr.bf16.mxu1 %v7395_v29 }
 0x68c   : > { %5850 = vmatpush1.bf16.msra.mxu1 %v7393_v30 }
 0x68d   : > { %5851 = vmatprep.subr.bf16.mxu1 %v7398_v47 }
 0x690   : > { %5852 = vmatpush1.bf16.msra.mxu1 %v7396_v35 }
 0x691   : > { %5853 = vmatprep.subr.bf16.mxu1 %v7401_v37 }
 0x694   : > { %5854 = vmatpush1.bf16.msra.mxu1 %v7399_v39 }
 0x695   : > { %5855 = vmatprep.subr.bf16.mxu1 %v7404_v41 }
 0x698   : > { %5856 = vmatpush1.bf16.msra.mxu1 %v7402_v42 }
 0x699   : > { %5857 = vmatprep.subr.bf16.mxu1 %v7407_v44 }
 0x69c   : > { %5858 = vmatpush1.bf16.msra.mxu1 %v7405_v46 }
 0x69f   : > { %5860 = vmatmul.mubr.bf16.vlgmr.msra.gmra.mrb[16].mxu1 %v5453_v49 }
 0x6f2   : > { %v6994_v28 = vpop.f32.mrb[12].mxu1 }
 0x6f3   : > { %v6995_v50 = vpop.f32.mrb[13].mxu1 }
 0x6f4   : > { %v6996_v4 = vadd.f32 %v6995_v50, %v6994_v28  ;;  %v6997_v58 = vpop.f32.mrb[14].mxu1 }
 0x6f5   : > { %v6998_v31 = vpop.f32.mrb[15].mxu1 }
 0x6f6   : > { %v5345_v54 = vadd.f32 %v6996_v4, %v6856_v53 }
 0x6f8   : > { %5350 = vst [vmem:[%s361_s9] sm:$0xff] %v5345_v54 }
 0x772   : > { %v5861_v9 = vpop.f32.mrb[16].mxu1 }
 0x773   : > { %v7032_v10 = vadd.f32 %v5861_v9, %v5459_v7  ;;  %v5863_v55 = vpop.f32.mrb[17].mxu1 }
 0x774   : > { %v7033_v12 = vadd.f32 %v5863_v55, %v5463_v8  ;;  %v5865_v45 = vpop.f32.mrb[18].mxu1 }
 0x775   : > { %v5868_v13 = vmul.f32 %v7032_v10, %v7955_v16  ;;  %v5866_v32 = vpop.f32.mrb[19].mxu1 }
 0x776   : > { %v5869_v14 = vmul.f32 %v7033_v12, %v7955_v16 }
 0x777   : > { %v5870_v15 = vrot.slane %v5868_v13, 4 }
 0x778   : > { %v5876_v38 = vrot.slane %v5869_v14, 4 }
 0x779   : > { %v5871_v17 = vadd.f32 %v5870_v15, %v5868_v13 }
 0x77a   : > { %v5877_v18 = vadd.f32 %v5876_v38, %v5869_v14 }
 0x77b   : > { %v5872_v20 = vrot.slane %v5871_v17, 2 }
 0x77c   : > { %v5878_v23 = vrot.slane %v5877_v18, 2 }
 0x77d   : > { %v5873_v56 = vadd.f32 %v5872_v20, %v5871_v17 }
 0x77e   : > { %v5879_v24 = vadd.f32 %v5878_v23, %v5877_v18 }
 0x77f   : > { %v5874_v25 = vrot.slane %v5873_v56, 1 }
 0x780   : > { %v5880_v63 = vrot.slane %v5879_v24, 1 }
 0x781   : > { %v5875_v26 = vadd.f32 %v5874_v25, %v5873_v56 }
 0x782   : > { %v5881_v27 = vadd.f32 %v5880_v63, %v5879_v24 }
 0x783   : > { %v5882_v29 = vmul.f32 0.5, %v5875_v26 }
 0x784   : > { %v5883_v30 = vmul.f32 0.5, %v5881_v27 }
 0x785   : > { %v5884_v47 = vsub.f32 %v7032_v10, %v5882_v29 }
 0x786   : > { %v5885_v35 = vsub.f32 %v7033_v12, %v5883_v30  ;;  %v6937_v12 = vld [vmem:[#allocation9 + $0x1e] ss:$0 sm:$0xff] }
 0x787   : > { %v5886_v37 = vmul.f32 %v5884_v47, %v5884_v47 }
 0x788   : > { %v5887_v39 = vmul.f32 %v5885_v35, %v5885_v35 }
 0x789   : > { %v5888_v40 = vmul.f32 %v7955_v16, %v5886_v37 }
 0x78a   : > { %v5889_v41 = vmul.f32 %v7955_v16, %v5887_v39 }
 0x78b   : > { %v5890_v42 = vrot.slane %v5888_v40, 4 }
 0x78c   : > { %v5896_v43 = vrot.slane %v5889_v41, 4 }
 0x78d   : > { %v5891_v44 = vadd.f32 %v5890_v42, %v5888_v40 }
 0x78e   : > { %v5897_v46 = vadd.f32 %v5896_v43, %v5889_v41 }
 0x78f   : > { %v5892_v48 = vrot.slane %v5891_v44, 2 }
 0x790   : > { %v5898_v49 = vrot.slane %v5897_v46, 2 }
 0x791   : > { %v5893_v28 = vadd.f32 %v5892_v48, %v5891_v44 }
 0x792   : > { %v5899_v53 = vadd.f32 %v5898_v49, %v5897_v46 }
 0x793   : > { %v5894_v50 = vrot.slane %v5893_v28, 1 }
 0x794   : > { %v5900_v4 = vrot.slane %v5899_v53, 1 }
 0x795   : > { %v5895_v58 = vadd.f32 %v5894_v50, %v5893_v28 }
 0x796   : > { %v5901_v31 = vadd.f32 %v5900_v4, %v5899_v53 }
 0x797   : > { %v5902_v54 = vmul.f32 0.5, %v5895_v58 }
 0x798   : > { %v5903_v59 = vmul.f32 0.5, %v5901_v31 }
 0x799   : > { %v5904_v61 = vadd.f32 1e-05, %v5902_v54 }
 0x79a   : > { %v5905_v62 = vadd.f32 1e-05, %v5903_v59 }
 0x79b   : > { %7432 = vrsqrt.f32 %v5904_v61 }
 0x79c   : > { %7434 = vrsqrt.f32 %v5905_v62 }
 0x7a5   : > { %v7433_v33 = vpop.eup %7432 }
 0x7a6   : > { %v7435_v16 = vpop.eup %7434 }
 0x7a7   : > { %v5910_v0 = vcombine.low %v7433_v33, %v7435_v16 }
 0x7a9   : > { %v5917_v22 = vrot.slane %v5910_v0, %v7962_v11 }
 0x7ab   : > { %v5924_v57 = vrot.slane %v5917_v22, %v7962_v11 }
 0x7ad   : > { %v5926_v1 = vmul.f32 %v5924_v57, %v5448_v51 }
 0x7af   : > { %v5931_v19 = vrot.slane %v5926_v1, %v7930_v21  ;;  %v5935_v2 = vrot.slane %v5926_v1, %v7921_v34 }
 0x7b1   : > { %v5939_v3 = vmul.f32 %v5935_v2, %v5885_v35  ;;  %v5938_v5 = vmul.f32 %v5931_v19, %v5884_v47 }
 0x7b3   : > { %v5952_v6 = vadd.f32 %v5948_v60, %v5939_v3  ;;  %v5951_v7 = vadd.f32 %v5944_v36, %v5938_v5 }
 0x7b5   : > { %v5954_v8 = vmax.f32 %v5952_v6, 0.0  ;;  %v5953_v9 = vmax.f32 %v5951_v7, 0.0 }
 0x7b7   : > { %v5956_v10 = vpack.c.bf16 %v5954_v8, %v5954_v8  ;;  %v5955_v55 = vpack.c.bf16 %v5953_v9, %v5953_v9 }
 0x7b9   : > { %6091 = vmatprep.mubr.bf16.mxu0 %v5956_v10 }
 0x7ba   : > { %6092 = vmatmul.mubr.bf16.vlgmr.msra.gmra.mrb[16].mxu0 %v5955_v55 }
 0x88d   : > { %v7016_v11 = vpop.f32.mrb[16].mxu0 }
 0x88e   : > { %v7017_v45 = vpop.f32.mrb[17].mxu0 }
 0x88f   : > { %v7018_v13 = vadd.f32 %v7017_v45, %v7016_v11  ;;  %v7019_v32 = vpop.f32.mrb[18].mxu0 }
 0x890   : > { %v7020_v34 = vpop.f32.mrb[19].mxu0 }
 0x891   : > { %v6094_v21 = vadd.f32 %v7018_v13, %v6937_v12 }
 0x893   : > { %6099 = vst [vmem:[%s365_s14] sm:$0xff] %v6094_v21 }
 0x894 PF: > { %s22_s27 = sadd.s32 1, %s7595_s27  }
 0x895   : > { %p19_p4 = scmp.ge.s32.totalorder %s22_s27, 4  }
 0x897   :  { %21 = sbr.rel (!%p19_p4) target bundleno = 3 (0x3), region = 108 }
 0x89e   :  { %6133 = vsyncpa [#allocation3], 1 }
 0x89f   :  { %6135 = vsyncpa [#allocation3 + $0x1], 1 }
 0x8a0   :  { %6136 = vsyncpa [#allocation5], 1 }
 0x8a1   :  { %6137 = vsyncpa [#allocation8], 1 }

</bundles_post_ra>
